<compile_context>
chip_gen: v5e
topology: v5e:2x2
jax: 0.10.0
libtpu: 0.0.40
codegen_flags: <defaults>
</compile_context>

<pallas_src>
import functools

import jax
import jax.numpy as jnp
from jax import lax
from jax.experimental import pallas as pl
from jax.experimental.pallas import tpu as pltpu

EPS = 1e-5
MXU_DTYPE = jnp.bfloat16  # MXU operand dtype; accumulation & BN math stay f32.


# ---------------- in-kernel building blocks ----------------

def _pad_im2col_conv(img, w_ref, xpad_ref, patches_ref, acc_ref, st_ref, hp, wp, cin):
    """pad(1) + 3x3 conv as ONE im2col MXU matmul, plus partial BatchNorm stats.

    img        : (hp, wp, cin)        channels-last MXU_DTYPE image for this grid step
    w_ref      : (cout, 9*cin)        MXU_DTYPE weight matrix, column order tap*cin + c
    xpad_ref   : (hp+2, wp+2, cin)    VMEM scratch (zero-padded image)
    patches_ref: (hp, wp, 9*cin)      VMEM scratch (im2col patch matrix)
    acc_ref    : (1, cout, hp*wp)     f32 output block (lane-dense over hp*wp)
    st_ref     : (1, cout, 2)         f32 per-image [sum, sum_sq] partial BN stats
    """
    hw = hp * wp

    # Zero the halo once (interior is fully overwritten every grid step below).
    @pl.when(pl.program_id(0) == 0)
    def _():
        xpad_ref[...] = jnp.zeros_like(xpad_ref)

    xpad_ref[1:hp + 1, 1:wp + 1, :] = img

    # Build the patch matrix (9 shifted slabs, static unrolled), then one MXU matmul.
    for tap in range(9):
        dy, dx = tap // 3, tap % 3
        patches_ref[:, :, tap * cin:(tap + 1) * cin] = xpad_ref[dy:dy + hp, dx:dx + wp, :]

    # (cout, 9*cin) . (hw, 9*cin)^T -> (cout, hw), f32 accumulation on the MXU.
    acc = lax.dot_general(
        w_ref[...], patches_ref[...].reshape(hw, 9 * cin),
        dimension_numbers=(((1,), (1,)), ((), ())),
        preferred_element_type=jnp.float32)
    acc_ref[0] = acc

    # Partial BN stats for the two-pass BatchNorm (finalized in the wrapper).
    st_ref[0, :, 0:1] = jnp.sum(acc, axis=1, keepdims=True)
    st_ref[0, :, 1:2] = jnp.sum(acc * acc, axis=1, keepdims=True)


def pool_conv_kernel(x_ref, w_ref, acc_ref, st_ref, xpad_ref, patches_ref, *, hp, wp, cin):
    """Stage 1: fused 2x2/stride-2 max-pool + zero-pad + conv1 (+ partial BN1 stats).

    x_ref: (hp, 2, wp, 2*cin) bf16 -- NHWC image pre-reshaped in the wrapper so that both
    pooling pair-maxes are plain unit-stride slices (row pairs on dim 1, column pairs split
    across the lane dim).
    """
    x = x_ref[...]                                   # (hp, 2, wp, 2*cin)
    a = jnp.maximum(x[:, 0], x[:, 1])                # vertical pair max  -> (hp, wp, 2*cin)
    pooled = jnp.maximum(a[..., :cin], a[..., cin:])  # horizontal pair max -> (hp, wp, cin)
    _pad_im2col_conv(pooled, w_ref, xpad_ref, patches_ref, acc_ref, st_ref, hp, wp, cin)


def bn_relu_conv_kernel(a_ref, sc_ref, sh_ref, w_ref, acc_ref, st_ref,
                        xpad_ref, patches_ref, *, hp, wp, cin):
    """Stage 2: BN1 (folded scale/shift) + ReLU1 fused with pad + conv2 (+ BN2 stats)."""
    h = jnp.maximum(a_ref[0] * sc_ref[...] + sh_ref[...], 0.0)          # (cin, hw) f32
    img = jnp.transpose(h, (1, 0)).reshape(hp, wp, cin).astype(xpad_ref.dtype)
    _pad_im2col_conv(img, w_ref, xpad_ref, patches_ref, acc_ref, st_ref, hp, wp, cin)


def bn_relu_kernel(a_ref, sc_ref, sh_ref, o_ref):
    """Stage 3: BN2 (folded scale/shift) + ReLU2 epilogue, lane-dense (C, H*W) store."""
    o_ref[0] = jnp.maximum(a_ref[0] * sc_ref[...] + sh_ref[...], 0.0)


# ---------------- wrapper helpers ----------------

def _mosaic_params():
    # "parallel" batch axis -> megacore / v7x 2-TC sharding; explicit VMEM budget that fits
    # every generation (v7x has only 64 MiB physical VMEM).
    return pltpu.CompilerParams(
        dimension_semantics=("parallel",),
        vmem_limit_bytes=32 * 1024 * 1024)


def _conv_weight_matrix(w_oihw):
    # (Cout, Cin, 3, 3) -> (Cout, 9*Cin) with column order (dy*3+dx)*Cin + c; bf16 for MXU.
    cout, cin = w_oihw.shape[0], w_oihw.shape[1]
    return jnp.transpose(w_oihw, (0, 2, 3, 1)).reshape(cout, 9 * cin).astype(MXU_DTYPE)


def _bn_scale_shift(partial_stats, gamma, beta, count):
    # partial_stats: (N, C, 2) = per-image [sum, sum_sq].  Training-mode BN (biased variance);
    # gamma / rsqrt(var) / beta / mean folded into one scale & one shift.
    total = jnp.sum(partial_stats, axis=0)              # (C, 2)
    mean = total[:, 0] / count
    var = total[:, 1] / count - mean * mean              # E[x^2] - mean^2
    scale = gamma * lax.rsqrt(var + EPS)
    shift = beta - mean * scale
    return (scale.reshape(-1, 1).astype(jnp.float32),
            shift.reshape(-1, 1).astype(jnp.float32))


def unet_down(x_nchw, params):
    """UnetDown forward (training-mode BatchNorm). Input/output are NCHW float32."""
    N, cin, H, W = x_nchw.shape
    assert H % 2 == 0 and W % 2 == 0, "MaxPool2d(2) path assumes even H, W"
    hp, wp = H // 2, W // 2
    hw = hp * wp
    c1 = params["w1"].shape[0]
    c2 = params["w2"].shape[0]

    # NCHW -> NHWC once, bf16 for the MXU + halved HBM read, then a bitcast reshape to
    # (N*hp, 2, wp, 2*cin) so the in-kernel max-pool needs only unit-stride slices.
    # NOTE: conv biases b1/b2 are intentionally unused in the kernels: BatchNorm's batch-mean
    # subtraction cancels a per-channel constant bias exactly.
    x_nhwc = jnp.transpose(x_nchw, (0, 2, 3, 1)).astype(MXU_DTYPE)
    x_pool = x_nhwc.reshape(N * hp, 2, wp, 2 * cin)
    w1m = _conv_weight_matrix(params["w1"])
    w2m = _conv_weight_matrix(params["w2"])

    # ---- stage 1: fused maxpool + pad + conv1 (+ partial BN1 stats) ----
    acc1, st1 = pl.pallas_call(
        functools.partial(pool_conv_kernel, hp=hp, wp=wp, cin=cin),
        out_shape=(jax.ShapeDtypeStruct((N, c1, hw), jnp.float32),
                   jax.ShapeDtypeStruct((N, c1, 2), jnp.float32)),
        grid_spec=pltpu.PrefetchScalarGridSpec(
            num_scalar_prefetch=0, grid=(N,),
            in_specs=[
                pl.BlockSpec((hp, 2, wp, 2 * cin), lambda n: (n, 0, 0, 0)),
                pl.BlockSpec((c1, 9 * cin), lambda n: (0, 0)),
            ],
            out_specs=[
                pl.BlockSpec((1, c1, hw), lambda n: (n, 0, 0)),
                pl.BlockSpec((1, c1, 2), lambda n: (n, 0, 0)),
            ],
            scratch_shapes=[
                pltpu.VMEM((hp + 2, wp + 2, cin), MXU_DTYPE),  # zero-padded image
                pltpu.VMEM((hp, wp, 9 * cin), MXU_DTYPE),      # im2col patches
            ]),
        compiler_params=_mosaic_params(),
    )(x_pool, w1m)
    scale1, shift1 = _bn_scale_shift(st1, params["g1"], params["be1"], N * hw)

    # ---- stage 2: BN1 + ReLU1 fused with pad + conv2 (+ partial BN2 stats) ----
    acc2, st2 = pl.pallas_call(
        functools.partial(bn_relu_conv_kernel, hp=hp, wp=wp, cin=c1),
        out_shape=(jax.ShapeDtypeStruct((N, c2, hw), jnp.float32),
                   jax.ShapeDtypeStruct((N, c2, 2), jnp.float32)),
        grid_spec=pltpu.PrefetchScalarGridSpec(
            num_scalar_prefetch=0, grid=(N,),
            in_specs=[
                pl.BlockSpec((1, c1, hw), lambda n: (n, 0, 0)),
                pl.BlockSpec((c1, 1), lambda n: (0, 0)),
                pl.BlockSpec((c1, 1), lambda n: (0, 0)),
                pl.BlockSpec((c2, 9 * c1), lambda n: (0, 0)),
            ],
            out_specs=[
                pl.BlockSpec((1, c2, hw), lambda n: (n, 0, 0)),
                pl.BlockSpec((1, c2, 2), lambda n: (n, 0, 0)),
            ],
            scratch_shapes=[
                pltpu.VMEM((hp + 2, wp + 2, c1), MXU_DTYPE),
                pltpu.VMEM((hp, wp, 9 * c1), MXU_DTYPE),
            ]),
        compiler_params=_mosaic_params(),
    )(acc1, scale1, shift1, w2m)
    scale2, shift2 = _bn_scale_shift(st2, params["g2"], params["be2"], N * hw)

    # ---- stage 3: BN2 + ReLU2 epilogue (lane-dense (C, H*W) store) ----
    out_flat = pl.pallas_call(
        bn_relu_kernel,
        out_shape=jax.ShapeDtypeStruct((N, c2, hw), jnp.float32),
        grid_spec=pltpu.PrefetchScalarGridSpec(
            num_scalar_prefetch=0, grid=(N,),
            in_specs=[
                pl.BlockSpec((1, c2, hw), lambda n: (n, 0, 0)),
                pl.BlockSpec((c2, 1), lambda n: (0, 0)),
                pl.BlockSpec((c2, 1), lambda n: (0, 0)),
            ],
            out_specs=pl.BlockSpec((1, c2, hw), lambda n: (n, 0, 0))),
        compiler_params=_mosaic_params(),
    )(acc2, scale2, shift2)

    # (N, C, Hp*Wp) -> (N, C, Hp, Wp): contiguity-preserving reshape, already NCHW.
    return out_flat.reshape(N, c2, hp, wp)


# ---------------- pure-JAX reference (for verification) ----------------

def ref_unet_down(x_nchw, params):
    """Reference matching the PyTorch module in training mode.  Conv operands are rounded to
    MXU_DTYPE to mirror the kernel's MXU input precision (accumulation stays f32); the conv
    bias IS applied here (the kernel drops it because BatchNorm cancels it exactly), so the
    comparison also checks that identity."""
    def rnd(v):
        return v.astype(MXU_DTYPE).astype(jnp.float32)

    x = jnp.transpose(x_nchw, (0, 2, 3, 1)).astype(jnp.float32)
    x = rnd(x)
    x = lax.reduce_window(x, -jnp.inf, lax.max, (1, 2, 2, 1), (1, 2, 2, 1), "VALID")
    for w, b, g, be in [
        (params["w1"], params["b1"], params["g1"], params["be1"]),
        (params["w2"], params["b2"], params["g2"], params["be2"]),
    ]:
        y = lax.conv_general_dilated(
            rnd(x), rnd(jnp.transpose(w, (2, 3, 1, 0))), (1, 1), "SAME",
            dimension_numbers=("NHWC", "HWIO", "NHWC"),
            precision=lax.Precision.HIGHEST)
        y = y + b
        mean = jnp.mean(y, axis=(0, 1, 2), keepdims=True)
        var = jnp.mean((y - mean) ** 2, axis=(0, 1, 2), keepdims=True)
        y = (y - mean) * lax.rsqrt(var + EPS) * g + be
        x = jnp.maximum(y, 0.0)
    return jnp.transpose(x, (0, 3, 1, 2))


# ---------------- main ----------------

if __name__ == "__main__":
    key = jax.random.PRNGKey(0)
    in_channel, out_channel = 4, 8
    N, H, W = 2, 16, 16

    k_x, k_w1, k_b1, k_w2, k_b2, k_g1, k_g2 = jax.random.split(key, 7)
    x = jax.random.normal(k_x, (N, in_channel, H, W), jnp.float32)

    params = {
        "w1": 0.1 * jax.random.normal(k_w1, (out_channel, in_channel, 3, 3), jnp.float32),
        "b1": 0.01 * jax.random.normal(k_b1, (out_channel,), jnp.float32),
        "g1": 1.0 + 0.1 * jax.random.normal(k_g1, (out_channel,), jnp.float32),
        "be1": 0.1 * jnp.ones((out_channel,), jnp.float32),
        "w2": 0.1 * jax.random.normal(k_w2, (out_channel, out_channel, 3, 3), jnp.float32),
        "b2": 0.01 * jax.random.normal(k_b2, (out_channel,), jnp.float32),
        "g2": 1.0 + 0.1 * jax.random.normal(k_g2, (out_channel,), jnp.float32),
        "be2": -0.1 * jnp.ones((out_channel,), jnp.float32),
    }

    out = jax.block_until_ready(jax.jit(unet_down)(x, params))
    ref = jax.block_until_ready(ref_unet_down(x, params))

    assert out.shape == (N, out_channel, H // 2, W // 2), out.shape
    err = float(jnp.max(jnp.abs(out - ref)))
    assert err < 2e-3, err

    print("KERNEL_OK")
</pallas_src>

<mosaic_0001>
module attributes {stable_mosaic.version = 11 : i64} {
  func.func @pool_conv_kernel(%arg0: i32, %arg1: memref<8x2x8x8xbf16, #tpu.memory_space<vmem>>, %arg2: memref<8x36xbf16, #tpu.memory_space<vmem>>, %arg3: memref<1x8x64xf32, #tpu.memory_space<vmem>>, %arg4: memref<1x8x2xf32, #tpu.memory_space<vmem>>, %arg5: memref<10x10x4xbf16, #tpu.memory_space<vmem>>, %arg6: memref<8x8x36xbf16, #tpu.memory_space<vmem>>) attributes {dimension_semantics = [#tpu.dimension_semantics<parallel>], iteration_bounds = array<i64: 2>, scalar_prefetch = 0 : i64, scratch_operands = 2 : i64, tpu.core_type = #tpu.core_type<tc>, window_params = [{transform_indices = @transform_0, window_bounds = array<i64: 8, 2, 8, 8>}, {pipeline_mode = #tpu.pipeline_mode<synchronous>, transform_indices = @transform_1, window_bounds = array<i64: 8, 36>}, {transform_indices = @transform_2, window_bounds = array<i64: 1, 8, 64>}, {transform_indices = @transform_3, window_bounds = array<i64: 1, 8, 2>}]} {
    %c0 = arith.constant 0 : index
    %c0_0 = arith.constant 0 : index
    %c0_1 = arith.constant 0 : index
    %c0_2 = arith.constant 0 : index
    %0 = vector.load %arg1[%c0, %c0_0, %c0_1, %c0_2] : memref<8x2x8x8xbf16, #tpu.memory_space<vmem>>, vector<8x2x8x8xbf16>
    %1 = vector.extract_strided_slice %0 {offsets = [0, 0, 0, 0], sizes = [8, 1, 8, 8], strides = [1, 1, 1, 1]} : vector<8x2x8x8xbf16> to vector<8x1x8x8xbf16>
    %2 = vector.shape_cast %1 : vector<8x1x8x8xbf16> to vector<8x8x8xbf16>
    %3 = vector.extract_strided_slice %0 {offsets = [0, 1, 0, 0], sizes = [8, 1, 8, 8], strides = [1, 1, 1, 1]} : vector<8x2x8x8xbf16> to vector<8x1x8x8xbf16>
    %4 = vector.shape_cast %3 : vector<8x1x8x8xbf16> to vector<8x8x8xbf16>
    %5 = arith.maximumf %2, %4 : vector<8x8x8xbf16>
    %6 = vector.extract_strided_slice %5 {offsets = [0, 0, 0], sizes = [8, 8, 4], strides = [1, 1, 1]} : vector<8x8x8xbf16> to vector<8x8x4xbf16>
    %7 = vector.extract_strided_slice %5 {offsets = [0, 0, 4], sizes = [8, 8, 4], strides = [1, 1, 1]} : vector<8x8x8xbf16> to vector<8x8x4xbf16>
    %8 = arith.maximumf %6, %7 : vector<8x8x4xbf16>
    %c0_i32 = arith.constant 0 : i32
    %9 = arith.cmpi eq, %arg0, %c0_i32 : i32
    %10 = arith.extui %9 : i1 to i32
    %c0_i32_3 = arith.constant 0 : i32
    %11 = arith.cmpi ne, %10, %c0_i32_3 : i32
    scf.if %11 {
      %cst_67 = arith.constant 0.000000e+00 : bf16
      %49 = vector.broadcast %cst_67 : bf16 to vector<10x10x4xbf16>
      %c0_68 = arith.constant 0 : index
      %c0_69 = arith.constant 0 : index
      %c0_70 = arith.constant 0 : index
      %50 = vector.load %arg5[%c0_68, %c0_69, %c0_70] : memref<10x10x4xbf16, #tpu.memory_space<vmem>>, vector<10x10x4xbf16>
      tpu.vector_store %arg5[%c0_68, %c0_69, %c0_70], %49 {strides = array<i32>} : memref<10x10x4xbf16, #tpu.memory_space<vmem>>, vector<10x10x4xbf16>,
    } else {
    }
    %c1 = arith.constant 1 : index
    %c1_4 = arith.constant 1 : index
    %c0_5 = arith.constant 0 : index
    %12 = vector.load %arg5[%c1, %c1_4, %c0_5] : memref<10x10x4xbf16, #tpu.memory_space<vmem>>, vector<8x8x4xbf16>
    tpu.vector_store %arg5[%c1, %c1_4, %c0_5], %8 {strides = array<i32>} : memref<10x10x4xbf16, #tpu.memory_space<vmem>>, vector<8x8x4xbf16>,
    %c0_6 = arith.constant 0 : index
    %c0_7 = arith.constant 0 : index
    %c0_8 = arith.constant 0 : index
    %13 = vector.load %arg5[%c0_6, %c0_7, %c0_8] : memref<10x10x4xbf16, #tpu.memory_space<vmem>>, vector<8x8x4xbf16>
    %c0_9 = arith.constant 0 : index
    %c0_10 = arith.constant 0 : index
    %c0_11 = arith.constant 0 : index
    %14 = vector.load %arg6[%c0_9, %c0_10, %c0_11] : memref<8x8x36xbf16, #tpu.memory_space<vmem>>, vector<8x8x4xbf16>
    tpu.vector_store %arg6[%c0_9, %c0_10, %c0_11], %13 {strides = array<i32>} : memref<8x8x36xbf16, #tpu.memory_space<vmem>>, vector<8x8x4xbf16>,
    %c0_12 = arith.constant 0 : index
    %c1_13 = arith.constant 1 : index
    %c0_14 = arith.constant 0 : index
    %15 = vector.load %arg5[%c0_12, %c1_13, %c0_14] : memref<10x10x4xbf16, #tpu.memory_space<vmem>>, vector<8x8x4xbf16>
    %c0_15 = arith.constant 0 : index
    %c0_16 = arith.constant 0 : index
    %c4 = arith.constant 4 : index
    %16 = vector.load %arg6[%c0_15, %c0_16, %c4] : memref<8x8x36xbf16, #tpu.memory_space<vmem>>, vector<8x8x4xbf16>
    tpu.vector_store %arg6[%c0_15, %c0_16, %c4], %15 {strides = array<i32>} : memref<8x8x36xbf16, #tpu.memory_space<vmem>>, vector<8x8x4xbf16>,
    %c0_17 = arith.constant 0 : index
    %c2 = arith.constant 2 : index
    %c0_18 = arith.constant 0 : index
    %17 = vector.load %arg5[%c0_17, %c2, %c0_18] : memref<10x10x4xbf16, #tpu.memory_space<vmem>>, vector<8x8x4xbf16>
    %c0_19 = arith.constant 0 : index
    %c0_20 = arith.constant 0 : index
    %c8 = arith.constant 8 : index
    %18 = vector.load %arg6[%c0_19, %c0_20, %c8] : memref<8x8x36xbf16, #tpu.memory_space<vmem>>, vector<8x8x4xbf16>
    tpu.vector_store %arg6[%c0_19, %c0_20, %c8], %17 {strides = array<i32>} : memref<8x8x36xbf16, #tpu.memory_space<vmem>>, vector<8x8x4xbf16>,
    %c1_21 = arith.constant 1 : index
    %c0_22 = arith.constant 0 : index
    %c0_23 = arith.constant 0 : index
    %19 = vector.load %arg5[%c1_21, %c0_22, %c0_23] : memref<10x10x4xbf16, #tpu.memory_space<vmem>>, vector<8x8x4xbf16>
    %c0_24 = arith.constant 0 : index
    %c0_25 = arith.constant 0 : index
    %c12 = arith.constant 12 : index
    %20 = vector.load %arg6[%c0_24, %c0_25, %c12] : memref<8x8x36xbf16, #tpu.memory_space<vmem>>, vector<8x8x4xbf16>
    tpu.vector_store %arg6[%c0_24, %c0_25, %c12], %19 {strides = array<i32>} : memref<8x8x36xbf16, #tpu.memory_space<vmem>>, vector<8x8x4xbf16>,
    %c1_26 = arith.constant 1 : index
    %c1_27 = arith.constant 1 : index
    %c0_28 = arith.constant 0 : index
    %21 = vector.load %arg5[%c1_26, %c1_27, %c0_28] : memref<10x10x4xbf16, #tpu.memory_space<vmem>>, vector<8x8x4xbf16>
    %c0_29 = arith.constant 0 : index
    %c0_30 = arith.constant 0 : index
    %c16 = arith.constant 16 : index
    %22 = vector.load %arg6[%c0_29, %c0_30, %c16] : memref<8x8x36xbf16, #tpu.memory_space<vmem>>, vector<8x8x4xbf16>
    tpu.vector_store %arg6[%c0_29, %c0_30, %c16], %21 {strides = array<i32>} : memref<8x8x36xbf16, #tpu.memory_space<vmem>>, vector<8x8x4xbf16>,
    %c1_31 = arith.constant 1 : index
    %c2_32 = arith.constant 2 : index
    %c0_33 = arith.constant 0 : index
    %23 = vector.load %arg5[%c1_31, %c2_32, %c0_33] : memref<10x10x4xbf16, #tpu.memory_space<vmem>>, vector<8x8x4xbf16>
    %c0_34 = arith.constant 0 : index
    %c0_35 = arith.constant 0 : index
    %c20 = arith.constant 20 : index
    %24 = vector.load %arg6[%c0_34, %c0_35, %c20] : memref<8x8x36xbf16, #tpu.memory_space<vmem>>, vector<8x8x4xbf16>
    tpu.vector_store %arg6[%c0_34, %c0_35, %c20], %23 {strides = array<i32>} : memref<8x8x36xbf16, #tpu.memory_space<vmem>>, vector<8x8x4xbf16>,
    %c2_36 = arith.constant 2 : index
    %c0_37 = arith.constant 0 : index
    %c0_38 = arith.constant 0 : index
    %25 = vector.load %arg5[%c2_36, %c0_37, %c0_38] : memref<10x10x4xbf16, #tpu.memory_space<vmem>>, vector<8x8x4xbf16>
    %c0_39 = arith.constant 0 : index
    %c0_40 = arith.constant 0 : index
    %c24 = arith.constant 24 : index
    %26 = vector.load %arg6[%c0_39, %c0_40, %c24] : memref<8x8x36xbf16, #tpu.memory_space<vmem>>, vector<8x8x4xbf16>
    tpu.vector_store %arg6[%c0_39, %c0_40, %c24], %25 {strides = array<i32>} : memref<8x8x36xbf16, #tpu.memory_space<vmem>>, vector<8x8x4xbf16>,
    %c2_41 = arith.constant 2 : index
    %c1_42 = arith.constant 1 : index
    %c0_43 = arith.constant 0 : index
    %27 = vector.load %arg5[%c2_41, %c1_42, %c0_43] : memref<10x10x4xbf16, #tpu.memory_space<vmem>>, vector<8x8x4xbf16>
    %c0_44 = arith.constant 0 : index
    %c0_45 = arith.constant 0 : index
    %c28 = arith.constant 28 : index
    %28 = vector.load %arg6[%c0_44, %c0_45, %c28] : memref<8x8x36xbf16, #tpu.memory_space<vmem>>, vector<8x8x4xbf16>
    tpu.vector_store %arg6[%c0_44, %c0_45, %c28], %27 {strides = array<i32>} : memref<8x8x36xbf16, #tpu.memory_space<vmem>>, vector<8x8x4xbf16>,
    %c2_46 = arith.constant 2 : index
    %c2_47 = arith.constant 2 : index
    %c0_48 = arith.constant 0 : index
    %29 = vector.load %arg5[%c2_46, %c2_47, %c0_48] : memref<10x10x4xbf16, #tpu.memory_space<vmem>>, vector<8x8x4xbf16>
    %c0_49 = arith.constant 0 : index
    %c0_50 = arith.constant 0 : index
    %c32 = arith.constant 32 : index
    %30 = vector.load %arg6[%c0_49, %c0_50, %c32] : memref<8x8x36xbf16, #tpu.memory_space<vmem>>, vector<8x8x4xbf16>
    tpu.vector_store %arg6[%c0_49, %c0_50, %c32], %29 {strides = array<i32>} : memref<8x8x36xbf16, #tpu.memory_space<vmem>>, vector<8x8x4xbf16>,
    %c0_51 = arith.constant 0 : index
    %c0_52 = arith.constant 0 : index
    %31 = vector.load %arg2[%c0_51, %c0_52] : memref<8x36xbf16, #tpu.memory_space<vmem>>, vector<8x36xbf16>
    %c0_53 = arith.constant 0 : index
    %c0_54 = arith.constant 0 : index
    %c0_55 = arith.constant 0 : index
    %32 = vector.load %arg6[%c0_53, %c0_54, %c0_55] : memref<8x8x36xbf16, #tpu.memory_space<vmem>>, vector<8x8x36xbf16>
    %33 = vector.shape_cast %32 : vector<8x8x36xbf16> to vector<64x36xbf16>
    %cst = arith.constant dense<0.000000e+00> : vector<8x64xf32>
    %34 = tpu.matmul %31, %33, %cst {dimension_numbers = #tpu.dot_dimension_numbers<[1], [1], [0], [0], [0, 0, 1, 0], [], []>} : vector<8x36xbf16>, vector<64x36xbf16>, vector<8x64xf32> -> vector<8x64xf32>
    %c0_56 = arith.constant 0 : index
    %c0_57 = arith.constant 0 : index
    %c0_58 = arith.constant 0 : index
    %35 = vector.load %arg3[%c0_56, %c0_57, %c0_58] : memref<1x8x64xf32, #tpu.memory_space<vmem>>, vector<1x8x64xf32>
    %36 = vector.shape_cast %35 : vector<1x8x64xf32> to vector<8x64xf32>
    %37 = vector.shape_cast %34 : vector<8x64xf32> to vector<1x8x64xf32>
    tpu.vector_store %arg3[%c0_56, %c0_57, %c0_58], %37 {strides = array<i32>} : memref<1x8x64xf32, #tpu.memory_space<vmem>>, vector<1x8x64xf32>,
    %cst_59 = arith.constant dense<0.000000e+00> : vector<8xf32>
    %38 = vector.multi_reduction <add>, %34, %cst_59 [1] : vector<8x64xf32> to vector<8xf32>
    %39 = vector.shape_cast %38 : vector<8xf32> to vector<8x1xf32>
    %c0_60 = arith.constant 0 : index
    %c0_61 = arith.constant 0 : index
    %c0_62 = arith.constant 0 : index
    %40 = vector.load %arg4[%c0_60, %c0_61, %c0_62] : memref<1x8x2xf32, #tpu.memory_space<vmem>>, vector<1x8x1xf32>
    %41 = vector.shape_cast %40 : vector<1x8x1xf32> to vector<8x1xf32>
    %42 = vector.shape_cast %39 : vector<8x1xf32> to vector<1x8x1xf32>
    tpu.vector_store %arg4[%c0_60, %c0_61, %c0_62], %42 {strides = array<i32>} : memref<1x8x2xf32, #tpu.memory_space<vmem>>, vector<1x8x1xf32>,
    %43 = arith.mulf %34, %34 : vector<8x64xf32>
    %cst_63 = arith.constant dense<0.000000e+00> : vector<8xf32>
    %44 = vector.multi_reduction <add>, %43, %cst_63 [1] : vector<8x64xf32> to vector<8xf32>
    %45 = vector.shape_cast %44 : vector<8xf32> to vector<8x1xf32>
    %c0_64 = arith.constant 0 : index
    %c0_65 = arith.constant 0 : index
    %c1_66 = arith.constant 1 : index
    %46 = vector.load %arg4[%c0_64, %c0_65, %c1_66] : memref<1x8x2xf32, #tpu.memory_space<vmem>>, vector<1x8x1xf32>
    %47 = vector.shape_cast %46 : vector<1x8x1xf32> to vector<8x1xf32>
    %48 = vector.shape_cast %45 : vector<8x1xf32> to vector<1x8x1xf32>
    tpu.vector_store %arg4[%c0_64, %c0_65, %c1_66], %48 {strides = array<i32>} : memref<1x8x2xf32, #tpu.memory_space<vmem>>, vector<1x8x1xf32>,
    return
  }
  func.func @transform_0(%arg0: i32) -> (i32, i32, i32, i32) {
    %c0_i32 = arith.constant 0 : i32
    %c0_i32_0 = arith.constant 0 : i32
    %c0_i32_1 = arith.constant 0 : i32
    %c0_i32_2 = arith.constant 0 : i32
    return %arg0, %c0_i32, %c0_i32_0, %c0_i32_1 : i32, i32, i32, i32
  }
  func.func @transform_1(%arg0: i32) -> (i32, i32) {
    %c0_i32 = arith.constant 0 : i32
    %c0_i32_0 = arith.constant 0 : i32
    %c0_i32_1 = arith.constant 0 : i32
    return %c0_i32, %c0_i32_0 : i32, i32
  }
  func.func @transform_2(%arg0: i32) -> (i32, i32, i32) {
    %c0_i32 = arith.constant 0 : i32
    %c0_i32_0 = arith.constant 0 : i32
    %c0_i32_1 = arith.constant 0 : i32
    return %arg0, %c0_i32, %c0_i32_0 : i32, i32, i32
  }
  func.func @transform_3(%arg0: i32) -> (i32, i32, i32) {
    %c0_i32 = arith.constant 0 : i32
    %c0_i32_0 = arith.constant 0 : i32
    %c0_i32_1 = arith.constant 0 : i32
    return %arg0, %c0_i32, %c0_i32_0 : i32, i32, i32
  }
}

module attributes {stable_mosaic.version = 11 : i64} {
  func.func @bn_relu_conv_kernel(%arg0: i32, %arg1: memref<1x8x64xf32, #tpu.memory_space<vmem>>, %arg2: memref<8x1xf32, #tpu.memory_space<vmem>>, %arg3: memref<8x1xf32, #tpu.memory_space<vmem>>, %arg4: memref<8x72xbf16, #tpu.memory_space<vmem>>, %arg5: memref<1x8x64xf32, #tpu.memory_space<vmem>>, %arg6: memref<1x8x2xf32, #tpu.memory_space<vmem>>, %arg7: memref<10x10x8xbf16, #tpu.memory_space<vmem>>, %arg8: memref<8x8x72xbf16, #tpu.memory_space<vmem>>) attributes {dimension_semantics = [#tpu.dimension_semantics<parallel>], iteration_bounds = array<i64: 2>, scalar_prefetch = 0 : i64, scratch_operands = 2 : i64, tpu.core_type = #tpu.core_type<tc>, window_params = [{transform_indices = @transform_0, window_bounds = array<i64: 1, 8, 64>}, {pipeline_mode = #tpu.pipeline_mode<synchronous>, transform_indices = @transform_1, window_bounds = array<i64: 8, 1>}, {pipeline_mode = #tpu.pipeline_mode<synchronous>, transform_indices = @transform_2, window_bounds = array<i64: 8, 1>}, {pipeline_mode = #tpu.pipeline_mode<synchronous>, transform_indices = @transform_3, window_bounds = array<i64: 8, 72>}, {transform_indices = @transform_4, window_bounds = array<i64: 1, 8, 64>}, {transform_indices = @transform_5, window_bounds = array<i64: 1, 8, 2>}]} {
    %c0 = arith.constant 0 : index
    %c0_0 = arith.constant 0 : index
    %c0_1 = arith.constant 0 : index
    %0 = vector.load %arg1[%c0, %c0_0, %c0_1] : memref<1x8x64xf32, #tpu.memory_space<vmem>>, vector<1x8x64xf32>
    %1 = vector.shape_cast %0 : vector<1x8x64xf32> to vector<8x64xf32>
    %c0_2 = arith.constant 0 : index
    %c0_3 = arith.constant 0 : index
    %2 = vector.load %arg2[%c0_2, %c0_3] : memref<8x1xf32, #tpu.memory_space<vmem>>, vector<8x1xf32>
    %3 = vector.broadcast %2 : vector<8x1xf32> to vector<8x64xf32>
    %4 = arith.mulf %1, %3 : vector<8x64xf32>
    %c0_4 = arith.constant 0 : index
    %c0_5 = arith.constant 0 : index
    %5 = vector.load %arg3[%c0_4, %c0_5] : memref<8x1xf32, #tpu.memory_space<vmem>>, vector<8x1xf32>
    %6 = vector.broadcast %5 : vector<8x1xf32> to vector<8x64xf32>
    %7 = arith.addf %4, %6 : vector<8x64xf32>
    %cst = arith.constant 0.000000e+00 : f32
    %8 = vector.broadcast %cst : f32 to vector<8x64xf32>
    %9 = arith.maximumf %7, %8 : vector<8x64xf32>
    %10 = tpu.transpose %9, [1, 0] : vector<8x64xf32> -> vector<64x8xf32>
    %11 = vector.shape_cast %10 : vector<64x8xf32> to vector<8x8x8xf32>
    %12 = arith.truncf %11 : vector<8x8x8xf32> to vector<8x8x8xbf16>
    %c0_i32 = arith.constant 0 : i32
    %13 = arith.cmpi eq, %arg0, %c0_i32 : i32
    %14 = arith.extui %13 : i1 to i32
    %c0_i32_6 = arith.constant 0 : i32
    %15 = arith.cmpi ne, %14, %c0_i32_6 : i32
    scf.if %15 {
      %cst_71 = arith.constant 0.000000e+00 : bf16
      %53 = vector.broadcast %cst_71 : bf16 to vector<10x10x8xbf16>
      %c0_72 = arith.constant 0 : index
      %c0_73 = arith.constant 0 : index
      %c0_74 = arith.constant 0 : index
      %54 = vector.load %arg7[%c0_72, %c0_73, %c0_74] : memref<10x10x8xbf16, #tpu.memory_space<vmem>>, vector<10x10x8xbf16>
      tpu.vector_store %arg7[%c0_72, %c0_73, %c0_74], %53 {strides = array<i32>} : memref<10x10x8xbf16, #tpu.memory_space<vmem>>, vector<10x10x8xbf16>,
    } else {
    }
    %c1 = arith.constant 1 : index
    %c1_7 = arith.constant 1 : index
    %c0_8 = arith.constant 0 : index
    %16 = vector.load %arg7[%c1, %c1_7, %c0_8] : memref<10x10x8xbf16, #tpu.memory_space<vmem>>, vector<8x8x8xbf16>
    tpu.vector_store %arg7[%c1, %c1_7, %c0_8], %12 {strides = array<i32>} : memref<10x10x8xbf16, #tpu.memory_space<vmem>>, vector<8x8x8xbf16>,
    %c0_9 = arith.constant 0 : index
    %c0_10 = arith.constant 0 : index
    %c0_11 = arith.constant 0 : index
    %17 = vector.load %arg7[%c0_9, %c0_10, %c0_11] : memref<10x10x8xbf16, #tpu.memory_space<vmem>>, vector<8x8x8xbf16>
    %c0_12 = arith.constant 0 : index
    %c0_13 = arith.constant 0 : index
    %c0_14 = arith.constant 0 : index
    %18 = vector.load %arg8[%c0_12, %c0_13, %c0_14] : memref<8x8x72xbf16, #tpu.memory_space<vmem>>, vector<8x8x8xbf16>
    tpu.vector_store %arg8[%c0_12, %c0_13, %c0_14], %17 {strides = array<i32>} : memref<8x8x72xbf16, #tpu.memory_space<vmem>>, vector<8x8x8xbf16>,
    %c0_15 = arith.constant 0 : index
    %c1_16 = arith.constant 1 : index
    %c0_17 = arith.constant 0 : index
    %19 = vector.load %arg7[%c0_15, %c1_16, %c0_17] : memref<10x10x8xbf16, #tpu.memory_space<vmem>>, vector<8x8x8xbf16>
    %c0_18 = arith.constant 0 : index
    %c0_19 = arith.constant 0 : index
    %c8 = arith.constant 8 : index
    %20 = vector.load %arg8[%c0_18, %c0_19, %c8] : memref<8x8x72xbf16, #tpu.memory_space<vmem>>, vector<8x8x8xbf16>
    tpu.vector_store %arg8[%c0_18, %c0_19, %c8], %19 {strides = array<i32>} : memref<8x8x72xbf16, #tpu.memory_space<vmem>>, vector<8x8x8xbf16>,
    %c0_20 = arith.constant 0 : index
    %c2 = arith.constant 2 : index
    %c0_21 = arith.constant 0 : index
    %21 = vector.load %arg7[%c0_20, %c2, %c0_21] : memref<10x10x8xbf16, #tpu.memory_space<vmem>>, vector<8x8x8xbf16>
    %c0_22 = arith.constant 0 : index
    %c0_23 = arith.constant 0 : index
    %c16 = arith.constant 16 : index
    %22 = vector.load %arg8[%c0_22, %c0_23, %c16] : memref<8x8x72xbf16, #tpu.memory_space<vmem>>, vector<8x8x8xbf16>
    tpu.vector_store %arg8[%c0_22, %c0_23, %c16], %21 {strides = array<i32>} : memref<8x8x72xbf16, #tpu.memory_space<vmem>>, vector<8x8x8xbf16>,
    %c1_24 = arith.constant 1 : index
    %c0_25 = arith.constant 0 : index
    %c0_26 = arith.constant 0 : index
    %23 = vector.load %arg7[%c1_24, %c0_25, %c0_26] : memref<10x10x8xbf16, #tpu.memory_space<vmem>>, vector<8x8x8xbf16>
    %c0_27 = arith.constant 0 : index
    %c0_28 = arith.constant 0 : index
    %c24 = arith.constant 24 : index
    %24 = vector.load %arg8[%c0_27, %c0_28, %c24] : memref<8x8x72xbf16, #tpu.memory_space<vmem>>, vector<8x8x8xbf16>
    tpu.vector_store %arg8[%c0_27, %c0_28, %c24], %23 {strides = array<i32>} : memref<8x8x72xbf16, #tpu.memory_space<vmem>>, vector<8x8x8xbf16>,
    %c1_29 = arith.constant 1 : index
    %c1_30 = arith.constant 1 : index
    %c0_31 = arith.constant 0 : index
    %25 = vector.load %arg7[%c1_29, %c1_30, %c0_31] : memref<10x10x8xbf16, #tpu.memory_space<vmem>>, vector<8x8x8xbf16>
    %c0_32 = arith.constant 0 : index
    %c0_33 = arith.constant 0 : index
    %c32 = arith.constant 32 : index
    %26 = vector.load %arg8[%c0_32, %c0_33, %c32] : memref<8x8x72xbf16, #tpu.memory_space<vmem>>, vector<8x8x8xbf16>
    tpu.vector_store %arg8[%c0_32, %c0_33, %c32], %25 {strides = array<i32>} : memref<8x8x72xbf16, #tpu.memory_space<vmem>>, vector<8x8x8xbf16>,
    %c1_34 = arith.constant 1 : index
    %c2_35 = arith.constant 2 : index
    %c0_36 = arith.constant 0 : index
    %27 = vector.load %arg7[%c1_34, %c2_35, %c0_36] : memref<10x10x8xbf16, #tpu.memory_space<vmem>>, vector<8x8x8xbf16>
    %c0_37 = arith.constant 0 : index
    %c0_38 = arith.constant 0 : index
    %c40 = arith.constant 40 : index
    %28 = vector.load %arg8[%c0_37, %c0_38, %c40] : memref<8x8x72xbf16, #tpu.memory_space<vmem>>, vector<8x8x8xbf16>
    tpu.vector_store %arg8[%c0_37, %c0_38, %c40], %27 {strides = array<i32>} : memref<8x8x72xbf16, #tpu.memory_space<vmem>>, vector<8x8x8xbf16>,
    %c2_39 = arith.constant 2 : index
    %c0_40 = arith.constant 0 : index
    %c0_41 = arith.constant 0 : index
    %29 = vector.load %arg7[%c2_39, %c0_40, %c0_41] : memref<10x10x8xbf16, #tpu.memory_space<vmem>>, vector<8x8x8xbf16>
    %c0_42 = arith.constant 0 : index
    %c0_43 = arith.constant 0 : index
    %c48 = arith.constant 48 : index
    %30 = vector.load %arg8[%c0_42, %c0_43, %c48] : memref<8x8x72xbf16, #tpu.memory_space<vmem>>, vector<8x8x8xbf16>
    tpu.vector_store %arg8[%c0_42, %c0_43, %c48], %29 {strides = array<i32>} : memref<8x8x72xbf16, #tpu.memory_space<vmem>>, vector<8x8x8xbf16>,
    %c2_44 = arith.constant 2 : index
    %c1_45 = arith.constant 1 : index
    %c0_46 = arith.constant 0 : index
    %31 = vector.load %arg7[%c2_44, %c1_45, %c0_46] : memref<10x10x8xbf16, #tpu.memory_space<vmem>>, vector<8x8x8xbf16>
    %c0_47 = arith.constant 0 : index
    %c0_48 = arith.constant 0 : index
    %c56 = arith.constant 56 : index
    %32 = vector.load %arg8[%c0_47, %c0_48, %c56] : memref<8x8x72xbf16, #tpu.memory_space<vmem>>, vector<8x8x8xbf16>
    tpu.vector_store %arg8[%c0_47, %c0_48, %c56], %31 {strides = array<i32>} : memref<8x8x72xbf16, #tpu.memory_space<vmem>>, vector<8x8x8xbf16>,
    %c2_49 = arith.constant 2 : index
    %c2_50 = arith.constant 2 : index
    %c0_51 = arith.constant 0 : index
    %33 = vector.load %arg7[%c2_49, %c2_50, %c0_51] : memref<10x10x8xbf16, #tpu.memory_space<vmem>>, vector<8x8x8xbf16>
    %c0_52 = arith.constant 0 : index
    %c0_53 = arith.constant 0 : index
    %c64 = arith.constant 64 : index
    %34 = vector.load %arg8[%c0_52, %c0_53, %c64] : memref<8x8x72xbf16, #tpu.memory_space<vmem>>, vector<8x8x8xbf16>
    tpu.vector_store %arg8[%c0_52, %c0_53, %c64], %33 {strides = array<i32>} : memref<8x8x72xbf16, #tpu.memory_space<vmem>>, vector<8x8x8xbf16>,
    %c0_54 = arith.constant 0 : index
    %c0_55 = arith.constant 0 : index
    %35 = vector.load %arg4[%c0_54, %c0_55] : memref<8x72xbf16, #tpu.memory_space<vmem>>, vector<8x72xbf16>
    %c0_56 = arith.constant 0 : index
    %c0_57 = arith.constant 0 : index
    %c0_58 = arith.constant 0 : index
    %36 = vector.load %arg8[%c0_56, %c0_57, %c0_58] : memref<8x8x72xbf16, #tpu.memory_space<vmem>>, vector<8x8x72xbf16>
    %37 = vector.shape_cast %36 : vector<8x8x72xbf16> to vector<64x72xbf16>
    %cst_59 = arith.constant dense<0.000000e+00> : vector<8x64xf32>
    %38 = tpu.matmul %35, %37, %cst_59 {dimension_numbers = #tpu.dot_dimension_numbers<[1], [1], [0], [0], [0, 0, 1, 0], [], []>} : vector<8x72xbf16>, vector<64x72xbf16>, vector<8x64xf32> -> vector<8x64xf32>
    %c0_60 = arith.constant 0 : index
    %c0_61 = arith.constant 0 : index
    %c0_62 = arith.constant 0 : index
    %39 = vector.load %arg5[%c0_60, %c0_61, %c0_62] : memref<1x8x64xf32, #tpu.memory_space<vmem>>, vector<1x8x64xf32>
    %40 = vector.shape_cast %39 : vector<1x8x64xf32> to vector<8x64xf32>
    %41 = vector.shape_cast %38 : vector<8x64xf32> to vector<1x8x64xf32>
    tpu.vector_store %arg5[%c0_60, %c0_61, %c0_62], %41 {strides = array<i32>} : memref<1x8x64xf32, #tpu.memory_space<vmem>>, vector<1x8x64xf32>,
    %cst_63 = arith.constant dense<0.000000e+00> : vector<8xf32>
    %42 = vector.multi_reduction <add>, %38, %cst_63 [1] : vector<8x64xf32> to vector<8xf32>
    %43 = vector.shape_cast %42 : vector<8xf32> to vector<8x1xf32>
    %c0_64 = arith.constant 0 : index
    %c0_65 = arith.constant 0 : index
    %c0_66 = arith.constant 0 : index
    %44 = vector.load %arg6[%c0_64, %c0_65, %c0_66] : memref<1x8x2xf32, #tpu.memory_space<vmem>>, vector<1x8x1xf32>
    %45 = vector.shape_cast %44 : vector<1x8x1xf32> to vector<8x1xf32>
    %46 = vector.shape_cast %43 : vector<8x1xf32> to vector<1x8x1xf32>
    tpu.vector_store %arg6[%c0_64, %c0_65, %c0_66], %46 {strides = array<i32>} : memref<1x8x2xf32, #tpu.memory_space<vmem>>, vector<1x8x1xf32>,
    %47 = arith.mulf %38, %38 : vector<8x64xf32>
    %cst_67 = arith.constant dense<0.000000e+00> : vector<8xf32>
    %48 = vector.multi_reduction <add>, %47, %cst_67 [1] : vector<8x64xf32> to vector<8xf32>
    %49 = vector.shape_cast %48 : vector<8xf32> to vector<8x1xf32>
    %c0_68 = arith.constant 0 : index
    %c0_69 = arith.constant 0 : index
    %c1_70 = arith.constant 1 : index
    %50 = vector.load %arg6[%c0_68, %c0_69, %c1_70] : memref<1x8x2xf32, #tpu.memory_space<vmem>>, vector<1x8x1xf32>
    %51 = vector.shape_cast %50 : vector<1x8x1xf32> to vector<8x1xf32>
    %52 = vector.shape_cast %49 : vector<8x1xf32> to vector<1x8x1xf32>
    tpu.vector_store %arg6[%c0_68, %c0_69, %c1_70], %52 {strides = array<i32>} : memref<1x8x2xf32, #tpu.memory_space<vmem>>, vector<1x8x1xf32>,
    return
  }
  func.func @transform_0(%arg0: i32) -> (i32, i32, i32) {
    %c0_i32 = arith.constant 0 : i32
    %c0_i32_0 = arith.constant 0 : i32
    %c0_i32_1 = arith.constant 0 : i32
    return %arg0, %c0_i32, %c0_i32_0 : i32, i32, i32
  }
  func.func @transform_1(%arg0: i32) -> (i32, i32) {
    %c0_i32 = arith.constant 0 : i32
    %c0_i32_0 = arith.constant 0 : i32
    %c0_i32_1 = arith.constant 0 : i32
    return %c0_i32, %c0_i32_0 : i32, i32
  }
  func.func @transform_2(%arg0: i32) -> (i32, i32) {
    %c0_i32 = arith.constant 0 : i32
    %c0_i32_0 = arith.constant 0 : i32
    %c0_i32_1 = arith.constant 0 : i32
    return %c0_i32, %c0_i32_0 : i32, i32
  }
  func.func @transform_3(%arg0: i32) -> (i32, i32) {
    %c0_i32 = arith.constant 0 : i32
    %c0_i32_0 = arith.constant 0 : i32
    %c0_i32_1 = arith.constant 0 : i32
    return %c0_i32, %c0_i32_0 : i32, i32
  }
  func.func @transform_4(%arg0: i32) -> (i32, i32, i32) {
    %c0_i32 = arith.constant 0 : i32
    %c0_i32_0 = arith.constant 0 : i32
    %c0_i32_1 = arith.constant 0 : i32
    return %arg0, %c0_i32, %c0_i32_0 : i32, i32, i32
  }
  func.func @transform_5(%arg0: i32) -> (i32, i32, i32) {
    %c0_i32 = arith.constant 0 : i32
    %c0_i32_0 = arith.constant 0 : i32
    %c0_i32_1 = arith.constant 0 : i32
    return %arg0, %c0_i32, %c0_i32_0 : i32, i32, i32
  }
}

module attributes {stable_mosaic.version = 11 : i64} {
  func.func @bn_relu_kernel(%arg0: i32, %arg1: memref<1x8x64xf32, #tpu.memory_space<vmem>>, %arg2: memref<8x1xf32, #tpu.memory_space<vmem>>, %arg3: memref<8x1xf32, #tpu.memory_space<vmem>>, %arg4: memref<1x8x64xf32, #tpu.memory_space<vmem>>) attributes {dimension_semantics = [#tpu.dimension_semantics<parallel>], iteration_bounds = array<i64: 2>, scalar_prefetch = 0 : i64, scratch_operands = 0 : i64, tpu.core_type = #tpu.core_type<tc>, window_params = [{transform_indices = @transform_0, window_bounds = array<i64: 1, 8, 64>}, {pipeline_mode = #tpu.pipeline_mode<synchronous>, transform_indices = @transform_1, window_bounds = array<i64: 8, 1>}, {pipeline_mode = #tpu.pipeline_mode<synchronous>, transform_indices = @transform_2, window_bounds = array<i64: 8, 1>}, {transform_indices = @transform_3, window_bounds = array<i64: 1, 8, 64>}]} {
    %c0 = arith.constant 0 : index
    %c0_0 = arith.constant 0 : index
    %c0_1 = arith.constant 0 : index
    %0 = vector.load %arg1[%c0, %c0_0, %c0_1] : memref<1x8x64xf32, #tpu.memory_space<vmem>>, vector<1x8x64xf32>
    %1 = vector.shape_cast %0 : vector<1x8x64xf32> to vector<8x64xf32>
    %c0_2 = arith.constant 0 : index
    %c0_3 = arith.constant 0 : index
    %2 = vector.load %arg2[%c0_2, %c0_3] : memref<8x1xf32, #tpu.memory_space<vmem>>, vector<8x1xf32>
    %3 = vector.broadcast %2 : vector<8x1xf32> to vector<8x64xf32>
    %4 = arith.mulf %1, %3 : vector<8x64xf32>
    %c0_4 = arith.constant 0 : index
    %c0_5 = arith.constant 0 : index
    %5 = vector.load %arg3[%c0_4, %c0_5] : memref<8x1xf32, #tpu.memory_space<vmem>>, vector<8x1xf32>
    %6 = vector.broadcast %5 : vector<8x1xf32> to vector<8x64xf32>
    %7 = arith.addf %4, %6 : vector<8x64xf32>
    %cst = arith.constant 0.000000e+00 : f32
    %8 = vector.broadcast %cst : f32 to vector<8x64xf32>
    %9 = arith.maximumf %7, %8 : vector<8x64xf32>
    %c0_6 = arith.constant 0 : index
    %c0_7 = arith.constant 0 : index
    %c0_8 = arith.constant 0 : index
    %10 = vector.load %arg4[%c0_6, %c0_7, %c0_8] : memref<1x8x64xf32, #tpu.memory_space<vmem>>, vector<1x8x64xf32>
    %11 = vector.shape_cast %10 : vector<1x8x64xf32> to vector<8x64xf32>
    %12 = vector.shape_cast %9 : vector<8x64xf32> to vector<1x8x64xf32>
    tpu.vector_store %arg4[%c0_6, %c0_7, %c0_8], %12 {strides = array<i32>} : memref<1x8x64xf32, #tpu.memory_space<vmem>>, vector<1x8x64xf32>,
    return
  }
  func.func @transform_0(%arg0: i32) -> (i32, i32, i32) {
    %c0_i32 = arith.constant 0 : i32
    %c0_i32_0 = arith.constant 0 : i32
    %c0_i32_1 = arith.constant 0 : i32
    return %arg0, %c0_i32, %c0_i32_0 : i32, i32, i32
  }
  func.func @transform_1(%arg0: i32) -> (i32, i32) {
    %c0_i32 = arith.constant 0 : i32
    %c0_i32_0 = arith.constant 0 : i32
    %c0_i32_1 = arith.constant 0 : i32
    return %c0_i32, %c0_i32_0 : i32, i32
  }
  func.func @transform_2(%arg0: i32) -> (i32, i32) {
    %c0_i32 = arith.constant 0 : i32
    %c0_i32_0 = arith.constant 0 : i32
    %c0_i32_1 = arith.constant 0 : i32
    return %c0_i32, %c0_i32_0 : i32, i32
  }
  func.func @transform_3(%arg0: i32) -> (i32, i32, i32) {
    %c0_i32 = arith.constant 0 : i32
    %c0_i32_0 = arith.constant 0 : i32
    %c0_i32_1 = arith.constant 0 : i32
    return %arg0, %c0_i32, %c0_i32_0 : i32, i32, i32
  }
}

</mosaic_0001>

<bundles_post_ra>
// kernel: unet_down.5
= control target key start
LH: loop header
LB: loop body
LE: loop exit
PB: predicated region body
PF: predicated region fallthrough
CT: control target
= control target key end

     0   :  { %s285_s12 = smov 0   ;;  %s302_s0 = inlined_call_operand.vmem [shape: f32[2,8,64], index: 0, kind: input, shape index: {}]   ;;  %s303_s1 = inlined_call_operand.vmem [shape: f32[8,1], index: 1, kind: input, shape index: {}]   ;;  %s304_s2 = inlined_call_operand.vmem [shape: f32[8,1], index: 2, kind: input, shape index: {}]   ;;  %s305_s3 = inlined_call_operand.vmem [shape: f32[2,8,64], index: 3, kind: output, shape index: {}]  }
   0x1 LB: > { %s237_s13 = sadd.s32 4294967295, %s262_s12   ;;  %p241_p0 = scmp.ge.s32.totalorder %s262_s12, 1  ;;  %s262_s12 = sphi %s285_s12, %s13_s12  }
   0x2   : > { %p136_p1 = scmp.lt.s32.totalorder %s262_s12, 3 }
   0x4   : > { %p137_p2 = pnand %p241_p0, %p136_p1 }
   0x5   : > { %p158_p3 = scmp.lt.s32.totalorder (!%p137_p2), %s237_s13, 1 }
   0x6   : > { %140 = sbr.rel (%p137_p2) target bundleno = 141 (0x8d), region = 32 }
   0xb   : > { %v167_v0 = vld [vmem:[%s303_s1] sm:$0xff]  ;;  %v264_v1 = vmov 0   ;;  %s307_s13 = smov (!%p158_p3, %s237_s13), 1  ;;  %vm182_vm0 = vcmask 523264  }
   0xc   : > { %255 = vset.pattern.permute.xlu0 %v264_v1  ;;  %v174_v2 = vld [vmem:[%s304_s2] sm:$0xff]  ;;  %s242_s18 = sshll.u32 %s307_s13, 3 }
   0xd   : > { %170 = vperm.xlu0 %255, %v167_v0   ;;  %s161_s21 = scalar_lea.vmem %s302_s0, %s242_s18  ;;  %s165_s24 = scalar_lea.vmem %s305_s3, %s242_s18 }
   0xe   : > { %v166_v4 = vld [vmem:[%s161_s21] sm:$0xff] }
  0x15   : > { %177 = vperm.xlu0 %255, %v174_v2  }
  0x7f   : > { %v171_v3 = vpop.permute.xlu0 %170 }
  0x80   : > { %v173_v5 = vmul.f32 %v171_v3, %v166_v4 }
  0x87   : > { %v178_v6 = vpop.permute.xlu0 %177 }
  0x88   : > { %v180_v7 = vadd.f32 %v178_v6, %v173_v5 }
  0x8a   : > { %v181_v8 = vmax.f32 %v180_v7, 0.0 }
  0x8c   : > { %183 = vst.msk [vmem:[%s165_s24] sm:$0xff] %vm182_vm0, %v181_v8 }
  0x8d PF: > { %s13_s12 = sadd.s32 1, %s262_s12  }
  0x8e   : > { %p10_p4 = scmp.ge.s32.totalorder %s13_s12, 4  }
  0x90   :  { %12 = sbr.rel (!%p10_p4) target bundleno = 1 (0x1), region = 62 }

// kernel: unet_down.3
= control target key start
LH: loop header
LB: loop body
LE: loop exit
PB: predicated region body
PF: predicated region fallthrough
CT: control target
= control target key end

     0   :  { %s1676_s12 = smov 0   ;;  %s2045_s0 = inlined_call_operand.vmem [shape: bf16[16,2,8,8], index: 0, kind: input, shape index: {}]   ;;  %s2046_s1 = inlined_call_operand.vmem [shape: bf16[8,36], index: 1, kind: input, shape index: {}]   ;;  %s2047_s2 = inlined_call_operand.vmem [shape: f32[2,8,64], index: 2, kind: output, shape index: {0}]   ;;  %s2048_s3 = inlined_call_operand.vmem [shape: f32[2,8,2], index: 3, kind: output, shape index: {1}]  }
   0x1 LB: > { %s1682_s13 = sadd.s32 4294967295, %s1644_s12   ;;  %p1506_p0 = scmp.ge.s32.totalorder %s1644_s12, 1  ;;  %s1644_s12 = sphi %s1676_s12, %s14_s12  }
   0x2   : > { %p142_p1 = scmp.lt.s32.totalorder %s1644_s12, 3 }
   0x4   : > { %p143_p2 = pnand %p1506_p0, %p142_p1 }
   0x5   : > { %s1507_s14 = sshll.u32 (!%p143_p2), %s1682_s13, 3  ;;  %p177_p4 = scmp.lt.s32.totalorder (!%p143_p2), %s1682_s13, 1 }
   0x6   : > { %146 = sbr.rel (%p143_p2) target bundleno = 735 (0x2df), region = 28  ;;  %p171_p3 = scmp.lt.s32.totalorder (!%p143_p2), %s1507_s14, 15 }
   0x7   : > { %s1646_s21 = smov (!%p143_p2), 124   ;;  %p1512_p5 = scmp.ne.s32.totalorder (!%p143_p2), %s1682_s13, 0 }
   0xb   : > { %s2058_s14 = smov (!%p171_p3, %s1507_s14), 15 }
   0xc   : > { %s1556_s15 = sshll.u32 %s2058_s14, 3 }
   0xd   : > { %s175_s18 = scalar_lea.vmem %s2045_s0, %s1556_s15 }
   0xe   : > { %v1596_v0 = vld [vmem:[%s175_s18 + $0x20] sm:$0xff]   ;;  %v1597_v1 = vld [vmem:[%s175_s18 + $0x28] sm:$0xff]   ;;  %v1598_v8 = vld [vmem:[%s175_s18 + $0x30] sm:$0xff]   ;;  %s178_s19 = scalar_select %p177_p4, %s1682_s13, 1 }
   0xf   : > { %v1562_v2 = vld [vmem:[%s175_s18] sm:$0xff]   ;;  %v1579_v3 = vunpack.c.l.bf16 %v1596_v0  ;;  %v1580_v4 = vunpack.c.h.bf16 %v1596_v0  ;;  %v1583_v5 = vunpack.c.l.bf16 %v1597_v1  ;;  %v1584_v6 = vunpack.c.h.bf16 %v1597_v1  ;;  %v1593_v7 = vld [vmem:[%s175_s18 + $0x8] sm:$0xff]   ;;  %v1599_v9 = vld [vmem:[%s175_s18 + $0x38] sm:$0xff]  }
  0x10   : > { %v1563_v10 = vunpack.c.l.bf16 %v1562_v2  ;;  %v1564_v11 = vunpack.c.h.bf16 %v1562_v2  ;;  %v1567_v12 = vunpack.c.l.bf16 %v1593_v7  ;;  %v1568_v13 = vunpack.c.h.bf16 %v1593_v7  ;;  %v1594_v14 = vld [vmem:[%s175_s18 + $0x10] sm:$0xff]   ;;  %v1595_v23 = vld [vmem:[%s175_s18 + $0x18] sm:$0xff]   ;;  %s1510_s20 = sshll.u32 %s178_s19, 3 }
  0x11   : > { %v222_v15 = vmax.f32 %v1579_v3, %v1580_v4  ;;  %v223_v16 = vmax.f32 %v1583_v5, %v1584_v6  ;;  %v1587_v17 = vunpack.c.l.bf16 %v1598_v8  ;;  %v1588_v18 = vunpack.c.h.bf16 %v1598_v8  ;;  %s1695_s24 = scalar_lea.vmem %s2047_s2, %s1510_s20  ;;  %s1700_s27 = scalar_lea.vmem %s2048_s3, %s1510_s20 }
  0x12   : > { %v218_v19 = vmax.f32 %v1563_v10, %v1564_v11  ;;  %v219_v20 = vmax.f32 %v1567_v12, %v1568_v13  ;;  %v1591_v21 = vunpack.c.l.bf16 %v1599_v9  ;;  %v1592_v22 = vunpack.c.h.bf16 %v1599_v9 }
  0x13   : > { %v224_v24 = vmax.f32 %v1587_v17, %v1588_v18  ;;  %v1571_v25 = vunpack.c.l.bf16 %v1594_v14  ;;  %v1572_v27 = vunpack.c.h.bf16 %v1594_v14  ;;  %v1575_v28 = vunpack.c.l.bf16 %v1595_v23 }
  0x14   : > { %v225_v26 = vmax.f32 %v1591_v21, %v1592_v22  ;;  %v1576_v29 = vunpack.c.h.bf16 %v1595_v23  ;;  %v1628_v30 = vpack.i.bf16 %v223_v16, %v222_v15  ;;  %v1618_v32 = vpack.i.bf16 %v219_v20, %v218_v19 }
  0x15   : > { %v220_v31 = vmax.f32 %v1571_v25, %v1572_v27 }
  0x16   : > { %v221_v33 = vmax.f32 %v1575_v28, %v1576_v29  ;;  %1629 = vrot.lane.b32.xlu1 %v1628_v30, %s1646_s21  ;;  %1619 = vrot.lane.b32.xlu0 %v1618_v32, %s1646_s21  ;;  %v1633_v34 = vpack.i.bf16 %v225_v26, %v224_v24 }
  0x18   : > { %v1623_v35 = vpack.i.bf16 %v221_v33, %v220_v31 }
  0x1e   : > { %1634 = vrot.lane.b32.xlu1 %v1633_v34, %s1646_s21  ;;  %1624 = vrot.lane.b32.xlu0 %v1623_v35, %s1646_s21 }
  0x88   : > { %v1630_v36 = vpop.permute.xlu1 %1629  ;;  %v1620_v39 = vpop.permute.xlu0 %1619 }
  0x89   : > { %v1632_v37 = vunpack.i.h.bf16 %v1630_v36  ;;  %v1631_v38 = vunpack.i.l.bf16 %v1630_v36  ;;  %v1622_v40 = vunpack.i.h.bf16 %v1620_v39  ;;  %v1621_v41 = vunpack.i.l.bf16 %v1620_v39 }
  0x8b   : > { %v279_v42 = vmax.f32 %v223_v16, %v1632_v37  ;;  %v278_v43 = vmax.f32 %v222_v15, %v1631_v38  ;;  %v275_v44 = vmax.f32 %v219_v20, %v1622_v40  ;;  %v274_v45 = vmax.f32 %v218_v19, %v1621_v41 }
  0x8d   : > { %v1702_v46 = vpack.c.bf16 %v279_v42, %v279_v42  ;;  %v1704_v47 = vpack.c.bf16 %v278_v43, %v278_v43  ;;  %v1706_v48 = vpack.c.bf16 %v275_v44, %v275_v44  ;;  %v1708_v49 = vpack.c.bf16 %v274_v45, %v274_v45 }
  0x90   : > { %v1635_v50 = vpop.permute.xlu1 %1634  ;;  %v1625_v53 = vpop.permute.xlu0 %1624 }
  0x91   : > { %v1637_v51 = vunpack.i.h.bf16 %v1635_v50  ;;  %v1636_v52 = vunpack.i.l.bf16 %v1635_v50  ;;  %v1627_v54 = vunpack.i.h.bf16 %v1625_v53  ;;  %v1626_v55 = vunpack.i.l.bf16 %v1625_v53  ;;  %293 = sbr.rel (%p1512_p5) target bundleno = 171 (0xab), region = 32 }
  0x93   : > { %v281_v56 = vmax.f32 %v225_v26, %v1637_v51  ;;  %v280_v57 = vmax.f32 %v224_v24, %v1636_v52  ;;  %v277_v58 = vmax.f32 %v221_v33, %v1627_v54  ;;  %v276_v59 = vmax.f32 %v220_v31, %v1626_v55 }
  0x95   : > { %v289_v60 = vpack.c.bf16 %v281_v56, %v281_v56  ;;  %v288_v61 = vpack.c.bf16 %v280_v57, %v280_v57  ;;  %v1710_v62 = vpack.c.bf16 %v277_v58, %v277_v58  ;;  %v1712_v63 = vpack.c.bf16 %v276_v59, %v276_v59 }
  0x96   : > { %vm294_vm0 = vcmask 27648   ;;  %v1647_v0 = vmov 0   ;;  %vm296_vm1 = vcmask 24576  }
  0x97   : > { %295 = vst.msk [vmem:[#allocation2] sm:$0xf] %vm294_vm0, %v1647_v0 }
  0x98   : > { %298 = vst.msk [vmem:[#allocation2 + $0x8] sm:$0xf] %vm294_vm0, %v1647_v0 }
  0x99   : > { %300 = vst.msk [vmem:[#allocation2 + $0x10] sm:$0xf] %vm294_vm0, %v1647_v0 }
  0x9a   : > { %302 = vst.msk [vmem:[#allocation2 + $0x18] sm:$0xf] %vm294_vm0, %v1647_v0 }
  0x9b   : > { %304 = vst.msk [vmem:[#allocation2 + $0x20] sm:$0xf] %vm294_vm0, %v1647_v0 }
  0x9c   : > { %306 = vst.msk [vmem:[#allocation2 + $0x28] sm:$0xf] %vm294_vm0, %v1647_v0 }
  0x9d   : > { %308 = vst.msk [vmem:[#allocation2 + $0x30] sm:$0xf] %vm294_vm0, %v1647_v0 }
  0x9e   : > { %310 = vst.msk [vmem:[#allocation2 + $0x38] sm:$0xf] %vm294_vm0, %v1647_v0 }
  0x9f   : > { %312 = vst.msk [vmem:[#allocation2 + $0x40] sm:$0xf] %vm294_vm0, %v1647_v0 }
  0xa0   : > { %314 = vst.msk [vmem:[#allocation2 + $0x48] sm:$0xf] %vm294_vm0, %v1647_v0 }
  0xa1   : > { %297 = vst.msk [vmem:[#allocation2 + $0x4] sm:$0x1] %vm296_vm1, %v1647_v0 }
  0xa2   : > { %299 = vst.msk [vmem:[#allocation2 + $0xc] sm:$0x1] %vm296_vm1, %v1647_v0 }
  0xa3   : > { %301 = vst.msk [vmem:[#allocation2 + $0x14] sm:$0x1] %vm296_vm1, %v1647_v0 }
  0xa4   : > { %303 = vst.msk [vmem:[#allocation2 + $0x1c] sm:$0x1] %vm296_vm1, %v1647_v0 }
  0xa5   : > { %305 = vst.msk [vmem:[#allocation2 + $0x24] sm:$0x1] %vm296_vm1, %v1647_v0 }
  0xa6   : > { %307 = vst.msk [vmem:[#allocation2 + $0x2c] sm:$0x1] %vm296_vm1, %v1647_v0 }
  0xa7   : > { %309 = vst.msk [vmem:[#allocation2 + $0x34] sm:$0x1] %vm296_vm1, %v1647_v0 }
  0xa8   : > { %311 = vst.msk [vmem:[#allocation2 + $0x3c] sm:$0x1] %vm296_vm1, %v1647_v0 }
  0xa9   : > { %313 = vst.msk [vmem:[#allocation2 + $0x44] sm:$0x1] %vm296_vm1, %v1647_v0 }
  0xaa   : > { %315 = vst.msk [vmem:[#allocation2 + $0x4c] sm:$0x1] %vm296_vm1, %v1647_v0 }
  0xab PF: > { %v373_v1 = vshrl.u32 %v289_v60, 16  ;;  %v376_v2 = vshll.u32 %v289_v60, 16  ;;  %vm397_vm2 = vcmask 27648   ;;  %vm398_vm3 = vsmask.f32 7938  ;;  %s1648_s28 = smov 24  }
  0xac   : > { %vm403_vm4 = vcmask 24576   ;;  %vm404_vm5 = vsmask.f32 256  ;;  %vm1716_vm6 = vmand %vm397_vm2, %vm398_vm3  ;;  %v357_v5 = vshrl.u32 %v1702_v46, 16  ;;  %v445_v6 = vld [vmem:[#allocation2 + $0x40] sm:$0xf] }
  0xad   : > { %v375_v3 = vrot.slane %v373_v1, 7  ;;  %vm1721_vm7 = vmand %vm403_vm4, %vm404_vm5  ;;  %v360_v9 = vshll.u32 %v1702_v46, 16  ;;  %v433_v13 = vld [vmem:[#allocation2 + $0x30] sm:$0xf]  ;;  %v365_v15 = vshrl.u32 %v288_v61, 16  ;;  %v368_v16 = vshll.u32 %v288_v61, 16 }
  0xae   : > { %v359_v12 = vrot.slane %v357_v5, 7  ;;  %v436_v14 = vld [vmem:[#allocation2 + $0x34] sm:$0x1]  ;;  %v439_v24 = vld [vmem:[#allocation2 + $0x38] sm:$0xf]  ;;  %v341_v30 = vshrl.u32 %v1710_v62, 16 }
  0xaf   : > { %v378_v10 = vor.u32 %v376_v2, %v375_v3  ;;  %v379_v11 = vrot.slane %v375_v3, 4  ;;  %v367_v21 = vrot.slane %v365_v15, 7  ;;  %v442_v25 = vld [vmem:[#allocation2 + $0x3c] sm:$0x1]  ;;  %vm664_vm8 = vcmask 1042432   ;;  %s1649_s29 = smov 20  }
  0xb0   : > { %v448_v8 = vld [vmem:[#allocation2 + $0x44] sm:$0x1]  ;;  %v362_v19 = vor.u32 %v360_v9, %v359_v12  ;;  %v363_v20 = vrot.slane %v359_v12, 4  ;;  %vm665_vm9 = vcmask 1046532   ;;  %vm484_vm10 = vsmask.f32 3328 }
  0xb1   : > { %v446_v17 = vsel %vm1716_vm6, %v378_v10, %v445_v6  ;;  %v449_v18 = vsel %vm1721_vm7, %v379_v11, %v448_v8  ;;  %v370_v26 = vor.u32 %v368_v16, %v367_v21  ;;  %v371_v27 = vrot.slane %v367_v21, 4  ;;  %vm1740_vm12 = vmor %vm664_vm8, %vm665_vm9  ;;  %v421_v58 = vld [vmem:[#allocation2 + $0x20] sm:$0xf]  ;;  %v424_v2 = vld [vmem:[#allocation2 + $0x24] sm:$0x1]  ;;  %s1650_s30 = smov 8  }
  0xb2   : > { %447 = vst [vmem:[#allocation2 + $0x40] sm:$0xf] %v446_v17  ;;  %v434_v22 = vsel %vm1716_vm6, %v362_v19, %v433_v13  ;;  %v437_v23 = vsel %vm1721_vm7, %v363_v20, %v436_v14  ;;  %vm485_vm11 = vsmask.f32 7440  ;;  %v343_v37 = vrot.slane %v341_v30, 7  ;;  %s1651_s4 = smov 12  }
  0xb3   : > { %450 = vst [vmem:[#allocation2 + $0x44] sm:$0x1] %v449_v18  ;;  %v440_v28 = vsel %vm1716_vm6, %v370_v26, %v439_v24  ;;  %v443_v29 = vsel %vm1721_vm7, %v371_v27, %v442_v25  ;;  %v344_v38 = vshll.u32 %v1710_v62, 16  ;;  %v1103_v62 = vld [vmem:[#allocation2 + $0x48] sm:$0xf]  ;;  %vm1753_vm13 = vmor %vm484_vm10, %vm485_vm11  ;;  %s1652_s5 = smov 4  }
  0xb4   : > { %435 = vst [vmem:[#allocation2 + $0x30] sm:$0xf] %v434_v22  ;;  %v347_v1 = vrot.slane %v343_v37, 4  ;;  %v1204_v26 = vshrl.u32 %v1103_v62, 16  ;;  %v1207_v30 = vshll.u32 %v1103_v62, 16  ;;  %s1653_s6 = smov 16  }
  0xb5   : > { %438 = vst [vmem:[#allocation2 + $0x34] sm:$0x1] %v437_v23  ;;  %v346_v0 = vor.u32 %v344_v38, %v343_v37  ;;  %s1654_s7 = smov 28   ;;  %s1655_s8 = smov 32   ;;  %vm623_vm14 = vcmask 60448   ;;  %vm723_vm15 = vcmask 93248  }
  0xb6   : > { %441 = vst [vmem:[#allocation2 + $0x38] sm:$0xf] %v440_v28  ;;  %v425_v27 = vsel %vm1721_vm7, %v347_v1, %v424_v2  ;;  %v427_v1 = vld [vmem:[#allocation2 + $0x28] sm:$0xf]  ;;  %vm772_vm0 = vcmask 126048   ;;  %vm933_vm1 = vcmask 158848  }
  0xb7   : > { %444 = vst [vmem:[#allocation2 + $0x3c] sm:$0x1] %v443_v29  ;;  %v422_v23 = vsel %vm1716_vm6, %v346_v0, %v421_v58  ;;  %vm1030_vm3 = vcmask 191648   ;;  %vm1080_vm4 = vcmask 224448   ;;  %vm1241_vm5 = vcmask 257248  }
  0xb8   : > { %423 = vst [vmem:[#allocation2 + $0x20] sm:$0xf] %v422_v23  ;;  %vm1410_vm8 = vcmask 7168   ;;  %vm1416_vm9 = vcmask 15368  }
  0xb9   : > { %v1046_v31 = vld [vmem:[#allocation2 + $0x40] sm:$0xf]  ;;  %426 = vst [vmem:[#allocation2 + $0x24] sm:$0x1] %v425_v27 }
  0xba   : > { %v956_v32 = vld [vmem:[#allocation2 + $0x40] sm:$0xe]  ;;  %1068 = vrot.lane.b32.xlu1 %v1046_v31, %s1648_s28  ;;  %v957_v35 = vld [vmem:[#allocation2 + $0x44] sm:$0x1] }
  0xbb   : > { %v795_v33 = vld [vmem:[#allocation2 + $0x40] sm:$0xf]  ;;  %v1528_v36 = vrot.slane %v956_v32, 9  ;;  %v1004_v39 = vrot.slane %v957_v35, 5  ;;  %v644_v40 = vld [vmem:[#allocation2 + $0x30] sm:$0xe] }
  0xbc   : > { %v480_v41 = vld [vmem:[#allocation2 + $0x30] sm:$0xf]  ;;  %v896_v42 = vshrl.u32 %v795_v33, 16  ;;  %v645_v43 = vld [vmem:[#allocation2 + $0x34] sm:$0x1]  ;;  %v1519_v44 = vrot.slane %v644_v40, 9 }
  0xbd   : > { %v481_v45 = vld [vmem:[#allocation2 + $0x34] sm:$0x1]  ;;  %v572_v46 = vshrl.u32 %v480_v41, 16  ;;  %v1005_v50 = vsel %vm1740_vm12, %v1528_v36, %v1004_v39  ;;  %v693_v51 = vrot.slane %v645_v43, 5  ;;  %v575_v52 = vshll.u32 %v480_v41, 16 }
  0xbe   : > { %v581_v53 = vshll.u32 %v481_v45, 16  ;;  %1020 = vrot.lane.b32.xlu0 %v1005_v50, %s1649_s29  ;;  %v646_v55 = vld [vmem:[#allocation2 + $0x38] sm:$0xe]  ;;  %v899_v57 = vshll.u32 %v795_v33, 16  ;;  %v647_v61 = vld [vmem:[#allocation2 + $0x3c] sm:$0x1] }
  0xbf   : > { %v574_v54 = vrot.slane %v572_v46, 4  ;;  %v482_v56 = vld [vmem:[#allocation2 + $0x38] sm:$0xf]  ;;  %v694_v59 = vsel %vm1740_vm12, %v1519_v44, %v693_v51  ;;  %v577_v60 = vrot.slane %v575_v52, 5  ;;  %v483_v3 = vld [vmem:[#allocation2 + $0x3c] sm:$0x1] }
  0xc0   : > { %v586_v5 = vshrl.u32 %v482_v56, 16  ;;  %v589_v6 = vshll.u32 %v482_v56, 16  ;;  %v796_v8 = vld [vmem:[#allocation2 + $0x44] sm:$0x1]  ;;  %v583_v10 = vrot.slane %v581_v53, 5  ;;  %v1520_v11 = vrot.slane %v646_v55, 9 }
  0xc1   : > { %v578_v9 = vor.u32 %v577_v60, %v574_v54  ;;  %v898_v12 = vrot.slane %v896_v42, 4  ;;  %v793_v13 = vld [vmem:[#allocation2 + $0x38] sm:$0xf]  ;;  %v697_v15 = vrot.slane %v647_v61, 5  ;;  %v901_v18 = vrot.slane %v899_v57, 5 }
  0xc2   : > { %711 = vrot.lane.b32.xlu1 %v694_v59, %s1650_s30  ;;  %v588_v16 = vrot.slane %v586_v5, 4  ;;  %v591_v17 = vrot.slane %v589_v6, 5  ;;  %v738_v19 = vld [vmem:[#allocation2 + $0x38] sm:$0xf]  ;;  %v595_v21 = vshll.u32 %v483_v3, 16  ;;  %v882_v22 = vshrl.u32 %v793_v13, 16 }
  0xc3   : > { %v579_v20 = vrot.slane %v578_v9, 4  ;;  %760 = vrot.lane.b32.xlu2 %v738_v19, %s1651_s4  ;;  %v885_v25 = vshll.u32 %v793_v13, 16  ;;  %v905_v29 = vshll.u32 %v796_v8, 16  ;;  %v698_v31 = vsel %vm1740_vm12, %v1520_v11, %v697_v15  ;;  %v1101_v33 = vld [vmem:[#allocation2 + $0x40] sm:$0xf] }
  0xc4   : > { %v592_v24 = vor.u32 %v591_v17, %v588_v16  ;;  %v902_v32 = vor.u32 %v901_v18, %v898_v12  ;;  %v597_v36 = vrot.slane %v595_v21, 5  ;;  %v884_v37 = vrot.slane %v882_v22, 4  ;;  %v794_v39 = vld [vmem:[#allocation2 + $0x3c] sm:$0x1]  ;;  %v739_v41 = vld [vmem:[#allocation2 + $0x40] sm:$0xf] }
  0xc5   : > { %v584_v28 = vsel %vm1753_vm13, %v579_v20, %v583_v10  ;;  %v887_v38 = vrot.slane %v885_v25, 5  ;;  %v1206_v40 = vrot.slane %v1204_v26, 4  ;;  %v907_v42 = vrot.slane %v905_v29, 5  ;;  %v954_v44 = vld [vmem:[#allocation2 + $0x38] sm:$0xe] }
  0xc6   : > { %611 = vrot.lane.b32.xlu0 %v584_v28, %s1652_s5  ;;  %v593_v35 = vrot.slane %v592_v24, 4  ;;  %v1209_v43 = vrot.slane %v1207_v30, 5  ;;  %v955_v45 = vld [vmem:[#allocation2 + $0x3c] sm:$0x1]  ;;  %v903_v46 = vrot.slane %v902_v32, 4  ;;  %v1190_v51 = vshrl.u32 %v1101_v33, 16 }
  0xc7   : > { %v1104_v50 = vld [vmem:[#allocation2 + $0x4c] sm:$0x1]  ;;  %v1193_v52 = vshll.u32 %v1101_v33, 16  ;;  %v349_v53 = vshrl.u32 %v1704_v47, 16  ;;  %v888_v55 = vor.u32 %v887_v38, %v884_v37  ;;  %v891_v56 = vshll.u32 %v794_v39, 16 }
  0xc8   : > { %v598_v54 = vsel %vm1753_vm13, %v593_v35, %v597_v36  ;;  %v352_v57 = vshll.u32 %v1704_v47, 16  ;;  %v1527_v58 = vrot.slane %v954_v44, 9  ;;  %v1000_v59 = vrot.slane %v955_v45, 5  ;;  %v476_v0 = vld [vmem:[#allocation2 + $0x20] sm:$0xf] }
  0xc9   : > { %v351_v60 = vrot.slane %v349_v53, 7  ;;  %v1210_v61 = vor.u32 %v1209_v43, %v1206_v40  ;;  %v1213_v62 = vshll.u32 %v1104_v50, 16  ;;  %v908_v2 = vsel %vm1753_vm13, %v903_v46, %v907_v42  ;;  %v1102_v3 = vld [vmem:[#allocation2 + $0x44] sm:$0x1]  ;;  %v430_v12 = vld [vmem:[#allocation2 + $0x2c] sm:$0x1] }
  0xca   : > { %713 = vrot.lane.b32.xlu1 %v698_v31, %s1650_s30  ;;  %v1192_v5 = vrot.slane %v1190_v51, 4  ;;  %v1195_v6 = vrot.slane %v1193_v52, 5  ;;  %v889_v9 = vrot.slane %v888_v55, 4  ;;  %v893_v10 = vrot.slane %v891_v56, 5  ;;  %v477_v25 = vld [vmem:[#allocation2 + $0x24] sm:$0x1] }
  0xcb   : > { %762 = vrot.lane.b32.xlu2 %v739_v41, %s1651_s4  ;;  %v354_v8 = vor.u32 %v352_v57, %v351_v60  ;;  %v544_v11 = vshrl.u32 %v476_v0, 16  ;;  %v547_v47 = vshll.u32 %v476_v0, 16  ;;  %v1001_v13 = vsel %vm1740_vm12, %v1527_v58, %v1000_v59  ;;  %v1047_v31 = vld [vmem:[#allocation2 + $0x48] sm:$0xf]  ;;  %v1262_v32 = vld [vmem:[#allocation2 + $0x40] sm:$0xe] }
  0xcc   : > { %v355_v15 = vrot.slane %v351_v60, 4  ;;  %v1211_v17 = vrot.slane %v1210_v61, 4  ;;  %v1196_v18 = vor.u32 %v1195_v6, %v1192_v5  ;;  %v1199_v19 = vshll.u32 %v1102_v3, 16  ;;  %v1263_v33 = vld [vmem:[#allocation2 + $0x44] sm:$0x1] }
  0xcd   : > { %v428_v16 = vsel %vm1716_vm6, %v354_v8, %v427_v1  ;;  %v894_v21 = vsel %vm1753_vm13, %v889_v9, %v893_v10  ;;  %v1215_v22 = vrot.slane %v1213_v62, 5  ;;  %v546_v23 = vrot.slane %v544_v11, 4  ;;  %v1264_v36 = vld [vmem:[#allocation2 + $0x48] sm:$0xe]  ;;  %v1265_v37 = vld [vmem:[#allocation2 + $0x4c] sm:$0x1] }
  0xce   : > { %613 = vrot.lane.b32.xlu0 %v598_v54, %s1652_s5  ;;  %429 = vst [vmem:[#allocation2 + $0x28] sm:$0xf] %v428_v16  ;;  %v431_v20 = vsel %vm1721_vm7, %v355_v15, %v430_v12  ;;  %v549_v24 = vrot.slane %v547_v47, 5  ;;  %v1197_v26 = vrot.slane %v1196_v18, 4  ;;  %v1201_v27 = vrot.slane %v1199_v19, 5 }
  0xcf   : > { %432 = vst [vmem:[#allocation2 + $0x2c] sm:$0x1] %v431_v20  ;;  %v1216_v28 = vsel %vm1753_vm13, %v1211_v17, %v1215_v22  ;;  %v553_v30 = vshll.u32 %v477_v25, 16  ;;  %v1535_v40 = vrot.slane %v1262_v32, 9  ;;  %v1308_v41 = vrot.slane %v1263_v33, 5 }
  0xd0   : > { %v550_v29 = vor.u32 %v549_v24, %v546_v23  ;;  %v1202_v35 = vsel %vm1753_vm13, %v1197_v26, %v1201_v27  ;;  %v1536_v44 = vrot.slane %v1264_v36, 9  ;;  %v1312_v45 = vrot.slane %v1265_v37, 5  ;;  %v640_v0 = vld [vmem:[#allocation2 + $0x20] sm:$0xe]  ;;  %v415_v10 = vld [vmem:[#allocation2 + $0x18] sm:$0xf] }
  0xd1   : > { %v555_v39 = vrot.slane %v553_v30, 5  ;;  %v1309_v56 = vsel %vm1740_vm12, %v1535_v40, %v1308_v41  ;;  %v333_v61 = vshrl.u32 %v1712_v63, 16  ;;  %v336_v3 = vshll.u32 %v1712_v63, 16  ;;  %v641_v11 = vld [vmem:[#allocation2 + $0x24] sm:$0x1] }
  0xd2   : > { %923 = vrot.lane.b32.xlu1 %v908_v2, %s1653_s6  ;;  %v551_v38 = vrot.slane %v550_v29, 4  ;;  %v1313_v62 = vsel %vm1740_vm12, %v1536_v44, %v1312_v45  ;;  %v1517_v16 = vrot.slane %v640_v0, 9  ;;  %v685_v18 = vrot.slane %v641_v11, 5  ;;  %v418_v23 = vld [vmem:[#allocation2 + $0x1c] sm:$0x1] }
  0xd3   : > { %1018 = vrot.lane.b32.xlu2 %v1001_v13, %s1649_s29  ;;  %v335_v2 = vrot.slane %v333_v61, 7  ;;  %v325_v29 = vshrl.u32 %v1706_v48, 16  ;;  %v1097_v30 = vld [vmem:[#allocation2 + $0x30] sm:$0xf]  ;;  %v792_v37 = vld [vmem:[#allocation2 + $0x34] sm:$0x1] }
  0xd4   : > { %v556_v52 = vsel %vm1753_vm13, %v551_v38, %v555_v39  ;;  %v686_v25 = vsel %vm1740_vm12, %v1517_v16, %v685_v18  ;;  %v952_v36 = vld [vmem:[#allocation2 + $0x30] sm:$0xe]  ;;  %v953_v41 = vld [vmem:[#allocation2 + $0x34] sm:$0x1]  ;;  %v1100_v16 = vld [vmem:[#allocation2 + $0x3c] sm:$0x1] }
  0xd5   : > { %v789_v42 = vld [vmem:[#allocation2 + $0x28] sm:$0xf]  ;;  %v338_v15 = vor.u32 %v336_v3, %v335_v2  ;;  %v339_v17 = vrot.slane %v335_v2, 4  ;;  %v327_v33 = vrot.slane %v325_v29, 7 }
  0xd6   : > { %921 = vrot.lane.b32.xlu0 %v894_v21, %s1653_s6  ;;  %v478_v43 = vld [vmem:[#allocation2 + $0x28] sm:$0xf]  ;;  %v479_v46 = vld [vmem:[#allocation2 + $0x2c] sm:$0x1]  ;;  %v854_v54 = vshrl.u32 %v789_v42, 16  ;;  %v857_v55 = vshll.u32 %v789_v42, 16 }
  0xd7   : > { %v558_v50 = vshrl.u32 %v478_v43, 16  ;;  %v561_v51 = vshll.u32 %v478_v43, 16  ;;  %v642_v53 = vld [vmem:[#allocation2 + $0x28] sm:$0xe]  ;;  %v643_v57 = vld [vmem:[#allocation2 + $0x2c] sm:$0x1]  ;;  %v416_v63 = vsel %vm1716_vm6, %v338_v15, %v415_v10  ;;  %v419_v24 = vsel %vm1721_vm7, %v339_v17, %v418_v23 }
  0xd8   : > { %v567_v60 = vshll.u32 %v479_v46, 16  ;;  %v1518_v5 = vrot.slane %v642_v53, 9  ;;  %v689_v6 = vrot.slane %v643_v57, 5  ;;  %v856_v8 = vrot.slane %v854_v54, 4  ;;  %v790_v47 = vld [vmem:[#allocation2 + $0x2c] sm:$0x1] }
  0xd9   : > { %v560_v58 = vrot.slane %v558_v50, 4  ;;  %v563_v59 = vrot.slane %v561_v51, 5  ;;  %v859_v9 = vrot.slane %v857_v55, 5  ;;  %v863_v21 = vshll.u32 %v790_v47, 16  ;;  %417 = vst [vmem:[#allocation2 + $0x18] sm:$0xf] %v416_v63 }
  0xda   : > { %1231 = vrot.lane.b32.xlu1 %v1216_v28, %s1654_s7  ;;  %v569_v13 = vrot.slane %v567_v60, 5  ;;  %v690_v19 = vsel %vm1740_vm12, %v1518_v5, %v689_v6  ;;  %420 = vst [vmem:[#allocation2 + $0x1c] sm:$0x1] %v419_v24  ;;  %v791_v28 = vld [vmem:[#allocation2 + $0x30] sm:$0xf]  ;;  %v1162_v42 = vshrl.u32 %v1097_v30, 16 }
  0xdb   : > { %1070 = vrot.lane.b32.xlu2 %v1047_v31, %s1648_s28  ;;  %v564_v1 = vor.u32 %v563_v59, %v560_v58  ;;  %v860_v20 = vor.u32 %v859_v9, %v856_v8  ;;  %v865_v27 = vrot.slane %v863_v21, 5  ;;  %v868_v31 = vshrl.u32 %v791_v28, 16  ;;  %v736_v44 = vld [vmem:[#allocation2 + $0x28] sm:$0xf]  ;;  %v412_v53 = vld [vmem:[#allocation2 + $0x14] sm:$0x1] }
  0xdc   : > { %v871_v32 = vshll.u32 %v791_v28, 16  ;;  %v1165_v43 = vshll.u32 %v1097_v30, 16  ;;  %v877_v50 = vshll.u32 %v792_v37, 16  ;;  %v331_v51 = vrot.slane %v327_v33, 4  ;;  %v737_v54 = vld [vmem:[#allocation2 + $0x30] sm:$0xf] }
  0xdd   : > { %v565_v12 = vrot.slane %v564_v1, 4  ;;  %v861_v26 = vrot.slane %v860_v20, 4  ;;  %v870_v38 = vrot.slane %v868_v31, 4  ;;  %v950_v55 = vld [vmem:[#allocation2 + $0x28] sm:$0xe]  ;;  %v1526_v57 = vrot.slane %v952_v36, 9 }
  0xde   : > { %1229 = vrot.lane.b32.xlu0 %v1202_v35, %s1654_s7  ;;  %v328_v35 = vshll.u32 %v1706_v48, 16  ;;  %v873_v39 = vrot.slane %v871_v32, 5  ;;  %v996_v58 = vrot.slane %v953_v41, 5  ;;  %v1164_v59 = vrot.slane %v1162_v42, 4  ;;  %v951_v61 = vld [vmem:[#allocation2 + $0x2c] sm:$0x1] }
  0xdf   : > { %v570_v22 = vsel %vm1753_vm13, %v565_v12, %v569_v13  ;;  %v866_v40 = vsel %vm1753_vm13, %v861_v26, %v865_v27  ;;  %v1167_v60 = vrot.slane %v1165_v43, 5  ;;  %v879_v1 = vrot.slane %v877_v50, 5  ;;  %v1099_v12 = vld [vmem:[#allocation2 + $0x38] sm:$0xf]  ;;  %v1261_v20 = vld [vmem:[#allocation2 + $0x3c] sm:$0x1] }
  0xe0   : > { %v330_v45 = vor.u32 %v328_v35, %v327_v33  ;;  %v874_v46 = vor.u32 %v873_v39, %v870_v38  ;;  %v1525_v2 = vrot.slane %v950_v55, 9  ;;  %v992_v3 = vrot.slane %v951_v61, 5  ;;  %v474_v21 = vld [vmem:[#allocation2 + $0x18] sm:$0xf]  ;;  %v1258_v26 = vld [vmem:[#allocation2 + $0x30] sm:$0xe] }
  0xe1   : > { %v997_v5 = vsel %vm1740_vm12, %v1526_v57, %v996_v58  ;;  %v1168_v6 = vor.u32 %v1167_v60, %v1164_v59  ;;  %v1176_v13 = vshrl.u32 %v1099_v12, 16  ;;  %v1179_v15 = vshll.u32 %v1099_v12, 16  ;;  %v1259_v27 = vld [vmem:[#allocation2 + $0x34] sm:$0x1]  ;;  %v475_v43 = vld [vmem:[#allocation2 + $0x1c] sm:$0x1] }
  0xe2   : > { %607 = vrot.lane.b32.xlu1 %v556_v52, %s1652_s5  ;;  %v409_v52 = vld [vmem:[#allocation2 + $0x10] sm:$0xf]  ;;  %v875_v0 = vrot.slane %v874_v46, 4  ;;  %v993_v10 = vsel %vm1740_vm12, %v1525_v2, %v992_v3  ;;  %v1185_v24 = vshll.u32 %v1100_v16, 16  ;;  %v1304_v29 = vrot.slane %v1261_v20, 5 }
  0xe3   : > { %1326 = vrot.lane.b32.xlu2 %v1309_v56, %s1655_s8  ;;  %v410_v48 = vsel %vm1716_vm6, %v330_v45, %v409_v52  ;;  %v413_v56 = vsel %vm1721_vm7, %v331_v51, %v412_v53  ;;  %v1169_v11 = vrot.slane %v1168_v6, 4  ;;  %v1178_v17 = vrot.slane %v1176_v13, 4  ;;  %v787_v2 = vld [vmem:[#allocation2 + $0x20] sm:$0xf]  ;;  %v400_v12 = vld [vmem:[#allocation2 + $0x8] sm:$0xf] }
  0xe4   : > { %411 = vst [vmem:[#allocation2 + $0x10] sm:$0xf] %v410_v48  ;;  %v880_v9 = vsel %vm1753_vm13, %v875_v0, %v879_v1  ;;  %v1181_v63 = vrot.slane %v1179_v15, 5  ;;  %v530_v30 = vshrl.u32 %v474_v21, 16  ;;  %v533_v31 = vshll.u32 %v474_v21, 16 }
  0xe5   : > { %414 = vst [vmem:[#allocation2 + $0x14] sm:$0x1] %v413_v56  ;;  %v1187_v35 = vrot.slane %v1185_v24, 5  ;;  %v1533_v38 = vrot.slane %v1258_v26, 9  ;;  %v1300_v39 = vrot.slane %v1259_v27, 5  ;;  %v317_v61 = vshrl.u32 %v1708_v49, 16 }
  0xe6   : > { %1328 = vrot.lane.b32.xlu0 %v1313_v62, %s1655_s8  ;;  %v1098_v62 = vld [vmem:[#allocation2 + $0x34] sm:$0x1]  ;;  %v1182_v23 = vor.u32 %v1181_v63, %v1178_v17  ;;  %v535_v45 = vrot.slane %v533_v31, 5  ;;  %v785_v15 = vld [vmem:[#allocation2 + $0x18] sm:$0xf] }
  0xe7   : > { %v1171_v8 = vshll.u32 %v1098_v62, 16  ;;  %v1301_v55 = vsel %vm1740_vm12, %v1533_v38, %v1300_v39  ;;  %v319_v3 = vrot.slane %v317_v61, 7  ;;  %v826_v63 = vshrl.u32 %v785_v15, 16  ;;  %v788_v21 = vld [vmem:[#allocation2 + $0x24] sm:$0x1] }
  0xe8   : > { %v1183_v33 = vrot.slane %v1182_v23, 4  ;;  %v406_v26 = vld [vmem:[#allocation2 + $0xc] sm:$0x1]  ;;  %v946_v27 = vld [vmem:[#allocation2 + $0x18] sm:$0xe] }
  0xe9   : > { %v1173_v47 = vrot.slane %v1171_v8, 5  ;;  %v638_v8 = vld [vmem:[#allocation2 + $0x18] sm:$0xe]  ;;  %v323_v20 = vrot.slane %v319_v3, 4  ;;  %v828_v24 = vrot.slane %v826_v63, 4  ;;  %v1523_v38 = vrot.slane %v946_v27, 9 }
  0xea   : > { %709 = vrot.lane.b32.xlu1 %v690_v19, %s1650_s30  ;;  %v1260_v19 = vld [vmem:[#allocation2 + $0x38] sm:$0xe]  ;;  %v1188_v52 = vsel %vm1753_vm13, %v1183_v33, %v1187_v35  ;;  %v1516_v16 = vrot.slane %v638_v8, 9 }
  0xeb   : > { %609 = vrot.lane.b32.xlu2 %v570_v22, %s1652_s5  ;;  %v1174_v18 = vsel %vm1753_vm13, %v1169_v11, %v1173_v47  ;;  %v1044_v22 = vld [vmem:[#allocation2 + $0x30] sm:$0xf]  ;;  %v1534_v28 = vrot.slane %v1260_v19, 9  ;;  %v840_v11 = vshrl.u32 %v787_v2, 16  ;;  %v843_v47 = vshll.u32 %v787_v2, 16 }
  0xec   : > { %v472_v32 = vld [vmem:[#allocation2 + $0x10] sm:$0xf]  ;;  %v473_v46 = vld [vmem:[#allocation2 + $0x14] sm:$0x1]  ;;  %v735_v19 = vld [vmem:[#allocation2 + $0x20] sm:$0xf]  ;;  %v407_v4 = vsel %vm1721_vm7, %v323_v20, %v406_v26 }
  0xed   : > { %v516_v36 = vshrl.u32 %v472_v32, 16  ;;  %v519_v37 = vshll.u32 %v472_v32, 16  ;;  %v1305_v42 = vsel %vm1740_vm12, %v1534_v28, %v1304_v29  ;;  %v636_v50 = vld [vmem:[#allocation2 + $0x10] sm:$0xe]  ;;  %v637_v51 = vld [vmem:[#allocation2 + $0x14] sm:$0x1] }
  0xee   : > { %707 = vrot.lane.b32.xlu0 %v686_v25, %s1650_s30  ;;  %v1045_v25 = vld [vmem:[#allocation2 + $0x38] sm:$0xf]  ;;  %v525_v48 = vshll.u32 %v473_v46, 16  ;;  %v1515_v57 = vrot.slane %v636_v50, 9  ;;  %v677_v58 = vrot.slane %v637_v51, 5  ;;  %v845_v23 = vrot.slane %v843_v47, 5 }
  0xef   : > { %v521_v41 = vrot.slane %v519_v37, 5  ;;  %v457_v28 = vld [vmem:[#allocation2 + $0x30] sm:$0xf]  ;;  %v786_v29 = vld [vmem:[#allocation2 + $0x1c] sm:$0x1]  ;;  %v849_v37 = vshll.u32 %v788_v21, 16 }
  0xf0   : > { %v527_v60 = vrot.slane %v525_v48, 5  ;;  %v678_v1 = vsel %vm1740_vm12, %v1515_v57, %v677_v58  ;;  %466 = vst.msk [vmem:[#allocation3 + $0x18] sm:$0xf] %vm397_vm2, %v457_v28  ;;  %v835_v33 = vshll.u32 %v786_v29, 16  ;;  %v734_v35 = vld [vmem:[#allocation2 + $0x18] sm:$0xf] }
  0xf1   : > { %408 = vst [vmem:[#allocation2 + $0xc] sm:$0x1] %v407_v4  ;;  %v1255_v47 = vld [vmem:[#allocation2 + $0x24] sm:$0x1]  ;;  %vm1376_vm7 = vcmask 293888  }
  0xf2   : > { %917 = vrot.lane.b32.xlu1 %v866_v40, %s1653_s6  ;;  %v518_v40 = vrot.slane %v516_v36, 4  ;;  %v1292_v20 = vrot.slane %v1255_v47, 5 }
  0xf3   : > { %756 = vrot.lane.b32.xlu2 %v736_v44, %s1651_s4  ;;  %v532_v44 = vrot.slane %v530_v30, 4  ;;  %v947_v30 = vld [vmem:[#allocation2 + $0x1c] sm:$0x1] }
  0xf4   : > { %v522_v53 = vor.u32 %v521_v41, %v518_v40  ;;  %v984_v39 = vrot.slane %v947_v30, 5  ;;  %v837_v40 = vrot.slane %v835_v33, 5 }
  0xf5   : > { %v536_v56 = vor.u32 %v535_v45, %v532_v44  ;;  %v851_v45 = vrot.slane %v849_v37, 5 }
  0xf6   : > { %758 = vrot.lane.b32.xlu0 %v737_v54, %s1651_s4  ;;  %v539_v54 = vshll.u32 %v475_v43, 16  ;;  %v523_v59 = vrot.slane %v522_v53, 4  ;;  %v458_v43 = vld [vmem:[#allocation2 + $0x38] sm:$0xf]  ;;  %v985_v46 = vsel %vm1740_vm12, %v1523_v38, %v984_v39  ;;  %v949_v53 = vld [vmem:[#allocation2 + $0x24] sm:$0x1] }
  0xf7   : > { %v537_v0 = vrot.slane %v536_v56, 4  ;;  %467 = vst.msk [vmem:[#allocation3 + $0x1c] sm:$0xf] %vm397_vm2, %v458_v43  ;;  %v988_v57 = vrot.slane %v949_v53, 5  ;;  %v1256_v38 = vld [vmem:[#allocation2 + $0x28] sm:$0xe] }
  0xf8   : > { %v541_v62 = vrot.slane %v539_v54, 5  ;;  %v528_v6 = vsel %vm1753_vm13, %v523_v59, %v527_v60  ;;  %v1096_v60 = vld [vmem:[#allocation2 + $0x2c] sm:$0x1] }
  0xf9   : > { %v1257_v39 = vld [vmem:[#allocation2 + $0x2c] sm:$0x1] }
  0xfa   : > { %1016 = vrot.lane.b32.xlu1 %v997_v5, %s1649_s29  ;;  %v320_v5 = vshll.u32 %v1708_v49, 16  ;;  %v542_v13 = vsel %vm1753_vm13, %v537_v0, %v541_v62 }
  0xfb   : > { %919 = vrot.lane.b32.xlu2 %v880_v9, %s1653_s6  ;;  %v639_v9 = vld [vmem:[#allocation2 + $0x1c] sm:$0x1] }
  0xfc   : > { %v681_v17 = vrot.slane %v639_v9, 5  ;;  %v1094_v9 = vld [vmem:[#allocation2 + $0x24] sm:$0x1] }
  0xfe   : > { %1014 = vrot.lane.b32.xlu0 %v993_v10, %s1649_s29  ;;  %v322_v10 = vor.u32 %v320_v5, %v319_v3  ;;  %v682_v31 = vsel %vm1740_vm12, %v1516_v16, %v681_v17  ;;  %v468_v3 = vld [vmem:[#allocation2] sm:$0xf]  ;;  %v1157_v16 = vshll.u32 %v1096_v60, 16 }
  0xff   : > { %v488_v17 = vshrl.u32 %v468_v3, 16  ;;  %v491_v63 = vshll.u32 %v468_v3, 16  ;;  %v633_v3 = vld [vmem:[#allocation2 + $0x4] sm:$0x1] }
 0x100   : > { %v401_v49 = vsel %vm1716_vm6, %v322_v10, %v400_v12  ;;  %v1159_v30 = vrot.slane %v1157_v16, 5  ;;  %vm1338_vm6 = vcmask 290048  }
 0x101   : > { %402 = vst [vmem:[#allocation2 + $0x8] sm:$0xf] %v401_v49  ;;  %v490_v29 = vrot.slane %v488_v17, 4  ;;  %v493_v4 = vrot.slane %v491_v63, 5 }
 0x102   : > { %1225 = vrot.lane.b32.xlu1 %v1174_v18, %s1654_s7  ;;  %v829_v18 = vshll.u32 %v785_v15, 16 }
 0x103   : > { %1064 = vrot.lane.b32.xlu2 %v1044_v22, %s1648_s28  ;;  %v842_v22 = vrot.slane %v840_v11, 4  ;;  %v1254_v11 = vld [vmem:[#allocation2 + $0x20] sm:$0xe] }
 0x105   : > { %v846_v36 = vor.u32 %v845_v23, %v842_v22 }
 0x106   : > { %1066 = vrot.lane.b32.xlu0 %v1045_v25, %s1648_s28  ;;  %v831_v25 = vrot.slane %v829_v18, 5  ;;  %v1042_v18 = vld [vmem:[#allocation2 + $0x20] sm:$0xf] }
 0x107   : > { %v847_v44 = vrot.slane %v846_v36, 4  ;;  %v469_v36 = vld [vmem:[#allocation2 + $0x4] sm:$0x1] }
 0x108   : > { %v832_v32 = vor.u32 %v831_v25, %v828_v24  ;;  %v470_v58 = vld [vmem:[#allocation2 + $0x8] sm:$0xf]  ;;  %v471_v24 = vld [vmem:[#allocation2 + $0xc] sm:$0x1] }
 0x109   : > { %v852_v54 = vsel %vm1753_vm13, %v847_v44, %v851_v45  ;;  %v505_v8 = vshll.u32 %v470_v58, 16  ;;  %v511_v33 = vshll.u32 %v471_v24, 16 }
 0x10a   : > { %1324 = vrot.lane.b32.xlu1 %v1305_v42, %s1655_s8  ;;  %v833_v7 = vrot.slane %v832_v32, 4  ;;  %v1095_v42 = vld [vmem:[#allocation2 + $0x28] sm:$0xf] }
 0x10b   : > { %1227 = vrot.lane.b32.xlu2 %v1188_v52, %s1654_s7  ;;  %v1148_v51 = vshrl.u32 %v1095_v42, 16  ;;  %v948_v52 = vld [vmem:[#allocation2 + $0x20] sm:$0xe]  ;;  %v1151_v48 = vshll.u32 %v1095_v42, 16  ;;  %v507_v22 = vrot.slane %v505_v8, 5  ;;  %v497_v42 = vshll.u32 %v469_v36, 16 }
 0x10c   : > { %v838_v50 = vsel %vm1753_vm13, %v833_v7, %v837_v40  ;;  %v1524_v56 = vrot.slane %v948_v52, 9  ;;  %v494_v7 = vor.u32 %v493_v4, %v490_v29  ;;  %v513_v44 = vrot.slane %v511_v33, 5 }
 0x10d   : > { %v1150_v61 = vrot.slane %v1148_v51, 4  ;;  %v1153_v2 = vrot.slane %v1151_v48, 5  ;;  %v783_v51 = vld [vmem:[#allocation2 + $0x10] sm:$0xf]  ;;  %v781_v48 = vld [vmem:[#allocation2 + $0x8] sm:$0xf] }
 0x10e   : > { %1322 = vrot.lane.b32.xlu0 %v1301_v55, %s1655_s8  ;;  %v1093_v55 = vld [vmem:[#allocation2 + $0x20] sm:$0xf]  ;;  %v989_v12 = vsel %vm1740_vm12, %v1524_v56, %v988_v57  ;;  %v495_v53 = vrot.slane %v494_v7, 4  ;;  %v812_v56 = vshrl.u32 %v783_v51, 16  ;;  %v815_v57 = vshll.u32 %v783_v51, 16 }
 0x10f   : > { %v1134_v59 = vshrl.u32 %v1093_v55, 16  ;;  %v1137_v0 = vshll.u32 %v1093_v55, 16  ;;  %v1154_v49 = vor.u32 %v1153_v2, %v1150_v61  ;;  %v798_v61 = vshrl.u32 %v781_v48, 16  ;;  %v632_v2 = vld [vmem:[#allocation2] sm:$0xe] }
 0x110   : > { %v814_v8 = vrot.slane %v812_v56, 4  ;;  %v1513_v47 = vrot.slane %v632_v2, 9  ;;  %v733_v7 = vld [vmem:[#allocation2 + $0x10] sm:$0xf] }
 0x111   : > { %v1136_v5 = vrot.slane %v1134_v59, 4  ;;  %v1139_v10 = vrot.slane %v1137_v0, 5  ;;  %v1155_v28 = vrot.slane %v1154_v49, 4  ;;  %v634_v59 = vld [vmem:[#allocation2 + $0x8] sm:$0xe]  ;;  %v801_v0 = vshll.u32 %v781_v48, 16 }
 0x112   : > { %703 = vrot.lane.b32.xlu1 %v678_v1, %s1650_s30  ;;  %v1043_v1 = vld [vmem:[#allocation2 + $0x28] sm:$0xf]  ;;  %v782_v49 = vld [vmem:[#allocation2 + $0xc] sm:$0x1]  ;;  %v800_v16 = vrot.slane %v798_v61, 4 }
 0x113   : > { %603 = vrot.lane.b32.xlu2 %v528_v6, %s1652_s5  ;;  %v502_v6 = vshrl.u32 %v470_v58, 16  ;;  %v1140_v15 = vor.u32 %v1139_v10, %v1136_v5  ;;  %v1160_v40 = vsel %vm1753_vm13, %v1155_v28, %v1159_v30  ;;  %v803_v17 = vrot.slane %v801_v0, 5  ;;  %v1091_v30 = vld [vmem:[#allocation2 + $0x18] sm:$0xf]  ;;  %v1090_v0 = vld [vmem:[#allocation2 + $0x14] sm:$0x1] }
 0x114   : > { %v1120_v36 = vshrl.u32 %v1091_v30, 16 }
 0x115   : > { %v504_v21 = vrot.slane %v502_v6, 4  ;;  %v1141_v25 = vrot.slane %v1140_v15, 4  ;;  %v635_v6 = vld [vmem:[#allocation2 + $0xc] sm:$0x1]  ;;  %v804_v24 = vor.u32 %v803_v17, %v800_v16  ;;  %v1251_v16 = vld [vmem:[#allocation2 + $0x14] sm:$0x1] }
 0x116   : > { %605 = vrot.lane.b32.xlu0 %v542_v13, %s1652_s5  ;;  %v1143_v13 = vshll.u32 %v1094_v9, 16  ;;  %v817_v9 = vrot.slane %v815_v57, 5  ;;  %v673_v63 = vrot.slane %v635_v6, 5 }
 0x117   : > { %v508_v32 = vor.u32 %v507_v22, %v504_v21 }
 0x118   : > { %v1145_v26 = vrot.slane %v1143_v13, 5  ;;  %v1514_v13 = vrot.slane %v634_v59, 9 }
 0x119   : > { %v509_v43 = vrot.slane %v508_v32, 4  ;;  %v805_v32 = vrot.slane %v804_v24, 4 }
 0x11a   : > { %754 = vrot.lane.b32.xlu1 %v735_v19, %s1651_s4  ;;  %v1531_v19 = vrot.slane %v1254_v11, 9  ;;  %v1146_v37 = vsel %vm1753_vm13, %v1141_v25, %v1145_v26  ;;  %v784_v11 = vld [vmem:[#allocation2 + $0x14] sm:$0x1]  ;;  %v807_v25 = vshll.u32 %v782_v49, 16  ;;  %v674_v26 = vsel %vm1740_vm12, %v1514_v13, %v673_v63  ;;  %v1250_v49 = vld [vmem:[#allocation2 + $0x10] sm:$0xe] }
 0x11b   : > { %705 = vrot.lane.b32.xlu2 %v682_v31, %s1650_s30  ;;  %v514_v55 = vsel %vm1753_vm13, %v509_v43, %v513_v44  ;;  %v944_v43 = vld [vmem:[#allocation2 + $0x10] sm:$0xe]  ;;  %v945_v44 = vld [vmem:[#allocation2 + $0x14] sm:$0x1]  ;;  %v1252_v63 = vld [vmem:[#allocation2 + $0x18] sm:$0xe] }
 0x11c   : > { %v1293_v31 = vsel %vm1740_vm12, %v1531_v19, %v1292_v20  ;;  %v818_v19 = vor.u32 %v817_v9, %v814_v8  ;;  %v821_v20 = vshll.u32 %v784_v11, 16  ;;  %v980_v56 = vrot.slane %v945_v44, 5 }
 0x11d   : > { %v1872_v41 = vpop.permute.xlu2 %760 }
 0x11e   : > { %752 = vrot.lane.b32.xlu0 %v734_v35, %s1651_s4  ;;  %v819_v28 = vrot.slane %v818_v19, 4  ;;  %v823_v29 = vrot.slane %v821_v20, 5  ;;  %v1529_v19 = vrot.slane %v1250_v49, 9  ;;  %v1284_v20 = vrot.slane %v1251_v16, 5 }
 0x120   : > { %v824_v33 = vsel %vm1753_vm13, %v819_v28, %v823_v29  ;;  %v1285_v14 = vsel %vm1740_vm12, %v1529_v19, %v1284_v20  ;;  %v453_v28 = vld [vmem:[#allocation2 + $0x10] sm:$0xf] }
 0x121   : > { %462 = vst.msk [vmem:[#allocation3 + $0x8] sm:$0xf] %vm397_vm2, %v453_v28 }
 0x122   : > { %1010 = vrot.lane.b32.xlu1 %v985_v46, %s1649_s29  ;;  %v1532_v46 = vrot.slane %v1256_v38, 9 }
 0x123   : > { %913 = vrot.lane.b32.xlu2 %v838_v50, %s1653_s6  ;;  %v1296_v50 = vrot.slane %v1257_v39, 5  ;;  %v1089_v39 = vld [vmem:[#allocation2 + $0x10] sm:$0xf] }
 0x125   : > { %v1884_v62 = vpop.permute.xlu2 %762  ;;  %v1297_v60 = vsel %vm1740_vm12, %v1532_v46, %v1296_v50  ;;  %v1109_v46 = vshll.u32 %v1089_v39, 16  ;;  %v1122_v50 = vrot.slane %v1120_v36, 4 }
 0x126   : > { %915 = vrot.lane.b32.xlu0 %v852_v54, %s1653_s6  ;;  %v499_v54 = vrot.slane %v497_v42, 5 }
 0x128   : > { %v500_v5 = vsel %vm1753_vm13, %v495_v53, %v499_v54  ;;  %v1092_v53 = vld [vmem:[#allocation2 + $0x1c] sm:$0x1] }
 0x12a   : > { %1062 = vrot.lane.b32.xlu1 %v1043_v1, %s1648_s28  ;;  %v455_v1 = vld [vmem:[#allocation2 + $0x20] sm:$0xf] }
 0x12b   : > { %1012 = vrot.lane.b32.xlu2 %v989_v12, %s1649_s29  ;;  %464 = vst.msk [vmem:[#allocation3 + $0x10] sm:$0xf] %vm397_vm2, %v455_v1  ;;  %v669_v12 = vrot.slane %v633_v3, 5 }
 0x12c   : > { %v1891_v23 = vpop.permute.xlu1 %1068 }
 0x12d   : > { %v1893_v27 = vpop.permute.xlu2 %1018  ;;  %v670_v22 = vsel %vm1740_vm12, %v1513_v47, %v669_v12 }
 0x12e   : > { %1060 = vrot.lane.b32.xlu0 %v1042_v18, %s1648_s28  ;;  %v732_v18 = vld [vmem:[#allocation2 + $0x8] sm:$0xf] }
 0x130   : > { %v1898_v35 = vpop.permute.xlu0 %1020 }
 0x132   : > { %1318 = vrot.lane.b32.xlu1 %v1293_v31, %s1655_s8 }
 0x133   : > { %1221 = vrot.lane.b32.xlu2 %v1146_v37, %s1654_s7  ;;  %v1123_v37 = vshll.u32 %v1091_v30, 16 }
 0x134   : > { %v712_v45 = vpop.permute.xlu1 %711 }
 0x135   : > { %v1906_v52 = vpop.permute.xlu2 %1070  ;;  %v1125_v51 = vrot.slane %v1123_v37, 5 }
 0x136   : > { %1223 = vrot.lane.b32.xlu0 %v1160_v40, %s1654_s7  ;;  %v942_v40 = vld [vmem:[#allocation2 + $0x8] sm:$0xe] }
 0x137   : > { %v1126_v59 = vor.u32 %v1125_v51, %v1122_v50  ;;  %v451_v50 = vld [vmem:[#allocation2] sm:$0xf] }
 0x138   : > { %v612_v58 = vpop.permute.xlu0 %611  ;;  %460 = vst.msk [vmem:[#allocation3] sm:$0xf] %vm397_vm2, %v451_v50 }
 0x139   : > { %630 = vst.msk [vmem:[#allocation3 + $0x18] sm:$0xf] %vm623_vm14, %v612_v58  ;;  %v1111_v58 = vrot.slane %v1109_v46, 5  ;;  %v1127_v6 = vrot.slane %v1126_v59, 4 }
 0x13a   : > { %730 = vst.msk [vmem:[#allocation3 + $0x18] sm:$0xf] %vm723_vm15, %v712_v45  ;;  %601 = vrot.lane.b32.xlu1 %v514_v55, %s1652_s5  ;;  %v1106_v45 = vshrl.u32 %v1089_v39, 16  ;;  %v1522_v55 = vrot.slane %v944_v43, 9 }
 0x13b   : > { %779 = vst.msk [vmem:[#allocation3 + $0x18] sm:$0xf] %vm772_vm0, %v1872_v41  ;;  %1320 = vrot.lane.b32.xlu2 %v1297_v60, %s1655_s8  ;;  %v456_v41 = vld [vmem:[#allocation2 + $0x28] sm:$0xf]  ;;  %v1129_v60 = vshll.u32 %v1092_v53, 16 }
 0x13c   : > { %v714_v10 = vpop.permute.xlu1 %713  ;;  %465 = vst.msk [vmem:[#allocation3 + $0x14] sm:$0xf] %vm397_vm2, %v456_v41  ;;  %v1108_v57 = vrot.slane %v1106_v45, 4  ;;  %v981_v2 = vsel %vm1740_vm12, %v1522_v55, %v980_v56  ;;  %v452_v53 = vld [vmem:[#allocation2 + $0x8] sm:$0xf] }
 0x13d   : > { %v1922_v15 = vpop.permute.xlu2 %1326  ;;  %v1131_v8 = vrot.slane %v1129_v60, 5  ;;  %461 = vst.msk [vmem:[#allocation3 + $0x4] sm:$0xf] %vm397_vm2, %v452_v53 }
 0x13e   : > { %599 = vrot.lane.b32.xlu0 %v500_v5, %s1652_s5  ;;  %v1112_v3 = vor.u32 %v1111_v58, %v1108_v57  ;;  %v1115_v5 = vshll.u32 %v1090_v0, 16 }
 0x13f   : > { %v1132_v12 = vsel %vm1753_vm13, %v1127_v6, %v1131_v8 }
 0x140   : > { %v614_v21 = vpop.permute.xlu0 %613  ;;  %v1113_v11 = vrot.slane %v1112_v3, 4  ;;  %v1117_v47 = vrot.slane %v1115_v5, 5 }
 0x141   : > { %631 = vst.msk [vmem:[#allocation3 + $0x1c] sm:$0xf] %vm623_vm14, %v614_v21 }
 0x142   : > { %731 = vst.msk [vmem:[#allocation3 + $0x1c] sm:$0xf] %vm723_vm15, %v714_v10  ;;  %748 = vrot.lane.b32.xlu1 %v732_v18, %s1651_s4  ;;  %v1118_v17 = vsel %vm1753_vm13, %v1113_v11, %v1117_v47  ;;  %v1253_v18 = vld [vmem:[#allocation2 + $0x1c] sm:$0x1] }
 0x143   : > { %780 = vst.msk [vmem:[#allocation3 + $0x1c] sm:$0xf] %vm772_vm0, %v1884_v62  ;;  %699 = vrot.lane.b32.xlu2 %v670_v22, %s1650_s30  ;;  %v809_v62 = vrot.slane %v807_v25, 5  ;;  %v1530_v22 = vrot.slane %v1252_v63, 9  ;;  %v1288_v24 = vrot.slane %v1253_v18, 5 }
 0x144   : > { %v924_v4 = vpop.permute.xlu1 %923 }
 0x145   : > { %941 = vst.msk [vmem:[#allocation3 + $0x1c] sm:$0xf] %vm933_vm1, %v924_v4  ;;  %v610_v31 = vpop.permute.xlu2 %609  ;;  %v810_v42 = vsel %vm1753_vm13, %v805_v32, %v809_v62  ;;  %v1289_v4 = vsel %vm1740_vm12, %v1530_v22, %v1288_v24  ;;  %v454_v32 = vld [vmem:[#allocation2 + $0x18] sm:$0xf] }
 0x146   : > { %701 = vrot.lane.b32.xlu0 %v674_v26, %s1650_s30  ;;  %1038 = vst.msk [vmem:[#allocation3 + $0x1c] sm:$0xf] %vm1030_vm3, %v1898_v35  ;;  %v943_v35 = vld [vmem:[#allocation2 + $0xc] sm:$0x1] }
 0x147   : > { %1088 = vst.msk [vmem:[#allocation3 + $0x1c] sm:$0xf] %vm1080_vm4, %v1906_v52  ;;  %v976_v48 = vrot.slane %v943_v35, 5 }
 0x148   : > { %v922_v38 = vpop.permute.xlu0 %921  ;;  %629 = vst.msk [vmem:[#allocation3 + $0x14] sm:$0xf] %vm623_vm14, %v610_v31 }
 0x149   : > { %940 = vst.msk [vmem:[#allocation3 + $0x18] sm:$0xf] %vm933_vm1, %v922_v38 }
 0x14a   : > { %1037 = vst.msk [vmem:[#allocation3 + $0x18] sm:$0xf] %vm1030_vm3, %v1893_v27  ;;  %911 = vrot.lane.b32.xlu1 %v824_v33, %s1653_s6  ;;  %v1521_v27 = vrot.slane %v942_v40, 9 }
 0x14b   : > { %1087 = vst.msk [vmem:[#allocation3 + $0x18] sm:$0xf] %vm1080_vm4, %v1891_v23  ;;  %750 = vrot.lane.b32.xlu2 %v733_v7, %s1651_s4  ;;  %v1040_v23 = vld [vmem:[#allocation2 + $0x10] sm:$0xf] }
 0x14c   : > { %v1232_v52 = vpop.permute.xlu1 %1231  ;;  %v977_v1 = vsel %vm1740_vm12, %v1521_v27, %v976_v48  ;;  %463 = vst.msk [vmem:[#allocation3 + $0xc] sm:$0xf] %vm397_vm2, %v454_v32  ;;  %vm1405_vm2 = vcmask 523264  }
 0x14d   : > { %1249 = vst.msk [vmem:[#allocation3 + $0x1c] sm:$0xf] %vm1241_vm5, %v1232_v52  ;;  %v757_v54 = vpop.permute.xlu2 %756 }
 0x14e   : > { %909 = vrot.lane.b32.xlu0 %v810_v42, %s1653_s6 }
 0x150   : > { %v1230_v61 = vpop.permute.xlu0 %1229 }
 0x151   : > { %1248 = vst.msk [vmem:[#allocation3 + $0x18] sm:$0xf] %vm1241_vm5, %v1230_v61 }
 0x152   : > { %1345 = vst.msk [vmem:[#allocation3 + $0x18] sm:$0xf] %vm1338_vm6, %v1922_v15  ;;  %1056 = vrot.lane.b32.xlu1 %v1040_v23, %s1648_s28  ;;  %v1041_v15 = vld [vmem:[#allocation2 + $0x18] sm:$0xf] }
 0x153   : > { %1006 = vrot.lane.b32.xlu2 %v977_v1, %s1649_s29 }
 0x154   : > { %v608_v9 = vpop.permute.xlu1 %607 }
 0x155   : > { %628 = vst.msk [vmem:[#allocation3 + $0x10] sm:$0xf] %vm623_vm14, %v608_v9  ;;  %v920_v10 = vpop.permute.xlu2 %919 }
 0x156   : > { %1008 = vrot.lane.b32.xlu0 %v981_v2, %s1649_s29 }
 0x158   : > { %v1329_v13 = vpop.permute.xlu0 %1328 }
 0x159   : > { %1346 = vst.msk [vmem:[#allocation3 + $0x1c] sm:$0xf] %vm1338_vm6, %v1329_v13 }
 0x15a   : > { %1219 = vrot.lane.b32.xlu1 %v1132_v12, %s1654_s7 }
 0x15b   : > { %1058 = vrot.lane.b32.xlu2 %v1041_v15, %s1648_s28 }
 0x15c   : > { %v710_v41 = vpop.permute.xlu1 %709 }
 0x15d   : > { %729 = vst.msk [vmem:[#allocation3 + $0x14] sm:$0xf] %vm723_vm15, %v710_v41  ;;  %v1065_v21 = vpop.permute.xlu2 %1064  ;;  %v1347_v41 = vld [vmem:[%s2046_s1] sm:$0xf] }
 0x15e   : > { %1217 = vrot.lane.b32.xlu0 %v1118_v17, %s1654_s7 }
 0x160   : > { %v708_v25 = vpop.permute.xlu0 %707  ;;  %v1560_v26 = vld [vmem:[#allocation3 + $0x18] sm:$0xff] }
 0x161   : > { %728 = vst.msk [vmem:[#allocation3 + $0x10] sm:$0xf] %vm723_vm15, %v708_v25  ;;  %v1390_v29 = vsel %vm1376_vm7, %v1560_v26, 0 }
 0x162   : > { %777 = vst.msk [vmem:[#allocation3 + $0x10] sm:$0xf] %vm772_vm0, %v757_v54  ;;  %1396 = vmatpush.bf16.xpose.msra.mxu0 %v1390_v29 }
 0x163   : > { %1314 = vrot.lane.b32.xlu2 %v1285_v14, %s1655_s8 }
 0x164   : > { %v918_v30 = vpop.permute.xlu1 %917 }
 0x165   : > { %938 = vst.msk [vmem:[#allocation3 + $0x10] sm:$0xf] %vm933_vm1, %v918_v30  ;;  %v1228_v31 = vpop.permute.xlu2 %1227 }
 0x166   : > { %1316 = vrot.lane.b32.xlu0 %v1289_v4, %s1655_s8 }
 0x168   : > { %v759_v62 = vpop.permute.xlu0 %758 }
 0x169   : > { %778 = vst.msk [vmem:[#allocation3 + $0x14] sm:$0xf] %vm772_vm0, %v759_v62 }
 0x16a   : > { %939 = vst.msk [vmem:[#allocation3 + $0x14] sm:$0xf] %vm933_vm1, %v920_v10 }
 0x16c   : > { %v1017_v34 = vpop.permute.xlu1 %1016 }
 0x16d   : > { %1036 = vst.msk [vmem:[#allocation3 + $0x14] sm:$0xf] %vm1030_vm3, %v1017_v34  ;;  %v604_v33 = vpop.permute.xlu2 %603 }
 0x16e   : > { %626 = vst.msk [vmem:[#allocation3 + $0x8] sm:$0xf] %vm623_vm14, %v604_v33 }
 0x170   : > { %v1015_v36 = vpop.permute.xlu0 %1014 }
 0x171   : > { %1035 = vst.msk [vmem:[#allocation3 + $0x10] sm:$0xf] %vm1030_vm3, %v1015_v36 }
 0x172   : > { %1085 = vst.msk [vmem:[#allocation3 + $0x10] sm:$0xf] %vm1080_vm4, %v1065_v21 }
 0x174   : > { %v1226_v37 = vpop.permute.xlu1 %1225 }
 0x175   : > { %1246 = vst.msk [vmem:[#allocation3 + $0x10] sm:$0xf] %vm1241_vm5, %v1226_v37  ;;  %v706_v38 = vpop.permute.xlu2 %705 }
 0x178   : > { %v1067_v39 = vpop.permute.xlu0 %1066 }
 0x179   : > { %1086 = vst.msk [vmem:[#allocation3 + $0x14] sm:$0xf] %vm1080_vm4, %v1067_v39 }
 0x17a   : > { %1247 = vst.msk [vmem:[#allocation3 + $0x14] sm:$0xf] %vm1241_vm5, %v1228_v31 }
 0x17c   : > { %v1325_v7 = vpop.permute.xlu1 %1324 }
 0x17d   : > { %1344 = vst.msk [vmem:[#allocation3 + $0x14] sm:$0xf] %vm1338_vm6, %v1325_v7  ;;  %v914_v40 = vpop.permute.xlu2 %913 }
 0x180   : > { %v1323_v35 = vpop.permute.xlu0 %1322 }
 0x181   : > { %1343 = vst.msk [vmem:[#allocation3 + $0x10] sm:$0xf] %vm1338_vm6, %v1323_v35 }
 0x184   : > { %v704_v42 = vpop.permute.xlu1 %703 }
 0x185   : > { %726 = vst.msk [vmem:[#allocation3 + $0x8] sm:$0xf] %vm723_vm15, %v704_v42  ;;  %v1013_v45 = vpop.permute.xlu2 %1012 }
 0x188   : > { %v606_v43 = vpop.permute.xlu0 %605  ;;  %v1559_v44 = vld [vmem:[#allocation3 + $0x10] sm:$0xff] }
 0x189   : > { %627 = vst.msk [vmem:[#allocation3 + $0xc] sm:$0xf] %vm623_vm14, %v606_v43  ;;  %v1387_v46 = vsel %vm1376_vm7, %v1559_v44, 0 }
 0x18a   : > { %727 = vst.msk [vmem:[#allocation3 + $0xc] sm:$0xf] %vm723_vm15, %v706_v38  ;;  %1397 = vmatpush.bf16.xpose.msra.mxu0 %v1387_v46 }
 0x18c   : > { %v755_v51 = vpop.permute.xlu1 %754 }
 0x18d   : > { %776 = vst.msk [vmem:[#allocation3 + $0xc] sm:$0xf] %vm772_vm0, %v755_v51  ;;  %v1222_v27 = vpop.permute.xlu2 %1221 }
 0x190   : > { %v753_v52 = vpop.permute.xlu0 %752 }
 0x191   : > { %775 = vst.msk [vmem:[#allocation3 + $0x8] sm:$0xf] %vm772_vm0, %v753_v52 }
 0x192   : > { %936 = vst.msk [vmem:[#allocation3 + $0x8] sm:$0xf] %vm933_vm1, %v914_v40 }
 0x194   : > { %v1011_v48 = vpop.permute.xlu1 %1010 }
 0x195   : > { %1033 = vst.msk [vmem:[#allocation3 + $0x8] sm:$0xf] %vm1030_vm3, %v1011_v48  ;;  %v1321_v56 = vpop.permute.xlu2 %1320 }
 0x198   : > { %v916_v54 = vpop.permute.xlu0 %915 }
 0x199   : > { %937 = vst.msk [vmem:[#allocation3 + $0xc] sm:$0xf] %vm933_vm1, %v916_v54 }
 0x19a   : > { %1034 = vst.msk [vmem:[#allocation3 + $0xc] sm:$0xf] %vm1030_vm3, %v1013_v45 }
 0x19c   : > { %v1063_v55 = vpop.permute.xlu1 %1062 }
 0x19d   : > { %1084 = vst.msk [vmem:[#allocation3 + $0xc] sm:$0xf] %vm1080_vm4, %v1063_v55  ;;  %v700_v58 = vpop.permute.xlu2 %699 }
 0x1a0   : > { %v1061_v23 = vpop.permute.xlu0 %1060 }
 0x1a1   : > { %1083 = vst.msk [vmem:[#allocation3 + $0x8] sm:$0xf] %vm1080_vm4, %v1061_v23 }
 0x1a2   : > { %1244 = vst.msk [vmem:[#allocation3 + $0x8] sm:$0xf] %vm1241_vm5, %v1222_v27 }
 0x1a4   : > { %v1319_v57 = vpop.permute.xlu1 %1318 }
 0x1a5   : > { %1341 = vst.msk [vmem:[#allocation3 + $0x8] sm:$0xf] %vm1338_vm6, %v1319_v57  ;;  %v751_v1 = vpop.permute.xlu2 %750 }
 0x1a8   : > { %v1224_v59 = vpop.permute.xlu0 %1223 }
 0x1a9   : > { %1245 = vst.msk [vmem:[#allocation3 + $0xc] sm:$0xf] %vm1241_vm5, %v1224_v59 }
 0x1aa   : > { %1342 = vst.msk [vmem:[#allocation3 + $0xc] sm:$0xf] %vm1338_vm6, %v1321_v56 }
 0x1ac   : > { %v602_v60 = vpop.permute.xlu1 %601 }
 0x1ad   : > { %625 = vst.msk [vmem:[#allocation3 + $0x4] sm:$0xf] %vm623_vm14, %v602_v60  ;;  %v1007_v6 = vpop.permute.xlu2 %1006 }
 0x1b0   : > { %v600_v61 = vpop.permute.xlu0 %599 }
 0x1b1   : > { %624 = vst.msk [vmem:[#allocation3] sm:$0xf] %vm623_vm14, %v600_v61  ;;  %v1558_v0 = vld [vmem:[#allocation3 + $0x8] sm:$0xff] }
 0x1b2   : > { %724 = vst.msk [vmem:[#allocation3] sm:$0xf] %vm723_vm15, %v700_v58  ;;  %v1384_v2 = vsel %vm1376_vm7, %v1558_v0, 0 }
 0x1b3   : > { %1398 = vmatpush.bf16.xpose.msra.mxu0 %v1384_v2 }
 0x1b4   : > { %v749_v3 = vpop.permute.xlu1 %748 }
 0x1b5   : > { %773 = vst.msk [vmem:[#allocation3] sm:$0xf] %vm772_vm0, %v749_v3  ;;  %v1059_v11 = vpop.permute.xlu2 %1058 }
 0x1b8   : > { %v702_v5 = vpop.permute.xlu0 %701 }
 0x1b9   : > { %725 = vst.msk [vmem:[#allocation3 + $0x4] sm:$0xf] %vm723_vm15, %v702_v5 }
 0x1ba   : > { %774 = vst.msk [vmem:[#allocation3 + $0x4] sm:$0xf] %vm772_vm0, %v751_v1 }
 0x1bc   : > { %v912_v8 = vpop.permute.xlu1 %911 }
 0x1bd   : > { %935 = vst.msk [vmem:[#allocation3 + $0x4] sm:$0xf] %vm933_vm1, %v912_v8  ;;  %v1315_v13 = vpop.permute.xlu2 %1314 }
 0x1c0   : > { %v910_v9 = vpop.permute.xlu0 %909 }
 0x1c1   : > { %934 = vst.msk [vmem:[#allocation3] sm:$0xf] %vm933_vm1, %v910_v9 }
 0x1c2   : > { %1031 = vst.msk [vmem:[#allocation3] sm:$0xf] %vm1030_vm3, %v1007_v6 }
 0x1c4   : > { %v1057_v10 = vpop.permute.xlu1 %1056 }
 0x1c5   : > { %1081 = vst.msk [vmem:[#allocation3] sm:$0xf] %vm1080_vm4, %v1057_v10 }
 0x1c8   : > { %v1009_v47 = vpop.permute.xlu0 %1008 }
 0x1c9   : > { %1032 = vst.msk [vmem:[#allocation3 + $0x4] sm:$0xf] %vm1030_vm3, %v1009_v47 }
 0x1ca   : > { %1082 = vst.msk [vmem:[#allocation3 + $0x4] sm:$0xf] %vm1080_vm4, %v1059_v11 }
 0x1cc   : > { %v1220_v12 = vpop.permute.xlu1 %1219 }
 0x1cd   : > { %1243 = vst.msk [vmem:[#allocation3 + $0x4] sm:$0xf] %vm1241_vm5, %v1220_v12 }
 0x1d0   : > { %v1218_v15 = vpop.permute.xlu0 %1217 }
 0x1d1   : > { %1242 = vst.msk [vmem:[#allocation3] sm:$0xf] %vm1241_vm5, %v1218_v15 }
 0x1d2   : > { %1339 = vst.msk [vmem:[#allocation3] sm:$0xf] %vm1338_vm6, %v1315_v13 }
 0x1d8   : > { %v1317_v49 = vpop.permute.xlu0 %1316 }
 0x1d9   : > { %1340 = vst.msk [vmem:[#allocation3 + $0x4] sm:$0xf] %vm1338_vm6, %v1317_v49 }
 0x1e0   : > { %v1557_v16 = vld [vmem:[#allocation3] sm:$0xff] }
 0x1e1   : > { %v1381_v17 = vsel %vm1376_vm7, %v1557_v16, 0 }
 0x1e2   : > { %1399 = vmatpush.bf16.xpose.msra.mxu0 %v1381_v17 }
 0x1e9   : > { %1553 = vmatmul.msk.bf16.vlgmr.msra.gmra.mxu0 %vm1376_vm7, %v1347_v41 }
 0x266   : > { %v1401_v63 = vpop.f32.mrf.mxu0 }
 0x267   : > { %v1407_v18 = vsel %vm1405_vm2, %v1401_v63, 0.0  ;;  %1406 = vst.msk [vmem:[%s1695_s24] sm:$0xff] %vm1405_vm2, %v1401_v63  ;;  %v1412_v19 = vmul.f32 %v1401_v63, %v1401_v63 }
 0x268   : > { %1408 = vadd.xlane.f32.xlu1 %v1407_v18 }
 0x269   : > { %v1413_v20 = vsel %vm1405_vm2, %v1412_v19, 0.0 }
 0x26a   : > { %1414 = vadd.xlane.f32.xlu2 %v1413_v20 }
 0x26e   : > { %v1403_v21 = vpop.f32.mrf.mxu0 }
 0x2db   : > { %v1409_v22 = vpop.xlane.xlu1 %1408 }
 0x2dc   : > { %1411 = vst.msk [vmem:[%s1700_s27] sm:$0xff] %vm1410_vm8, %v1409_v22 }
 0x2dd   : > { %v1415_v24 = vpop.xlane.xlu2 %1414 }
 0x2de   : > { %1417 = vst.msk [vmem:[%s1700_s27] sm:$0xff] %vm1416_vm9, %v1415_v24 }
 0x2df PF: > { %s14_s12 = sadd.s32 1, %s1644_s12  }
 0x2e0   : > { %p11_p6 = scmp.ge.s32.totalorder %s14_s12, 4  }
 0x2e2   :  { %13 = sbr.rel (!%p11_p6) target bundleno = 1 (0x1), region = 76 }

// kernel: unet_down.4
= control target key start
LH: loop header
LB: loop body
LE: loop exit
PB: predicated region body
PF: predicated region fallthrough
CT: control target
= control target key end

     0   :  { %s1624_s18 = smov 0   ;;  %s2001_s0 = inlined_call_operand.vmem [shape: f32[2,8,64], index: 0, kind: input, shape index: {}]   ;;  %s2002_s1 = inlined_call_operand.vmem [shape: f32[8,1], index: 1, kind: input, shape index: {}]   ;;  %s2003_s2 = inlined_call_operand.vmem [shape: f32[8,1], index: 2, kind: input, shape index: {}]   ;;  %s2004_s3 = inlined_call_operand.vmem [shape: bf16[8,72], index: 3, kind: input, shape index: {}]   ;;  %s2005_s4 = inlined_call_operand.vmem [shape: f32[2,8,64], index: 4, kind: output, shape index: {0}]   ;;  %s2006_s5 = inlined_call_operand.vmem [shape: f32[2,8,2], index: 5, kind: output, shape index: {1}]  }
   0x1 LB: > { %s1630_s19 = sadd.s32 4294967295, %s1582_s18   ;;  %p1504_p0 = scmp.ge.s32.totalorder %s1582_s18, 1  ;;  %s1582_s18 = sphi %s1624_s18, %s16_s18  }
   0x2   : > { %p189_p1 = scmp.lt.s32.totalorder %s1582_s18, 3 }
   0x4   : > { %p190_p2 = pnand %p1504_p0, %p189_p1 }
   0x5   : > { %p219_p3 = scmp.lt.s32.totalorder (!%p190_p2), %s1630_s19, 1  ;;  %p1508_p4 = scmp.ne.s32.totalorder (!%p190_p2), %s1630_s19, 0 }
   0x6   : > { %193 = sbr.rel (%p190_p2) target bundleno = 947 (0x3b3), region = 36 }
   0xb   : > { %v233_v0 = vld [vmem:[%s2002_s1] sm:$0xff]  ;;  %v1584_v1 = vmov 0   ;;  %s220_s22 = scalar_select %p219_p3, %s1630_s19, 1 }
   0xc   : > { %1575 = vset.pattern.permute.xlu0 %v1584_v1  ;;  %v240_v2 = vld [vmem:[%s2003_s2] sm:$0xff] }
   0xd   : > { %236 = vperm.xlu0 %1575, %v233_v0   ;;  %s1639_s23 = sshll.u32 %s220_s22, 3 }
   0xe   : > { %s226_s26 = scalar_lea.vmem %s2005_s4, %s1639_s23  ;;  %s1649_s29 = scalar_lea.vmem %s2006_s5, %s1639_s23 }
   0xf   : > { %s222_s9 = scalar_lea.vmem %s2001_s0, %s1639_s23 }
  0x10   : > { %v232_v4 = vld [vmem:[%s222_s9] sm:$0xff] }
  0x15   : > { %243 = vperm.xlu0 %1575, %v240_v2  }
  0x7f   : > { %v237_v3 = vpop.permute.xlu0 %236 }
  0x80   : > { %v239_v5 = vmul.f32 %v237_v3, %v232_v4 }
  0x87   : > { %v244_v6 = vpop.permute.xlu0 %243 }
  0x88   : > { %v246_v7 = vadd.f32 %v244_v6, %v239_v5 }
  0x8a   : > { %v247_v8 = vmax.f32 %v246_v7, 0.0 }
  0x8c   : > { %248 = vxpose.xlu1.b32.start.end [1/1] (short) (narrow) %v247_v8, 64 }
 0x130   : > { %v264_v9 = vpop.trf.xlu1 }
 0x131   : > { %v1658_v10 = vpack.c.bf16 %v264_v9, %v264_v9 }
 0x138   : > { %v265_v11 = vpop.trf.xlu1 }
 0x139   : > { %v1660_v12 = vpack.c.bf16 %v265_v11, %v265_v11 }
 0x140   : > { %v266_v13 = vpop.trf.xlu1 }
 0x141   : > { %v1662_v14 = vpack.c.bf16 %v266_v13, %v266_v13 }
 0x148   : > { %v267_v15 = vpop.trf.xlu1 }
 0x149   : > { %v1664_v16 = vpack.c.bf16 %v267_v15, %v267_v15 }
 0x150   : > { %v268_v17 = vpop.trf.xlu1 }
 0x151   : > { %v1666_v18 = vpack.c.bf16 %v268_v17, %v268_v17 }
 0x158   : > { %v269_v19 = vpop.trf.xlu1 }
 0x159   : > { %v285_v20 = vpack.c.bf16 %v269_v19, %v269_v19 }
 0x160   : > { %v270_v21 = vpop.trf.xlu1 }
 0x161   : > { %v286_v22 = vpack.c.bf16 %v270_v21, %v270_v21 }
 0x165   : > { %291 = sbr.rel (%p1508_p4) target bundleno = 383 (0x17f), region = 40 }
 0x168   : > { %v271_v23 = vpop.trf.xlu1 }
 0x169   : > { %v287_v24 = vpack.c.bf16 %v271_v23, %v271_v23 }
 0x16a   : > { %vm292_vm0 = vcmask 60416   ;;  %v1585_v25 = vmov 0   ;;  %vm294_vm1 = vcmask 57344  }
 0x16b   : > { %293 = vst.msk [vmem:[#allocation2] sm:$0xf] %vm292_vm0, %v1585_v25 }
 0x16c   : > { %296 = vst.msk [vmem:[#allocation2 + $0x8] sm:$0xf] %vm292_vm0, %v1585_v25 }
 0x16d   : > { %298 = vst.msk [vmem:[#allocation2 + $0x10] sm:$0xf] %vm292_vm0, %v1585_v25 }
 0x16e   : > { %300 = vst.msk [vmem:[#allocation2 + $0x18] sm:$0xf] %vm292_vm0, %v1585_v25 }
 0x16f   : > { %302 = vst.msk [vmem:[#allocation2 + $0x20] sm:$0xf] %vm292_vm0, %v1585_v25 }
 0x170   : > { %304 = vst.msk [vmem:[#allocation2 + $0x28] sm:$0xf] %vm292_vm0, %v1585_v25 }
 0x171   : > { %306 = vst.msk [vmem:[#allocation2 + $0x30] sm:$0xf] %vm292_vm0, %v1585_v25 }
 0x172   : > { %308 = vst.msk [vmem:[#allocation2 + $0x38] sm:$0xf] %vm292_vm0, %v1585_v25 }
 0x173   : > { %310 = vst.msk [vmem:[#allocation2 + $0x40] sm:$0xf] %vm292_vm0, %v1585_v25 }
 0x174   : > { %312 = vst.msk [vmem:[#allocation2 + $0x48] sm:$0xf] %vm292_vm0, %v1585_v25 }
 0x175   : > { %295 = vst.msk [vmem:[#allocation2 + $0x4] sm:$0x1] %vm294_vm1, %v1585_v25 }
 0x176   : > { %297 = vst.msk [vmem:[#allocation2 + $0xc] sm:$0x1] %vm294_vm1, %v1585_v25 }
 0x177   : > { %299 = vst.msk [vmem:[#allocation2 + $0x14] sm:$0x1] %vm294_vm1, %v1585_v25 }
 0x178   : > { %301 = vst.msk [vmem:[#allocation2 + $0x1c] sm:$0x1] %vm294_vm1, %v1585_v25 }
 0x179   : > { %303 = vst.msk [vmem:[#allocation2 + $0x24] sm:$0x1] %vm294_vm1, %v1585_v25 }
 0x17a   : > { %305 = vst.msk [vmem:[#allocation2 + $0x2c] sm:$0x1] %vm294_vm1, %v1585_v25 }
 0x17b   : > { %307 = vst.msk [vmem:[#allocation2 + $0x34] sm:$0x1] %vm294_vm1, %v1585_v25 }
 0x17c   : > { %309 = vst.msk [vmem:[#allocation2 + $0x3c] sm:$0x1] %vm294_vm1, %v1585_v25 }
 0x17d   : > { %311 = vst.msk [vmem:[#allocation2 + $0x44] sm:$0x1] %vm294_vm1, %v1585_v25 }
 0x17e   : > { %313 = vst.msk [vmem:[#allocation2 + $0x4c] sm:$0x1] %vm294_vm1, %v1585_v25 }
 0x17f PF: > { %v371_v26 = vshrl.u32 %v287_v24, 16  ;;  %v374_v27 = vshll.u32 %v287_v24, 16  ;;  %vm395_vm2 = vcmask 60416   ;;  %vm396_vm3 = vsmask.f32 7938  ;;  %s1586_s10 = smov 48  }
 0x180   : > { %vm401_vm4 = vcmask 57344   ;;  %vm402_vm5 = vsmask.f32 256  ;;  %vm1670_vm6 = vmand %vm395_vm2, %vm396_vm3  ;;  %v355_v30 = vshrl.u32 %v285_v20, 16  ;;  %v443_v31 = vld [vmem:[#allocation2 + $0x40] sm:$0xf] }
 0x181   : > { %v373_v28 = vrot.slane %v371_v26, 7  ;;  %vm1674_vm7 = vmand %vm401_vm4, %vm402_vm5  ;;  %v358_v34 = vshll.u32 %v285_v20, 16  ;;  %v431_v38 = vld [vmem:[#allocation2 + $0x30] sm:$0xf]  ;;  %v363_v40 = vshrl.u32 %v286_v22, 16  ;;  %v366_v41 = vshll.u32 %v286_v22, 16 }
 0x182   : > { %v357_v37 = vrot.slane %v355_v30, 7  ;;  %v434_v39 = vld [vmem:[#allocation2 + $0x34] sm:$0x1]  ;;  %v437_v49 = vld [vmem:[#allocation2 + $0x38] sm:$0xf]  ;;  %v339_v55 = vshrl.u32 %v1664_v16, 16 }
 0x183   : > { %v376_v35 = vor.u32 %v374_v27, %v373_v28  ;;  %v377_v36 = vrot.slane %v373_v28, 4  ;;  %v365_v46 = vrot.slane %v363_v40, 7  ;;  %v440_v50 = vld [vmem:[#allocation2 + $0x3c] sm:$0x1]  ;;  %vm662_vm8 = vcmask 1042432   ;;  %s1587_s11 = smov 40  }
 0x184   : > { %v446_v33 = vld [vmem:[#allocation2 + $0x44] sm:$0x1]  ;;  %v360_v44 = vor.u32 %v358_v34, %v357_v37  ;;  %v361_v45 = vrot.slane %v357_v37, 4  ;;  %vm663_vm9 = vcmask 1046532   ;;  %vm482_vm10 = vsmask.f32 3328 }
 0x185   : > { %v444_v42 = vsel %vm1670_vm6, %v376_v35, %v443_v31  ;;  %v447_v43 = vsel %vm1674_vm7, %v377_v36, %v446_v33  ;;  %v368_v51 = vor.u32 %v366_v41, %v365_v46  ;;  %v369_v52 = vrot.slane %v365_v46, 4  ;;  %vm1692_vm12 = vmor %vm662_vm8, %vm663_vm9  ;;  %v419_v20 = vld [vmem:[#allocation2 + $0x20] sm:$0xf]  ;;  %v1101_v24 = vld [vmem:[#allocation2 + $0x48] sm:$0xf]  ;;  %s1588_s12 = smov 16  }
 0x186   : > { %445 = vst [vmem:[#allocation2 + $0x40] sm:$0xf] %v444_v42  ;;  %v432_v47 = vsel %vm1670_vm6, %v360_v44, %v431_v38  ;;  %v435_v48 = vsel %vm1674_vm7, %v361_v45, %v434_v39  ;;  %vm483_vm11 = vsmask.f32 7440  ;;  %v341_v62 = vrot.slane %v339_v55, 7  ;;  %s1589_s13 = smov 24  }
 0x187   : > { %448 = vst [vmem:[#allocation2 + $0x44] sm:$0x1] %v447_v43  ;;  %v438_v53 = vsel %vm1670_vm6, %v368_v51, %v437_v49  ;;  %v441_v54 = vsel %vm1674_vm7, %v369_v52, %v440_v50  ;;  %v342_v63 = vshll.u32 %v1664_v16, 16  ;;  %v422_v27 = vld [vmem:[#allocation2 + $0x24] sm:$0x1]  ;;  %vm1705_vm13 = vmor %vm482_vm10, %vm483_vm11  ;;  %v1202_v51 = vshrl.u32 %v1101_v24, 16 }
 0x188   : > { %433 = vst [vmem:[#allocation2 + $0x30] sm:$0xf] %v432_v47  ;;  %v345_v26 = vrot.slane %v341_v62, 4  ;;  %v1205_v55 = vshll.u32 %v1101_v24, 16  ;;  %s1590_s14 = smov 8   ;;  %s1591_s15 = smov 32  }
 0x189   : > { %436 = vst [vmem:[#allocation2 + $0x34] sm:$0x1] %v435_v48  ;;  %v344_v25 = vor.u32 %v342_v63, %v341_v62  ;;  %s1592_s16 = smov 56   ;;  %s1593_s17 = smov 64   ;;  %vm621_vm14 = vcmask 126016   ;;  %vm721_vm15 = vcmask 191616  }
 0x18a   : > { %439 = vst [vmem:[#allocation2 + $0x38] sm:$0xf] %v438_v53  ;;  %v423_v52 = vsel %vm1674_vm7, %v345_v26, %v422_v27  ;;  %v425_v26 = vld [vmem:[#allocation2 + $0x28] sm:$0xf]  ;;  %vm770_vm0 = vcmask 257216   ;;  %vm931_vm1 = vcmask 322816  }
 0x18b   : > { %442 = vst [vmem:[#allocation2 + $0x3c] sm:$0x1] %v441_v54  ;;  %v420_v48 = vsel %vm1670_vm6, %v344_v25, %v419_v20  ;;  %vm1028_vm3 = vcmask 388416   ;;  %vm1078_vm4 = vcmask 454016   ;;  %vm1239_vm5 = vcmask 519616  }
 0x18c   : > { %421 = vst [vmem:[#allocation2 + $0x20] sm:$0xf] %v420_v48  ;;  %vm1408_vm8 = vcmask 7168   ;;  %vm1414_vm9 = vcmask 15368  }
 0x18d   : > { %v1044_v56 = vld [vmem:[#allocation2 + $0x40] sm:$0xf]  ;;  %424 = vst [vmem:[#allocation2 + $0x24] sm:$0x1] %v423_v52 }
 0x18e   : > { %v954_v57 = vld [vmem:[#allocation2 + $0x40] sm:$0xe]  ;;  %1066 = vrot.lane.b32.xlu1 %v1044_v56, %s1586_s10  ;;  %v955_v60 = vld [vmem:[#allocation2 + $0x44] sm:$0x1] }
 0x18f   : > { %v793_v58 = vld [vmem:[#allocation2 + $0x40] sm:$0xf]  ;;  %v1524_v61 = vrot.slane %v954_v57, 9  ;;  %v1002_v0 = vrot.slane %v955_v60, 5  ;;  %v642_v1 = vld [vmem:[#allocation2 + $0x30] sm:$0xe] }
 0x190   : > { %v478_v2 = vld [vmem:[#allocation2 + $0x30] sm:$0xf]  ;;  %v894_v3 = vshrl.u32 %v793_v58, 16  ;;  %v643_v4 = vld [vmem:[#allocation2 + $0x34] sm:$0x1]  ;;  %v1515_v5 = vrot.slane %v642_v1, 9 }
 0x191   : > { %v479_v6 = vld [vmem:[#allocation2 + $0x34] sm:$0x1]  ;;  %v570_v7 = vshrl.u32 %v478_v2, 16  ;;  %v1003_v8 = vsel %vm1692_vm12, %v1524_v61, %v1002_v0  ;;  %v691_v9 = vrot.slane %v643_v4, 5  ;;  %v573_v11 = vshll.u32 %v478_v2, 16 }
 0x192   : > { %v579_v13 = vshll.u32 %v479_v6, 16  ;;  %1018 = vrot.lane.b32.xlu0 %v1003_v8, %s1587_s11  ;;  %v644_v17 = vld [vmem:[#allocation2 + $0x38] sm:$0xe]  ;;  %v897_v19 = vshll.u32 %v793_v58, 16  ;;  %v645_v23 = vld [vmem:[#allocation2 + $0x3c] sm:$0x1] }
 0x193   : > { %v572_v15 = vrot.slane %v570_v7, 4  ;;  %v480_v16 = vld [vmem:[#allocation2 + $0x38] sm:$0xf]  ;;  %v692_v21 = vsel %vm1692_vm12, %v1515_v5, %v691_v9  ;;  %v575_v22 = vrot.slane %v573_v11, 5  ;;  %v481_v28 = vld [vmem:[#allocation2 + $0x3c] sm:$0x1] }
 0x194   : > { %v584_v30 = vshrl.u32 %v480_v16, 16  ;;  %v587_v31 = vshll.u32 %v480_v16, 16  ;;  %v794_v33 = vld [vmem:[#allocation2 + $0x44] sm:$0x1]  ;;  %v581_v35 = vrot.slane %v579_v13, 5  ;;  %v1516_v36 = vrot.slane %v644_v17, 9 }
 0x195   : > { %v576_v34 = vor.u32 %v575_v22, %v572_v15  ;;  %v896_v37 = vrot.slane %v894_v3, 4  ;;  %v791_v38 = vld [vmem:[#allocation2 + $0x38] sm:$0xf]  ;;  %v695_v40 = vrot.slane %v645_v23, 5  ;;  %v899_v43 = vrot.slane %v897_v19, 5 }
 0x196   : > { %709 = vrot.lane.b32.xlu1 %v692_v21, %s1588_s12  ;;  %v586_v41 = vrot.slane %v584_v30, 4  ;;  %v589_v42 = vrot.slane %v587_v31, 5  ;;  %v736_v44 = vld [vmem:[#allocation2 + $0x38] sm:$0xf]  ;;  %v593_v46 = vshll.u32 %v481_v28, 16  ;;  %v880_v47 = vshrl.u32 %v791_v38, 16 }
 0x197   : > { %v577_v45 = vrot.slane %v576_v34, 4  ;;  %758 = vrot.lane.b32.xlu2 %v736_v44, %s1589_s13  ;;  %v883_v50 = vshll.u32 %v791_v38, 16  ;;  %v903_v54 = vshll.u32 %v794_v33, 16  ;;  %v696_v56 = vsel %vm1692_vm12, %v1516_v36, %v695_v40  ;;  %v1099_v58 = vld [vmem:[#allocation2 + $0x40] sm:$0xf] }
 0x198   : > { %v590_v49 = vor.u32 %v589_v42, %v586_v41  ;;  %v900_v57 = vor.u32 %v899_v43, %v896_v37  ;;  %v595_v61 = vrot.slane %v593_v46, 5  ;;  %v882_v62 = vrot.slane %v880_v47, 4  ;;  %v792_v0 = vld [vmem:[#allocation2 + $0x3c] sm:$0x1]  ;;  %v737_v2 = vld [vmem:[#allocation2 + $0x40] sm:$0xf] }
 0x199   : > { %v582_v53 = vsel %vm1705_vm13, %v577_v45, %v581_v35  ;;  %v885_v63 = vrot.slane %v883_v50, 5  ;;  %v1204_v1 = vrot.slane %v1202_v51, 4  ;;  %v905_v3 = vrot.slane %v903_v54, 5  ;;  %v952_v5 = vld [vmem:[#allocation2 + $0x38] sm:$0xe] }
 0x19a   : > { %609 = vrot.lane.b32.xlu0 %v582_v53, %s1590_s14  ;;  %v591_v60 = vrot.slane %v590_v49, 4  ;;  %v1207_v4 = vrot.slane %v1205_v55, 5  ;;  %v953_v6 = vld [vmem:[#allocation2 + $0x3c] sm:$0x1]  ;;  %v901_v7 = vrot.slane %v900_v57, 4  ;;  %v1188_v9 = vshrl.u32 %v1099_v58, 16 }
 0x19b   : > { %v1102_v8 = vld [vmem:[#allocation2 + $0x4c] sm:$0x1]  ;;  %v1191_v11 = vshll.u32 %v1099_v58, 16  ;;  %v347_v13 = vshrl.u32 %v1666_v18, 16  ;;  %v886_v17 = vor.u32 %v885_v63, %v882_v62  ;;  %v889_v16 = vshll.u32 %v792_v0, 16 }
 0x19c   : > { %v596_v15 = vsel %vm1705_vm13, %v591_v60, %v595_v61  ;;  %v350_v19 = vshll.u32 %v1666_v18, 16  ;;  %v1523_v20 = vrot.slane %v952_v5, 9  ;;  %v998_v21 = vrot.slane %v953_v6, 5  ;;  %v474_v25 = vld [vmem:[#allocation2 + $0x20] sm:$0xf] }
 0x19d   : > { %v349_v22 = vrot.slane %v347_v13, 7  ;;  %v1208_v23 = vor.u32 %v1207_v4, %v1204_v1  ;;  %v1211_v24 = vshll.u32 %v1102_v8, 16  ;;  %v906_v27 = vsel %vm1705_vm13, %v901_v7, %v905_v3  ;;  %v1100_v28 = vld [vmem:[#allocation2 + $0x44] sm:$0x1]  ;;  %v428_v37 = vld [vmem:[#allocation2 + $0x2c] sm:$0x1] }
 0x19e   : > { %711 = vrot.lane.b32.xlu1 %v696_v56, %s1588_s12  ;;  %v1190_v30 = vrot.slane %v1188_v9, 4  ;;  %v1193_v31 = vrot.slane %v1191_v11, 5  ;;  %v887_v34 = vrot.slane %v886_v17, 4  ;;  %v891_v35 = vrot.slane %v889_v16, 5  ;;  %v475_v50 = vld [vmem:[#allocation2 + $0x24] sm:$0x1] }
 0x19f   : > { %760 = vrot.lane.b32.xlu2 %v737_v2, %s1589_s13  ;;  %v352_v33 = vor.u32 %v350_v19, %v349_v22  ;;  %v542_v36 = vshrl.u32 %v474_v25, 16  ;;  %v545_v18 = vshll.u32 %v474_v25, 16  ;;  %v999_v38 = vsel %vm1692_vm12, %v1523_v20, %v998_v21  ;;  %v1045_v56 = vld [vmem:[#allocation2 + $0x48] sm:$0xf]  ;;  %v1260_v57 = vld [vmem:[#allocation2 + $0x40] sm:$0xe] }
 0x1a0   : > { %v353_v40 = vrot.slane %v349_v22, 4  ;;  %v1209_v42 = vrot.slane %v1208_v23, 4  ;;  %v1194_v43 = vor.u32 %v1193_v31, %v1190_v30  ;;  %v1197_v44 = vshll.u32 %v1100_v28, 16  ;;  %v1261_v58 = vld [vmem:[#allocation2 + $0x44] sm:$0x1] }
 0x1a1   : > { %v426_v41 = vsel %vm1670_vm6, %v352_v33, %v425_v26  ;;  %v892_v46 = vsel %vm1705_vm13, %v887_v34, %v891_v35  ;;  %v1213_v47 = vrot.slane %v1211_v24, 5  ;;  %v544_v48 = vrot.slane %v542_v36, 4  ;;  %v1262_v61 = vld [vmem:[#allocation2 + $0x48] sm:$0xe]  ;;  %v1263_v62 = vld [vmem:[#allocation2 + $0x4c] sm:$0x1] }
 0x1a2   : > { %611 = vrot.lane.b32.xlu0 %v596_v15, %s1590_s14  ;;  %427 = vst [vmem:[#allocation2 + $0x28] sm:$0xf] %v426_v41  ;;  %v429_v45 = vsel %vm1674_vm7, %v353_v40, %v428_v37  ;;  %v547_v49 = vrot.slane %v545_v18, 5  ;;  %v1195_v51 = vrot.slane %v1194_v43, 4  ;;  %v1199_v52 = vrot.slane %v1197_v44, 5 }
 0x1a3   : > { %430 = vst [vmem:[#allocation2 + $0x2c] sm:$0x1] %v429_v45  ;;  %v1214_v53 = vsel %vm1705_vm13, %v1209_v42, %v1213_v47  ;;  %v551_v55 = vshll.u32 %v475_v50, 16  ;;  %v1531_v1 = vrot.slane %v1260_v57, 9  ;;  %v1306_v2 = vrot.slane %v1261_v58, 5 }
 0x1a4   : > { %v548_v54 = vor.u32 %v547_v49, %v544_v48  ;;  %v1200_v60 = vsel %vm1705_vm13, %v1195_v51, %v1199_v52  ;;  %v1532_v5 = vrot.slane %v1262_v61, 9  ;;  %v1310_v6 = vrot.slane %v1263_v62, 5  ;;  %v638_v25 = vld [vmem:[#allocation2 + $0x20] sm:$0xe]  ;;  %v413_v35 = vld [vmem:[#allocation2 + $0x18] sm:$0xf] }
 0x1a5   : > { %v553_v0 = vrot.slane %v551_v55, 5  ;;  %v1307_v16 = vsel %vm1692_vm12, %v1531_v1, %v1306_v2  ;;  %v331_v23 = vshrl.u32 %v1662_v14, 16  ;;  %v334_v28 = vshll.u32 %v1662_v14, 16  ;;  %v639_v36 = vld [vmem:[#allocation2 + $0x24] sm:$0x1] }
 0x1a6   : > { %921 = vrot.lane.b32.xlu1 %v906_v27, %s1591_s15  ;;  %v549_v63 = vrot.slane %v548_v54, 4  ;;  %v1311_v24 = vsel %vm1692_vm12, %v1532_v5, %v1310_v6  ;;  %v1513_v41 = vrot.slane %v638_v25, 9  ;;  %v683_v43 = vrot.slane %v639_v36, 5  ;;  %v416_v48 = vld [vmem:[#allocation2 + $0x1c] sm:$0x1] }
 0x1a7   : > { %1016 = vrot.lane.b32.xlu2 %v999_v38, %s1587_s11  ;;  %v333_v27 = vrot.slane %v331_v23, 7  ;;  %v323_v54 = vshrl.u32 %v1660_v12, 16  ;;  %v1095_v55 = vld [vmem:[#allocation2 + $0x30] sm:$0xf]  ;;  %v790_v62 = vld [vmem:[#allocation2 + $0x34] sm:$0x1] }
 0x1a8   : > { %v554_v11 = vsel %vm1705_vm13, %v549_v63, %v553_v0  ;;  %v684_v50 = vsel %vm1692_vm12, %v1513_v41, %v683_v43  ;;  %v950_v61 = vld [vmem:[#allocation2 + $0x30] sm:$0xe]  ;;  %v951_v2 = vld [vmem:[#allocation2 + $0x34] sm:$0x1]  ;;  %v1098_v41 = vld [vmem:[#allocation2 + $0x3c] sm:$0x1] }
 0x1a9   : > { %v787_v3 = vld [vmem:[#allocation2 + $0x28] sm:$0xf]  ;;  %v336_v40 = vor.u32 %v334_v28, %v333_v27  ;;  %v337_v42 = vrot.slane %v333_v27, 4  ;;  %v325_v58 = vrot.slane %v323_v54, 7 }
 0x1aa   : > { %919 = vrot.lane.b32.xlu0 %v892_v46, %s1591_s15  ;;  %v476_v4 = vld [vmem:[#allocation2 + $0x28] sm:$0xf]  ;;  %v477_v7 = vld [vmem:[#allocation2 + $0x2c] sm:$0x1]  ;;  %v852_v15 = vshrl.u32 %v787_v3, 16  ;;  %v855_v17 = vshll.u32 %v787_v3, 16 }
 0x1ab   : > { %v556_v8 = vshrl.u32 %v476_v4, 16  ;;  %v559_v9 = vshll.u32 %v476_v4, 16  ;;  %v640_v13 = vld [vmem:[#allocation2 + $0x28] sm:$0xe]  ;;  %v641_v19 = vld [vmem:[#allocation2 + $0x2c] sm:$0x1]  ;;  %v414_v14 = vsel %vm1670_vm6, %v336_v40, %v413_v35  ;;  %v417_v49 = vsel %vm1674_vm7, %v337_v42, %v416_v48 }
 0x1ac   : > { %v565_v22 = vshll.u32 %v477_v7, 16  ;;  %v1514_v30 = vrot.slane %v640_v13, 9  ;;  %v687_v31 = vrot.slane %v641_v19, 5  ;;  %v854_v33 = vrot.slane %v852_v15, 4  ;;  %v788_v18 = vld [vmem:[#allocation2 + $0x2c] sm:$0x1] }
 0x1ad   : > { %v558_v20 = vrot.slane %v556_v8, 4  ;;  %v561_v21 = vrot.slane %v559_v9, 5  ;;  %v857_v34 = vrot.slane %v855_v17, 5  ;;  %v861_v46 = vshll.u32 %v788_v18, 16  ;;  %415 = vst [vmem:[#allocation2 + $0x18] sm:$0xf] %v414_v14 }
 0x1ae   : > { %1229 = vrot.lane.b32.xlu1 %v1214_v53, %s1592_s16  ;;  %v567_v38 = vrot.slane %v565_v22, 5  ;;  %v688_v44 = vsel %vm1692_vm12, %v1514_v30, %v687_v31  ;;  %418 = vst [vmem:[#allocation2 + $0x1c] sm:$0x1] %v417_v49  ;;  %v789_v53 = vld [vmem:[#allocation2 + $0x30] sm:$0xf]  ;;  %v1160_v3 = vshrl.u32 %v1095_v55, 16 }
 0x1af   : > { %1068 = vrot.lane.b32.xlu2 %v1045_v56, %s1586_s10  ;;  %v562_v26 = vor.u32 %v561_v21, %v558_v20  ;;  %v858_v45 = vor.u32 %v857_v34, %v854_v33  ;;  %v863_v52 = vrot.slane %v861_v46, 5  ;;  %v866_v56 = vshrl.u32 %v789_v53, 16  ;;  %v734_v5 = vld [vmem:[#allocation2 + $0x28] sm:$0xf]  ;;  %v410_v13 = vld [vmem:[#allocation2 + $0x14] sm:$0x1] }
 0x1b0   : > { %v869_v57 = vshll.u32 %v789_v53, 16  ;;  %v1163_v4 = vshll.u32 %v1095_v55, 16  ;;  %v875_v8 = vshll.u32 %v790_v62, 16  ;;  %v329_v9 = vrot.slane %v325_v58, 4  ;;  %v735_v15 = vld [vmem:[#allocation2 + $0x30] sm:$0xf] }
 0x1b1   : > { %v563_v37 = vrot.slane %v562_v26, 4  ;;  %v859_v51 = vrot.slane %v858_v45, 4  ;;  %v868_v63 = vrot.slane %v866_v56, 4  ;;  %v948_v17 = vld [vmem:[#allocation2 + $0x28] sm:$0xe]  ;;  %v1522_v19 = vrot.slane %v950_v61, 9 }
 0x1b2   : > { %1227 = vrot.lane.b32.xlu0 %v1200_v60, %s1592_s16  ;;  %v326_v60 = vshll.u32 %v1660_v12, 16  ;;  %v871_v0 = vrot.slane %v869_v57, 5  ;;  %v994_v20 = vrot.slane %v951_v2, 5  ;;  %v1162_v21 = vrot.slane %v1160_v3, 4  ;;  %v949_v23 = vld [vmem:[#allocation2 + $0x2c] sm:$0x1] }
 0x1b3   : > { %v568_v47 = vsel %vm1705_vm13, %v563_v37, %v567_v38  ;;  %v864_v1 = vsel %vm1705_vm13, %v859_v51, %v863_v52  ;;  %v1165_v22 = vrot.slane %v1163_v4, 5  ;;  %v877_v26 = vrot.slane %v875_v8, 5  ;;  %v1097_v37 = vld [vmem:[#allocation2 + $0x38] sm:$0xf]  ;;  %v1259_v45 = vld [vmem:[#allocation2 + $0x3c] sm:$0x1] }
 0x1b4   : > { %v328_v6 = vor.u32 %v326_v60, %v325_v58  ;;  %v872_v7 = vor.u32 %v871_v0, %v868_v63  ;;  %v1521_v27 = vrot.slane %v948_v17, 9  ;;  %v990_v28 = vrot.slane %v949_v23, 5  ;;  %v472_v46 = vld [vmem:[#allocation2 + $0x18] sm:$0xf]  ;;  %v1256_v51 = vld [vmem:[#allocation2 + $0x30] sm:$0xe] }
 0x1b5   : > { %v995_v30 = vsel %vm1692_vm12, %v1522_v19, %v994_v20  ;;  %v1166_v31 = vor.u32 %v1165_v22, %v1162_v21  ;;  %v1174_v38 = vshrl.u32 %v1097_v37, 16  ;;  %v1177_v40 = vshll.u32 %v1097_v37, 16  ;;  %v1257_v52 = vld [vmem:[#allocation2 + $0x34] sm:$0x1]  ;;  %v473_v4 = vld [vmem:[#allocation2 + $0x1c] sm:$0x1] }
 0x1b6   : > { %605 = vrot.lane.b32.xlu1 %v554_v11, %s1590_s14  ;;  %v407_v11 = vld [vmem:[#allocation2 + $0x10] sm:$0xf]  ;;  %v873_v25 = vrot.slane %v872_v7, 4  ;;  %v991_v35 = vsel %vm1692_vm12, %v1521_v27, %v990_v28  ;;  %v1183_v49 = vshll.u32 %v1098_v41, 16  ;;  %v1302_v54 = vrot.slane %v1259_v45, 5 }
 0x1b7   : > { %1324 = vrot.lane.b32.xlu2 %v1307_v16, %s1593_s17  ;;  %v408_v12 = vsel %vm1670_vm6, %v328_v6, %v407_v11  ;;  %v411_v16 = vsel %vm1674_vm7, %v329_v9, %v410_v13  ;;  %v1167_v36 = vrot.slane %v1166_v31, 4  ;;  %v1176_v42 = vrot.slane %v1174_v38, 4  ;;  %v785_v27 = vld [vmem:[#allocation2 + $0x20] sm:$0xf]  ;;  %v398_v37 = vld [vmem:[#allocation2 + $0x8] sm:$0xf] }
 0x1b8   : > { %409 = vst [vmem:[#allocation2 + $0x10] sm:$0xf] %v408_v12  ;;  %v878_v34 = vsel %vm1705_vm13, %v873_v25, %v877_v26  ;;  %v1179_v14 = vrot.slane %v1177_v40, 5  ;;  %v528_v55 = vshrl.u32 %v472_v46, 16  ;;  %v531_v56 = vshll.u32 %v472_v46, 16 }
 0x1b9   : > { %412 = vst [vmem:[#allocation2 + $0x14] sm:$0x1] %v411_v16  ;;  %v1185_v60 = vrot.slane %v1183_v49, 5  ;;  %v1529_v63 = vrot.slane %v1256_v51, 9  ;;  %v1298_v0 = vrot.slane %v1257_v52, 5  ;;  %v315_v23 = vshrl.u32 %v1658_v10, 16 }
 0x1ba   : > { %1326 = vrot.lane.b32.xlu0 %v1311_v24, %s1593_s17  ;;  %v1096_v24 = vld [vmem:[#allocation2 + $0x34] sm:$0x1]  ;;  %v1180_v48 = vor.u32 %v1179_v14, %v1176_v42  ;;  %v533_v6 = vrot.slane %v531_v56, 5  ;;  %v783_v40 = vld [vmem:[#allocation2 + $0x18] sm:$0xf] }
 0x1bb   : > { %v1169_v33 = vshll.u32 %v1096_v24, 16  ;;  %v1299_v17 = vsel %vm1692_vm12, %v1529_v63, %v1298_v0  ;;  %v317_v28 = vrot.slane %v315_v23, 7  ;;  %v824_v14 = vshrl.u32 %v783_v40, 16  ;;  %v786_v46 = vld [vmem:[#allocation2 + $0x24] sm:$0x1] }
 0x1bc   : > { %v1181_v58 = vrot.slane %v1180_v48, 4  ;;  %v404_v51 = vld [vmem:[#allocation2 + $0xc] sm:$0x1]  ;;  %v944_v52 = vld [vmem:[#allocation2 + $0x18] sm:$0xe] }
 0x1bd   : > { %v1171_v18 = vrot.slane %v1169_v33, 5  ;;  %v636_v33 = vld [vmem:[#allocation2 + $0x18] sm:$0xe]  ;;  %v321_v45 = vrot.slane %v317_v28, 4  ;;  %v826_v49 = vrot.slane %v824_v14, 4  ;;  %v1519_v63 = vrot.slane %v944_v52, 9 }
 0x1be   : > { %707 = vrot.lane.b32.xlu1 %v688_v44, %s1588_s12  ;;  %v1258_v44 = vld [vmem:[#allocation2 + $0x38] sm:$0xe]  ;;  %v1186_v11 = vsel %vm1705_vm13, %v1181_v58, %v1185_v60  ;;  %v1512_v41 = vrot.slane %v636_v33, 9 }
 0x1bf   : > { %607 = vrot.lane.b32.xlu2 %v568_v47, %s1590_s14  ;;  %v1172_v43 = vsel %vm1705_vm13, %v1167_v36, %v1171_v18  ;;  %v1042_v47 = vld [vmem:[#allocation2 + $0x30] sm:$0xf]  ;;  %v1530_v53 = vrot.slane %v1258_v44, 9  ;;  %v838_v36 = vshrl.u32 %v785_v27, 16  ;;  %v841_v18 = vshll.u32 %v785_v27, 16 }
 0x1c0   : > { %v470_v57 = vld [vmem:[#allocation2 + $0x10] sm:$0xf]  ;;  %v471_v7 = vld [vmem:[#allocation2 + $0x14] sm:$0x1]  ;;  %v733_v44 = vld [vmem:[#allocation2 + $0x20] sm:$0xf]  ;;  %v405_v29 = vsel %vm1674_vm7, %v321_v45, %v404_v51 }
 0x1c1   : > { %v514_v61 = vshrl.u32 %v470_v57, 16  ;;  %v517_v62 = vshll.u32 %v470_v57, 16  ;;  %v1303_v3 = vsel %vm1692_vm12, %v1530_v53, %v1302_v54  ;;  %v634_v8 = vld [vmem:[#allocation2 + $0x10] sm:$0xe]  ;;  %v635_v9 = vld [vmem:[#allocation2 + $0x14] sm:$0x1] }
 0x1c2   : > { %705 = vrot.lane.b32.xlu0 %v684_v50, %s1588_s12  ;;  %v1043_v50 = vld [vmem:[#allocation2 + $0x38] sm:$0xf]  ;;  %v523_v12 = vshll.u32 %v471_v7, 16  ;;  %v1511_v19 = vrot.slane %v634_v8, 9  ;;  %v675_v20 = vrot.slane %v635_v9, 5  ;;  %v843_v48 = vrot.slane %v841_v18, 5 }
 0x1c3   : > { %v519_v2 = vrot.slane %v517_v62, 5  ;;  %v455_v53 = vld [vmem:[#allocation2 + $0x30] sm:$0xf]  ;;  %v784_v54 = vld [vmem:[#allocation2 + $0x1c] sm:$0x1]  ;;  %v847_v62 = vshll.u32 %v786_v46, 16 }
 0x1c4   : > { %v525_v22 = vrot.slane %v523_v12, 5  ;;  %v676_v26 = vsel %vm1692_vm12, %v1511_v19, %v675_v20  ;;  %464 = vst.msk [vmem:[#allocation3 + $0x18] sm:$0xf] %vm395_vm2, %v455_v53  ;;  %v833_v58 = vshll.u32 %v784_v54, 16  ;;  %v732_v60 = vld [vmem:[#allocation2 + $0x18] sm:$0xf] }
 0x1c5   : > { %406 = vst [vmem:[#allocation2 + $0xc] sm:$0x1] %v405_v29  ;;  %v1253_v18 = vld [vmem:[#allocation2 + $0x24] sm:$0x1]  ;;  %vm1374_vm7 = vcmask 588800  }
 0x1c6   : > { %915 = vrot.lane.b32.xlu1 %v864_v1, %s1591_s15  ;;  %v516_v1 = vrot.slane %v514_v61, 4  ;;  %v1290_v45 = vrot.slane %v1253_v18, 5 }
 0x1c7   : > { %754 = vrot.lane.b32.xlu2 %v734_v5, %s1589_s13  ;;  %v530_v5 = vrot.slane %v528_v55, 4  ;;  %v945_v55 = vld [vmem:[#allocation2 + $0x1c] sm:$0x1] }
 0x1c8   : > { %v520_v13 = vor.u32 %v519_v2, %v516_v1  ;;  %v982_v0 = vrot.slane %v945_v55, 5  ;;  %v835_v1 = vrot.slane %v833_v58, 5 }
 0x1c9   : > { %v534_v16 = vor.u32 %v533_v6, %v530_v5  ;;  %v849_v6 = vrot.slane %v847_v62, 5 }
 0x1ca   : > { %756 = vrot.lane.b32.xlu0 %v735_v15, %s1589_s13  ;;  %v537_v15 = vshll.u32 %v473_v4, 16  ;;  %v521_v21 = vrot.slane %v520_v13, 4  ;;  %v456_v4 = vld [vmem:[#allocation2 + $0x38] sm:$0xf]  ;;  %v983_v7 = vsel %vm1692_vm12, %v1519_v63, %v982_v0  ;;  %v947_v13 = vld [vmem:[#allocation2 + $0x24] sm:$0x1] }
 0x1cb   : > { %v535_v25 = vrot.slane %v534_v16, 4  ;;  %465 = vst.msk [vmem:[#allocation3 + $0x1c] sm:$0xf] %vm395_vm2, %v456_v4  ;;  %v986_v19 = vrot.slane %v947_v13, 5  ;;  %v1254_v63 = vld [vmem:[#allocation2 + $0x28] sm:$0xe] }
 0x1cc   : > { %v539_v24 = vrot.slane %v537_v15, 5  ;;  %v526_v31 = vsel %vm1705_vm13, %v521_v21, %v525_v22  ;;  %v1094_v22 = vld [vmem:[#allocation2 + $0x2c] sm:$0x1] }
 0x1cd   : > { %v1255_v0 = vld [vmem:[#allocation2 + $0x2c] sm:$0x1] }
 0x1ce   : > { %1014 = vrot.lane.b32.xlu1 %v995_v30, %s1587_s11  ;;  %v318_v30 = vshll.u32 %v1658_v10, 16  ;;  %v540_v38 = vsel %vm1705_vm13, %v535_v25, %v539_v24 }
 0x1cf   : > { %917 = vrot.lane.b32.xlu2 %v878_v34, %s1591_s15  ;;  %v637_v34 = vld [vmem:[#allocation2 + $0x1c] sm:$0x1] }
 0x1d0   : > { %v679_v42 = vrot.slane %v637_v34, 5  ;;  %v1092_v34 = vld [vmem:[#allocation2 + $0x24] sm:$0x1] }
 0x1d2   : > { %1012 = vrot.lane.b32.xlu0 %v991_v35, %s1587_s11  ;;  %v320_v35 = vor.u32 %v318_v30, %v317_v28  ;;  %v680_v56 = vsel %vm1692_vm12, %v1512_v41, %v679_v42  ;;  %v466_v28 = vld [vmem:[#allocation2] sm:$0xf]  ;;  %v1155_v41 = vshll.u32 %v1094_v22, 16 }
 0x1d3   : > { %v486_v42 = vshrl.u32 %v466_v28, 16  ;;  %v489_v14 = vshll.u32 %v466_v28, 16  ;;  %v631_v28 = vld [vmem:[#allocation2 + $0x4] sm:$0x1] }
 0x1d4   : > { %v399_v10 = vsel %vm1670_vm6, %v320_v35, %v398_v37  ;;  %v1157_v55 = vrot.slane %v1155_v41, 5  ;;  %vm1336_vm6 = vcmask 585216  }
 0x1d5   : > { %400 = vst [vmem:[#allocation2 + $0x8] sm:$0xf] %v399_v10  ;;  %v488_v54 = vrot.slane %v486_v42, 4  ;;  %v491_v29 = vrot.slane %v489_v14, 5 }
 0x1d6   : > { %1223 = vrot.lane.b32.xlu1 %v1172_v43, %s1592_s16  ;;  %v827_v43 = vshll.u32 %v783_v40, 16 }
 0x1d7   : > { %1062 = vrot.lane.b32.xlu2 %v1042_v47, %s1586_s10  ;;  %v840_v47 = vrot.slane %v838_v36, 4  ;;  %v1252_v36 = vld [vmem:[#allocation2 + $0x20] sm:$0xe] }
 0x1d9   : > { %v844_v61 = vor.u32 %v843_v48, %v840_v47 }
 0x1da   : > { %1064 = vrot.lane.b32.xlu0 %v1043_v50, %s1586_s10  ;;  %v829_v50 = vrot.slane %v827_v43, 5  ;;  %v1040_v43 = vld [vmem:[#allocation2 + $0x20] sm:$0xf] }
 0x1db   : > { %v845_v5 = vrot.slane %v844_v61, 4  ;;  %v467_v61 = vld [vmem:[#allocation2 + $0x4] sm:$0x1] }
 0x1dc   : > { %v830_v57 = vor.u32 %v829_v50, %v826_v49  ;;  %v468_v20 = vld [vmem:[#allocation2 + $0x8] sm:$0xf]  ;;  %v469_v49 = vld [vmem:[#allocation2 + $0xc] sm:$0x1] }
 0x1dd   : > { %v850_v15 = vsel %vm1705_vm13, %v845_v5, %v849_v6  ;;  %v503_v33 = vshll.u32 %v468_v20, 16  ;;  %v509_v58 = vshll.u32 %v469_v49, 16 }
 0x1de   : > { %1322 = vrot.lane.b32.xlu1 %v1303_v3, %s1593_s17  ;;  %v831_v32 = vrot.slane %v830_v57, 4  ;;  %v1093_v3 = vld [vmem:[#allocation2 + $0x28] sm:$0xf] }
 0x1df   : > { %1225 = vrot.lane.b32.xlu2 %v1186_v11, %s1592_s16  ;;  %v1146_v9 = vshrl.u32 %v1093_v3, 16  ;;  %v946_v11 = vld [vmem:[#allocation2 + $0x20] sm:$0xe]  ;;  %v1149_v12 = vshll.u32 %v1093_v3, 16  ;;  %v505_v47 = vrot.slane %v503_v33, 5  ;;  %v495_v3 = vshll.u32 %v467_v61, 16 }
 0x1e0   : > { %v836_v8 = vsel %vm1705_vm13, %v831_v32, %v835_v1  ;;  %v1520_v16 = vrot.slane %v946_v11, 9  ;;  %v492_v32 = vor.u32 %v491_v29, %v488_v54  ;;  %v511_v5 = vrot.slane %v509_v58, 5 }
 0x1e1   : > { %v1148_v23 = vrot.slane %v1146_v9, 4  ;;  %v1151_v27 = vrot.slane %v1149_v12, 5  ;;  %v781_v9 = vld [vmem:[#allocation2 + $0x10] sm:$0xf]  ;;  %v779_v12 = vld [vmem:[#allocation2 + $0x8] sm:$0xf] }
 0x1e2   : > { %1320 = vrot.lane.b32.xlu0 %v1299_v17, %s1593_s17  ;;  %v1091_v17 = vld [vmem:[#allocation2 + $0x20] sm:$0xf]  ;;  %v987_v37 = vsel %vm1692_vm12, %v1520_v16, %v986_v19  ;;  %v493_v13 = vrot.slane %v492_v32, 4  ;;  %v810_v16 = vshrl.u32 %v781_v9, 16  ;;  %v813_v19 = vshll.u32 %v781_v9, 16 }
 0x1e3   : > { %v1132_v21 = vshrl.u32 %v1091_v17, 16  ;;  %v1135_v25 = vshll.u32 %v1091_v17, 16  ;;  %v1152_v10 = vor.u32 %v1151_v27, %v1148_v23  ;;  %v796_v23 = vshrl.u32 %v779_v12, 16  ;;  %v630_v27 = vld [vmem:[#allocation2] sm:$0xe] }
 0x1e4   : > { %v812_v33 = vrot.slane %v810_v16, 4  ;;  %v1509_v18 = vrot.slane %v630_v27, 9  ;;  %v731_v32 = vld [vmem:[#allocation2 + $0x10] sm:$0xf] }
 0x1e5   : > { %v1134_v30 = vrot.slane %v1132_v21, 4  ;;  %v1137_v35 = vrot.slane %v1135_v25, 5  ;;  %v1153_v53 = vrot.slane %v1152_v10, 4  ;;  %v632_v21 = vld [vmem:[#allocation2 + $0x8] sm:$0xe]  ;;  %v799_v25 = vshll.u32 %v779_v12, 16 }
 0x1e6   : > { %701 = vrot.lane.b32.xlu1 %v676_v26, %s1588_s12  ;;  %v1041_v26 = vld [vmem:[#allocation2 + $0x28] sm:$0xf]  ;;  %v780_v10 = vld [vmem:[#allocation2 + $0xc] sm:$0x1]  ;;  %v798_v41 = vrot.slane %v796_v23, 4 }
 0x1e7   : > { %601 = vrot.lane.b32.xlu2 %v526_v31, %s1590_s14  ;;  %v500_v31 = vshrl.u32 %v468_v20, 16  ;;  %v1138_v40 = vor.u32 %v1137_v35, %v1134_v30  ;;  %v1158_v1 = vsel %vm1705_vm13, %v1153_v53, %v1157_v55  ;;  %v801_v42 = vrot.slane %v799_v25, 5  ;;  %v1089_v55 = vld [vmem:[#allocation2 + $0x18] sm:$0xf]  ;;  %v1088_v25 = vld [vmem:[#allocation2 + $0x14] sm:$0x1] }
 0x1e8   : > { %v1118_v61 = vshrl.u32 %v1089_v55, 16 }
 0x1e9   : > { %v502_v46 = vrot.slane %v500_v31, 4  ;;  %v1139_v50 = vrot.slane %v1138_v40, 4  ;;  %v633_v31 = vld [vmem:[#allocation2 + $0xc] sm:$0x1]  ;;  %v802_v49 = vor.u32 %v801_v42, %v798_v41  ;;  %v1249_v41 = vld [vmem:[#allocation2 + $0x14] sm:$0x1] }
 0x1ea   : > { %603 = vrot.lane.b32.xlu0 %v540_v38, %s1590_s14  ;;  %v1141_v38 = vshll.u32 %v1092_v34, 16  ;;  %v815_v34 = vrot.slane %v813_v19, 5  ;;  %v671_v14 = vrot.slane %v633_v31, 5 }
 0x1eb   : > { %v506_v57 = vor.u32 %v505_v47, %v502_v46 }
 0x1ec   : > { %v1143_v51 = vrot.slane %v1141_v38, 5  ;;  %v1510_v38 = vrot.slane %v632_v21, 9 }
 0x1ed   : > { %v507_v4 = vrot.slane %v506_v57, 4  ;;  %v803_v57 = vrot.slane %v802_v49, 4 }
 0x1ee   : > { %752 = vrot.lane.b32.xlu1 %v733_v44, %s1589_s13  ;;  %v1527_v44 = vrot.slane %v1252_v36, 9  ;;  %v1144_v62 = vsel %vm1705_vm13, %v1139_v50, %v1143_v51  ;;  %v782_v36 = vld [vmem:[#allocation2 + $0x14] sm:$0x1]  ;;  %v805_v50 = vshll.u32 %v780_v10, 16  ;;  %v672_v51 = vsel %vm1692_vm12, %v1510_v38, %v671_v14  ;;  %v1248_v10 = vld [vmem:[#allocation2 + $0x10] sm:$0xe] }
 0x1ef   : > { %703 = vrot.lane.b32.xlu2 %v680_v56, %s1588_s12  ;;  %v512_v17 = vsel %vm1705_vm13, %v507_v4, %v511_v5  ;;  %v942_v4 = vld [vmem:[#allocation2 + $0x10] sm:$0xe]  ;;  %v943_v5 = vld [vmem:[#allocation2 + $0x14] sm:$0x1]  ;;  %v1250_v14 = vld [vmem:[#allocation2 + $0x18] sm:$0xe] }
 0x1f0   : > { %v1291_v56 = vsel %vm1692_vm12, %v1527_v44, %v1290_v45  ;;  %v816_v44 = vor.u32 %v815_v34, %v812_v33  ;;  %v819_v45 = vshll.u32 %v782_v36, 16  ;;  %v978_v16 = vrot.slane %v943_v5, 5 }
 0x1f1   : > { %v1824_v2 = vpop.permute.xlu2 %758 }
 0x1f2   : > { %750 = vrot.lane.b32.xlu0 %v732_v60, %s1589_s13  ;;  %v817_v53 = vrot.slane %v816_v44, 4  ;;  %v821_v54 = vrot.slane %v819_v45, 5  ;;  %v1525_v44 = vrot.slane %v1248_v10, 9  ;;  %v1282_v45 = vrot.slane %v1249_v41, 5 }
 0x1f4   : > { %v822_v58 = vsel %vm1705_vm13, %v817_v53, %v821_v54  ;;  %v1283_v39 = vsel %vm1692_vm12, %v1525_v44, %v1282_v45  ;;  %v451_v53 = vld [vmem:[#allocation2 + $0x10] sm:$0xf] }
 0x1f5   : > { %460 = vst.msk [vmem:[#allocation3 + $0x8] sm:$0xf] %vm395_vm2, %v451_v53 }
 0x1f6   : > { %1008 = vrot.lane.b32.xlu1 %v983_v7, %s1587_s11  ;;  %v1528_v7 = vrot.slane %v1254_v63, 9 }
 0x1f7   : > { %911 = vrot.lane.b32.xlu2 %v836_v8, %s1591_s15  ;;  %v1294_v8 = vrot.slane %v1255_v0, 5  ;;  %v1087_v0 = vld [vmem:[#allocation2 + $0x10] sm:$0xf] }
 0x1f9   : > { %v1836_v24 = vpop.permute.xlu2 %760  ;;  %v1295_v22 = vsel %vm1692_vm12, %v1528_v7, %v1294_v8  ;;  %v1107_v7 = vshll.u32 %v1087_v0, 16  ;;  %v1120_v8 = vrot.slane %v1118_v61, 4 }
 0x1fa   : > { %913 = vrot.lane.b32.xlu0 %v850_v15, %s1591_s15  ;;  %v497_v15 = vrot.slane %v495_v3, 5 }
 0x1fc   : > { %v498_v30 = vsel %vm1705_vm13, %v493_v13, %v497_v15  ;;  %v1090_v13 = vld [vmem:[#allocation2 + $0x1c] sm:$0x1] }
 0x1fe   : > { %1060 = vrot.lane.b32.xlu1 %v1041_v26, %s1586_s10  ;;  %v453_v26 = vld [vmem:[#allocation2 + $0x20] sm:$0xf] }
 0x1ff   : > { %1010 = vrot.lane.b32.xlu2 %v987_v37, %s1587_s11  ;;  %462 = vst.msk [vmem:[#allocation3 + $0x10] sm:$0xf] %vm395_vm2, %v453_v26  ;;  %v667_v37 = vrot.slane %v631_v28, 5 }
 0x200   : > { %v1843_v48 = vpop.permute.xlu1 %1066 }
 0x201   : > { %v1845_v52 = vpop.permute.xlu2 %1016  ;;  %v668_v47 = vsel %vm1692_vm12, %v1509_v18, %v667_v37 }
 0x202   : > { %1058 = vrot.lane.b32.xlu0 %v1040_v43, %s1586_s10  ;;  %v730_v43 = vld [vmem:[#allocation2 + $0x8] sm:$0xf] }
 0x204   : > { %v1850_v60 = vpop.permute.xlu0 %1018 }
 0x206   : > { %1316 = vrot.lane.b32.xlu1 %v1291_v56, %s1593_s17 }
 0x207   : > { %1219 = vrot.lane.b32.xlu2 %v1144_v62, %s1592_s16  ;;  %v1121_v62 = vshll.u32 %v1089_v55, 16 }
 0x208   : > { %v710_v6 = vpop.permute.xlu1 %709 }
 0x209   : > { %v1858_v11 = vpop.permute.xlu2 %1068  ;;  %v1123_v9 = vrot.slane %v1121_v62, 5 }
 0x20a   : > { %1221 = vrot.lane.b32.xlu0 %v1158_v1, %s1592_s16  ;;  %v940_v1 = vld [vmem:[#allocation2 + $0x8] sm:$0xe] }
 0x20b   : > { %v1124_v21 = vor.u32 %v1123_v9, %v1120_v8  ;;  %v449_v8 = vld [vmem:[#allocation2] sm:$0xf] }
 0x20c   : > { %v610_v20 = vpop.permute.xlu0 %609  ;;  %458 = vst.msk [vmem:[#allocation3] sm:$0xf] %vm395_vm2, %v449_v8 }
 0x20d   : > { %628 = vst.msk [vmem:[#allocation3 + $0x18] sm:$0xf] %vm621_vm14, %v610_v20  ;;  %v1109_v20 = vrot.slane %v1107_v7, 5  ;;  %v1125_v31 = vrot.slane %v1124_v21, 4 }
 0x20e   : > { %728 = vst.msk [vmem:[#allocation3 + $0x18] sm:$0xf] %vm721_vm15, %v710_v6  ;;  %599 = vrot.lane.b32.xlu1 %v512_v17, %s1590_s14  ;;  %v1104_v6 = vshrl.u32 %v1087_v0, 16  ;;  %v1518_v17 = vrot.slane %v942_v4, 9 }
 0x20f   : > { %777 = vst.msk [vmem:[#allocation3 + $0x18] sm:$0xf] %vm770_vm0, %v1824_v2  ;;  %1318 = vrot.lane.b32.xlu2 %v1295_v22, %s1593_s17  ;;  %v454_v2 = vld [vmem:[#allocation2 + $0x28] sm:$0xf]  ;;  %v1127_v22 = vshll.u32 %v1090_v13, 16 }
 0x210   : > { %v712_v35 = vpop.permute.xlu1 %711  ;;  %463 = vst.msk [vmem:[#allocation3 + $0x14] sm:$0xf] %vm395_vm2, %v454_v2  ;;  %v1106_v19 = vrot.slane %v1104_v6, 4  ;;  %v979_v27 = vsel %vm1692_vm12, %v1518_v17, %v978_v16  ;;  %v450_v13 = vld [vmem:[#allocation2 + $0x8] sm:$0xf] }
 0x211   : > { %v1874_v40 = vpop.permute.xlu2 %1324  ;;  %v1129_v33 = vrot.slane %v1127_v22, 5  ;;  %459 = vst.msk [vmem:[#allocation3 + $0x4] sm:$0xf] %vm395_vm2, %v450_v13 }
 0x212   : > { %597 = vrot.lane.b32.xlu0 %v498_v30, %s1590_s14  ;;  %v1110_v28 = vor.u32 %v1109_v20, %v1106_v19  ;;  %v1113_v30 = vshll.u32 %v1088_v25, 16 }
 0x213   : > { %v1130_v37 = vsel %vm1705_vm13, %v1125_v31, %v1129_v33 }
 0x214   : > { %v612_v46 = vpop.permute.xlu0 %611  ;;  %v1111_v36 = vrot.slane %v1110_v28, 4  ;;  %v1115_v18 = vrot.slane %v1113_v30, 5 }
 0x215   : > { %629 = vst.msk [vmem:[#allocation3 + $0x1c] sm:$0xf] %vm621_vm14, %v612_v46 }
 0x216   : > { %729 = vst.msk [vmem:[#allocation3 + $0x1c] sm:$0xf] %vm721_vm15, %v712_v35  ;;  %746 = vrot.lane.b32.xlu1 %v730_v43, %s1589_s13  ;;  %v1116_v42 = vsel %vm1705_vm13, %v1111_v36, %v1115_v18  ;;  %v1251_v43 = vld [vmem:[#allocation2 + $0x1c] sm:$0x1] }
 0x217   : > { %778 = vst.msk [vmem:[#allocation3 + $0x1c] sm:$0xf] %vm770_vm0, %v1836_v24  ;;  %697 = vrot.lane.b32.xlu2 %v668_v47, %s1588_s12  ;;  %v807_v24 = vrot.slane %v805_v50, 5  ;;  %v1526_v47 = vrot.slane %v1250_v14, 9  ;;  %v1286_v49 = vrot.slane %v1251_v43, 5 }
 0x218   : > { %v922_v29 = vpop.permute.xlu1 %921 }
 0x219   : > { %939 = vst.msk [vmem:[#allocation3 + $0x1c] sm:$0xf] %vm931_vm1, %v922_v29  ;;  %v608_v56 = vpop.permute.xlu2 %607  ;;  %v808_v3 = vsel %vm1705_vm13, %v803_v57, %v807_v24  ;;  %v1287_v29 = vsel %vm1692_vm12, %v1526_v47, %v1286_v49  ;;  %v452_v57 = vld [vmem:[#allocation2 + $0x18] sm:$0xf] }
 0x21a   : > { %699 = vrot.lane.b32.xlu0 %v672_v51, %s1588_s12  ;;  %1036 = vst.msk [vmem:[#allocation3 + $0x1c] sm:$0xf] %vm1028_vm3, %v1850_v60  ;;  %v941_v60 = vld [vmem:[#allocation2 + $0xc] sm:$0x1] }
 0x21b   : > { %1086 = vst.msk [vmem:[#allocation3 + $0x1c] sm:$0xf] %vm1078_vm4, %v1858_v11  ;;  %v974_v12 = vrot.slane %v941_v60, 5 }
 0x21c   : > { %v920_v63 = vpop.permute.xlu0 %919  ;;  %627 = vst.msk [vmem:[#allocation3 + $0x14] sm:$0xf] %vm621_vm14, %v608_v56 }
 0x21d   : > { %938 = vst.msk [vmem:[#allocation3 + $0x18] sm:$0xf] %vm931_vm1, %v920_v63 }
 0x21e   : > { %1035 = vst.msk [vmem:[#allocation3 + $0x18] sm:$0xf] %vm1028_vm3, %v1845_v52  ;;  %909 = vrot.lane.b32.xlu1 %v822_v58, %s1591_s15  ;;  %v1517_v52 = vrot.slane %v940_v1, 9 }
 0x21f   : > { %1085 = vst.msk [vmem:[#allocation3 + $0x18] sm:$0xf] %vm1078_vm4, %v1843_v48  ;;  %748 = vrot.lane.b32.xlu2 %v731_v32, %s1589_s13  ;;  %v1038_v48 = vld [vmem:[#allocation2 + $0x10] sm:$0xf] }
 0x220   : > { %v1230_v11 = vpop.permute.xlu1 %1229  ;;  %v975_v26 = vsel %vm1692_vm12, %v1517_v52, %v974_v12  ;;  %461 = vst.msk [vmem:[#allocation3 + $0xc] sm:$0xf] %vm395_vm2, %v452_v57  ;;  %vm1403_vm2 = vcmask 523264  }
 0x221   : > { %1247 = vst.msk [vmem:[#allocation3 + $0x1c] sm:$0xf] %vm1239_vm5, %v1230_v11  ;;  %v755_v15 = vpop.permute.xlu2 %754 }
 0x222   : > { %907 = vrot.lane.b32.xlu0 %v808_v3, %s1591_s15 }
 0x224   : > { %v1228_v23 = vpop.permute.xlu0 %1227 }
 0x225   : > { %1246 = vst.msk [vmem:[#allocation3 + $0x18] sm:$0xf] %vm1239_vm5, %v1228_v23 }
 0x226   : > { %1343 = vst.msk [vmem:[#allocation3 + $0x18] sm:$0xf] %vm1336_vm6, %v1874_v40  ;;  %1054 = vrot.lane.b32.xlu1 %v1038_v48, %s1586_s10  ;;  %v1039_v40 = vld [vmem:[#allocation2 + $0x18] sm:$0xf] }
 0x227   : > { %1004 = vrot.lane.b32.xlu2 %v975_v26, %s1587_s11 }
 0x228   : > { %v606_v34 = vpop.permute.xlu1 %605 }
 0x229   : > { %626 = vst.msk [vmem:[#allocation3 + $0x10] sm:$0xf] %vm621_vm14, %v606_v34  ;;  %v918_v35 = vpop.permute.xlu2 %917 }
 0x22a   : > { %1006 = vrot.lane.b32.xlu0 %v979_v27, %s1587_s11 }
 0x22c   : > { %v1327_v38 = vpop.permute.xlu0 %1326 }
 0x22d   : > { %1344 = vst.msk [vmem:[#allocation3 + $0x1c] sm:$0xf] %vm1336_vm6, %v1327_v38 }
 0x22e   : > { %1217 = vrot.lane.b32.xlu1 %v1130_v37, %s1592_s16 }
 0x22f   : > { %1056 = vrot.lane.b32.xlu2 %v1039_v40, %s1586_s10 }
 0x230   : > { %v708_v2 = vpop.permute.xlu1 %707 }
 0x231   : > { %727 = vst.msk [vmem:[#allocation3 + $0x14] sm:$0xf] %vm721_vm15, %v708_v2  ;;  %v1063_v46 = vpop.permute.xlu2 %1062  ;;  %v1345_v2 = vld [vmem:[%s2004_s3] sm:$0xf] }
 0x232   : > { %1215 = vrot.lane.b32.xlu0 %v1116_v42, %s1592_s16 }
 0x234   : > { %v706_v50 = vpop.permute.xlu0 %705  ;;  %v1555_v51 = vld [vmem:[#allocation3 + $0x18] sm:$0xff] }
 0x235   : > { %726 = vst.msk [vmem:[#allocation3 + $0x10] sm:$0xf] %vm721_vm15, %v706_v50  ;;  %v1388_v54 = vsel %vm1374_vm7, %v1555_v51, 0 }
 0x236   : > { %775 = vst.msk [vmem:[#allocation3 + $0x10] sm:$0xf] %vm770_vm0, %v755_v15  ;;  %1394 = vmatpush.bf16.xpose.msra.mxu0 %v1388_v54 }
 0x237   : > { %1312 = vrot.lane.b32.xlu2 %v1283_v39, %s1593_s17 }
 0x238   : > { %v916_v55 = vpop.permute.xlu1 %915 }
 0x239   : > { %936 = vst.msk [vmem:[#allocation3 + $0x10] sm:$0xf] %vm931_vm1, %v916_v55  ;;  %v1226_v56 = vpop.permute.xlu2 %1225 }
 0x23a   : > { %1314 = vrot.lane.b32.xlu0 %v1287_v29, %s1593_s17 }
 0x23c   : > { %v757_v24 = vpop.permute.xlu0 %756 }
 0x23d   : > { %776 = vst.msk [vmem:[#allocation3 + $0x14] sm:$0xf] %vm770_vm0, %v757_v24 }
 0x23e   : > { %937 = vst.msk [vmem:[#allocation3 + $0x14] sm:$0xf] %vm931_vm1, %v918_v35 }
 0x240   : > { %v1015_v59 = vpop.permute.xlu1 %1014 }
 0x241   : > { %1034 = vst.msk [vmem:[#allocation3 + $0x14] sm:$0xf] %vm1028_vm3, %v1015_v59  ;;  %v602_v58 = vpop.permute.xlu2 %601 }
 0x242   : > { %624 = vst.msk [vmem:[#allocation3 + $0x8] sm:$0xf] %vm621_vm14, %v602_v58 }
 0x244   : > { %v1013_v61 = vpop.permute.xlu0 %1012 }
 0x245   : > { %1033 = vst.msk [vmem:[#allocation3 + $0x10] sm:$0xf] %vm1028_vm3, %v1013_v61 }
 0x246   : > { %1083 = vst.msk [vmem:[#allocation3 + $0x10] sm:$0xf] %vm1078_vm4, %v1063_v46 }
 0x248   : > { %v1224_v62 = vpop.permute.xlu1 %1223 }
 0x249   : > { %1244 = vst.msk [vmem:[#allocation3 + $0x10] sm:$0xf] %vm1239_vm5, %v1224_v62  ;;  %v704_v63 = vpop.permute.xlu2 %703 }
 0x24c   : > { %v1065_v0 = vpop.permute.xlu0 %1064 }
 0x24d   : > { %1084 = vst.msk [vmem:[#allocation3 + $0x14] sm:$0xf] %vm1078_vm4, %v1065_v0 }
 0x24e   : > { %1245 = vst.msk [vmem:[#allocation3 + $0x14] sm:$0xf] %vm1239_vm5, %v1226_v56 }
 0x250   : > { %v1323_v32 = vpop.permute.xlu1 %1322 }
 0x251   : > { %1342 = vst.msk [vmem:[#allocation3 + $0x14] sm:$0xf] %vm1336_vm6, %v1323_v32  ;;  %v912_v1 = vpop.permute.xlu2 %911 }
 0x254   : > { %v1321_v60 = vpop.permute.xlu0 %1320 }
 0x255   : > { %1341 = vst.msk [vmem:[#allocation3 + $0x10] sm:$0xf] %vm1336_vm6, %v1321_v60 }
 0x258   : > { %v702_v3 = vpop.permute.xlu1 %701 }
 0x259   : > { %724 = vst.msk [vmem:[#allocation3 + $0x8] sm:$0xf] %vm721_vm15, %v702_v3  ;;  %v1011_v6 = vpop.permute.xlu2 %1010 }
 0x25c   : > { %v604_v4 = vpop.permute.xlu0 %603  ;;  %v1554_v5 = vld [vmem:[#allocation3 + $0x10] sm:$0xff] }
 0x25d   : > { %625 = vst.msk [vmem:[#allocation3 + $0xc] sm:$0xf] %vm621_vm14, %v604_v4  ;;  %v1385_v7 = vsel %vm1374_vm7, %v1554_v5, 0 }
 0x25e   : > { %725 = vst.msk [vmem:[#allocation3 + $0xc] sm:$0xf] %vm721_vm15, %v704_v63  ;;  %1395 = vmatpush.bf16.xpose.msra.mxu0 %v1385_v7 }
 0x260   : > { %v753_v9 = vpop.permute.xlu1 %752 }
 0x261   : > { %774 = vst.msk [vmem:[#allocation3 + $0xc] sm:$0xf] %vm770_vm0, %v753_v9  ;;  %v1220_v52 = vpop.permute.xlu2 %1219 }
 0x264   : > { %v751_v11 = vpop.permute.xlu0 %750 }
 0x265   : > { %773 = vst.msk [vmem:[#allocation3 + $0x8] sm:$0xf] %vm770_vm0, %v751_v11 }
 0x266   : > { %934 = vst.msk [vmem:[#allocation3 + $0x8] sm:$0xf] %vm931_vm1, %v912_v1 }
 0x268   : > { %v1009_v12 = vpop.permute.xlu1 %1008 }
 0x269   : > { %1031 = vst.msk [vmem:[#allocation3 + $0x8] sm:$0xf] %vm1028_vm3, %v1009_v12  ;;  %v1319_v16 = vpop.permute.xlu2 %1318 }
 0x26c   : > { %v914_v15 = vpop.permute.xlu0 %913 }
 0x26d   : > { %935 = vst.msk [vmem:[#allocation3 + $0xc] sm:$0xf] %vm931_vm1, %v914_v15 }
 0x26e   : > { %1032 = vst.msk [vmem:[#allocation3 + $0xc] sm:$0xf] %vm1028_vm3, %v1011_v6 }
 0x270   : > { %v1061_v17 = vpop.permute.xlu1 %1060 }
 0x271   : > { %1082 = vst.msk [vmem:[#allocation3 + $0xc] sm:$0xf] %vm1078_vm4, %v1061_v17  ;;  %v698_v20 = vpop.permute.xlu2 %697 }
 0x274   : > { %v1059_v48 = vpop.permute.xlu0 %1058 }
 0x275   : > { %1081 = vst.msk [vmem:[#allocation3 + $0x8] sm:$0xf] %vm1078_vm4, %v1059_v48 }
 0x276   : > { %1242 = vst.msk [vmem:[#allocation3 + $0x8] sm:$0xf] %vm1239_vm5, %v1220_v52 }
 0x278   : > { %v1317_v19 = vpop.permute.xlu1 %1316 }
 0x279   : > { %1339 = vst.msk [vmem:[#allocation3 + $0x8] sm:$0xf] %vm1336_vm6, %v1317_v19  ;;  %v749_v26 = vpop.permute.xlu2 %748 }
 0x27c   : > { %v1222_v21 = vpop.permute.xlu0 %1221 }
 0x27d   : > { %1243 = vst.msk [vmem:[#allocation3 + $0xc] sm:$0xf] %vm1239_vm5, %v1222_v21 }
 0x27e   : > { %1340 = vst.msk [vmem:[#allocation3 + $0xc] sm:$0xf] %vm1336_vm6, %v1319_v16 }
 0x280   : > { %v600_v22 = vpop.permute.xlu1 %599 }
 0x281   : > { %623 = vst.msk [vmem:[#allocation3 + $0x4] sm:$0xf] %vm621_vm14, %v600_v22  ;;  %v1005_v31 = vpop.permute.xlu2 %1004 }
 0x284   : > { %v598_v23 = vpop.permute.xlu0 %597 }
 0x285   : > { %622 = vst.msk [vmem:[#allocation3] sm:$0xf] %vm621_vm14, %v598_v23  ;;  %v1553_v25 = vld [vmem:[#allocation3 + $0x8] sm:$0xff] }
 0x286   : > { %722 = vst.msk [vmem:[#allocation3] sm:$0xf] %vm721_vm15, %v698_v20  ;;  %v1382_v27 = vsel %vm1374_vm7, %v1553_v25, 0 }
 0x287   : > { %1396 = vmatpush.bf16.xpose.msra.mxu0 %v1382_v27 }
 0x288   : > { %v747_v28 = vpop.permute.xlu1 %746 }
 0x289   : > { %771 = vst.msk [vmem:[#allocation3] sm:$0xf] %vm770_vm0, %v747_v28  ;;  %v1057_v36 = vpop.permute.xlu2 %1056 }
 0x28c   : > { %v700_v30 = vpop.permute.xlu0 %699 }
 0x28d   : > { %723 = vst.msk [vmem:[#allocation3 + $0x4] sm:$0xf] %vm721_vm15, %v700_v30 }
 0x28e   : > { %772 = vst.msk [vmem:[#allocation3 + $0x4] sm:$0xf] %vm770_vm0, %v749_v26 }
 0x290   : > { %v910_v33 = vpop.permute.xlu1 %909 }
 0x291   : > { %933 = vst.msk [vmem:[#allocation3 + $0x4] sm:$0xf] %vm931_vm1, %v910_v33  ;;  %v1313_v38 = vpop.permute.xlu2 %1312 }
 0x294   : > { %v908_v34 = vpop.permute.xlu0 %907 }
 0x295   : > { %932 = vst.msk [vmem:[#allocation3] sm:$0xf] %vm931_vm1, %v908_v34 }
 0x296   : > { %1029 = vst.msk [vmem:[#allocation3] sm:$0xf] %vm1028_vm3, %v1005_v31 }
 0x298   : > { %v1055_v35 = vpop.permute.xlu1 %1054 }
 0x299   : > { %1079 = vst.msk [vmem:[#allocation3] sm:$0xf] %vm1078_vm4, %v1055_v35 }
 0x29c   : > { %v1007_v18 = vpop.permute.xlu0 %1006 }
 0x29d   : > { %1030 = vst.msk [vmem:[#allocation3 + $0x4] sm:$0xf] %vm1028_vm3, %v1007_v18 }
 0x29e   : > { %1080 = vst.msk [vmem:[#allocation3 + $0x4] sm:$0xf] %vm1078_vm4, %v1057_v36 }
 0x2a0   : > { %v1218_v37 = vpop.permute.xlu1 %1217 }
 0x2a1   : > { %1241 = vst.msk [vmem:[#allocation3 + $0x4] sm:$0xf] %vm1239_vm5, %v1218_v37 }
 0x2a4   : > { %v1216_v40 = vpop.permute.xlu0 %1215 }
 0x2a5   : > { %1240 = vst.msk [vmem:[#allocation3] sm:$0xf] %vm1239_vm5, %v1216_v40 }
 0x2a6   : > { %1337 = vst.msk [vmem:[#allocation3] sm:$0xf] %vm1336_vm6, %v1313_v38 }
 0x2ac   : > { %v1315_v10 = vpop.permute.xlu0 %1314 }
 0x2ad   : > { %1338 = vst.msk [vmem:[#allocation3 + $0x4] sm:$0xf] %vm1336_vm6, %v1315_v10 }
 0x2b4   : > { %v1552_v41 = vld [vmem:[#allocation3] sm:$0xff] }
 0x2b5   : > { %v1379_v42 = vsel %vm1374_vm7, %v1552_v41, 0 }
 0x2b6   : > { %1397 = vmatpush.bf16.xpose.msra.mxu0 %v1379_v42 }
 0x2bd   : > { %1549 = vmatmul.msk.bf16.vlgmr.msra.gmra.mxu0 %vm1374_vm7, %v1345_v2 }
 0x33a   : > { %v1399_v14 = vpop.f32.mrf.mxu0 }
 0x33b   : > { %v1405_v43 = vsel %vm1403_vm2, %v1399_v14, 0.0  ;;  %1404 = vst.msk [vmem:[%s226_s26] sm:$0xff] %vm1403_vm2, %v1399_v14  ;;  %v1410_v44 = vmul.f32 %v1399_v14, %v1399_v14 }
 0x33c   : > { %1406 = vadd.xlane.f32.xlu1 %v1405_v43 }
 0x33d   : > { %v1411_v45 = vsel %vm1403_vm2, %v1410_v44, 0.0 }
 0x33e   : > { %1412 = vadd.xlane.f32.xlu2 %v1411_v45 }
 0x342   : > { %v1401_v46 = vpop.f32.mrf.mxu0 }
 0x3af   : > { %v1407_v47 = vpop.xlane.xlu1 %1406 }
 0x3b0   : > { %1409 = vst.msk [vmem:[%s1649_s29] sm:$0xff] %vm1408_vm8, %v1407_v47 }
 0x3b1   : > { %v1413_v49 = vpop.xlane.xlu2 %1412 }
 0x3b2   : > { %1415 = vst.msk [vmem:[%s1649_s29] sm:$0xff] %vm1414_vm9, %v1413_v49 }
 0x3b3 PF: > { %s16_s18 = sadd.s32 1, %s1582_s18  }
 0x3b4   : > { %p13_p5 = scmp.ge.s32.totalorder %s16_s18, 4  }
 0x3b6   :  { %15 = sbr.rel (!%p13_p5) target bundleno = 1 (0x1), region = 84 }

</bundles_post_ra>
